<compile_context>
chip_gen: v6e
topology: v6e:2x2x1
jax: 0.10.0
libtpu: 0.0.40
codegen_flags: <defaults>
</compile_context>

<pallas_src>
import functools

import numpy as np

import jax
import jax.numpy as jnp
from jax import lax
from jax.experimental import pallas as pl
from jax.experimental.pallas import tpu as pltpu

BN_EPS = 1e-5
_LANE = 128
_VMEM_LIMIT = 48 * 1024 * 1024  # < 64 MiB physical on v7x; >> v5e's 16 MiB default


def _conv_stats_kernel(taps, stride, x_ref, w_ref, mask_ref, conv_ref, stats_ref):
    """One image per grid step: KH*KW tap matmuls + masked partial BN stats."""
    rows_p = conv_ref.shape[1]
    acc = None
    for t, base in enumerate(taps):
        if stride == 1:
            lhs = x_ref[0, pl.ds(base, rows_p), :]
        else:
            # TODO(synk): strided sublane window; falls outside the demo (stride=1).
            lhs = x_ref[0, pl.ds(base, rows_p, stride=stride), :]
        part = jnp.dot(lhs, w_ref[t], preferred_element_type=jnp.float32)
        acc = part if acc is None else acc + part
    conv_ref[0] = acc.astype(conv_ref.dtype)
    # Partial BatchNorm statistics from the *f32* accumulator, with the padded /
    # out-of-window rows masked out (mask is 1.0 on valid conv rows, else 0.0).
    masked = acc * mask_ref[...]
    stats_ref[0, 0:1, :] = jnp.sum(masked, axis=0, keepdims=True)
    stats_ref[0, 1:2, :] = jnp.sum(acc * masked, axis=0, keepdims=True)


def _bn_relu_kernel(y_ref, scale_ref, bias_ref, o_ref):
    y = y_ref[0].astype(jnp.float32)
    out = y * scale_ref[...] + bias_ref[...]
    o_ref[0] = jnp.maximum(out, 0.0).astype(o_ref.dtype)


@functools.partial(
    jax.jit,
    static_argnames=("stride", "padding", "compute_dtype", "in_layout", "out_layout"),
)
def basic_block_forward(
    x,
    w_oihw,
    gamma,
    beta,
    stride=1,
    padding=1,
    compute_dtype=jnp.bfloat16,
    in_layout="NCHW",
    out_layout="NCHW",
):
    """x: (N, Cin, H, W) [or NHWC]; w_oihw: (Cout, Cin, KH, KW) -> conv+BN+ReLU."""
    if in_layout == "NCHW":
        N, Cin, H, W = x.shape
        x_nhwc = jnp.transpose(x, (0, 2, 3, 1))
    else:
        N, H, W, Cin = x.shape
        x_nhwc = x
    Cout, _, KH, KW = w_oihw.shape
    Ho = (H + 2 * padding - KH) // stride + 1
    Wo = (W + 2 * padding - KW) // stride + 1
    Hp, Wp = H + 2 * padding, W + 2 * padding

    # Conv rows are laid out as j = h*Wp + w (garbage where w >= Wo); rounding
    # to a multiple of 128 rows makes the kernel-2 lane-dense reshape free.
    rows_valid = Ho * Wp
    rows_p = -(-rows_valid // _LANE) * _LANE
    base_max = (KH - 1) * Wp + (KW - 1)
    r_needed = base_max + stride * (rows_p - 1) + 1
    extra = max(0, r_needed - Hp * Wp)
    R = Hp * Wp + extra

    # ---- wrapper glue (one fused XLA pass): transpose, pad, flatten ----
    x_pad = jnp.pad(x_nhwc, ((0, 0), (padding, padding), (padding, padding), (0, 0)))
    x_flat = x_pad.reshape(N, Hp * Wp, Cin)
    if extra:
        x_flat = jnp.pad(x_flat, ((0, 0), (0, extra), (0, 0)))
    x_flat = x_flat.astype(compute_dtype)

    # (Cout, Cin, KH, KW) -> (KH*KW, Cin, Cout); tap t = kh*KW + kw.
    w_taps = jnp.transpose(w_oihw, (2, 3, 1, 0)).reshape(KH * KW, Cin, Cout)
    w_taps = w_taps.astype(compute_dtype)

    # Constant valid-row mask: j < Ho*Wp and (j % Wp) < Wo.
    jrow = np.arange(rows_p)
    mask_np = ((jrow < rows_valid) & ((jrow % Wp) < Wo)).astype(np.float32)
    mask = jnp.asarray(mask_np).reshape(rows_p, 1)

    taps = tuple(kh * Wp + kw for kh in range(KH) for kw in range(KW))

    # ---- kernel 1: per-image tap matmuls + packed partial BN stats ----
    conv, stats = pl.pallas_call(
        functools.partial(_conv_stats_kernel, taps, stride),
        out_shape=(
            jax.ShapeDtypeStruct((N, rows_p, Cout), compute_dtype),
            jax.ShapeDtypeStruct((N, 2, Cout), jnp.float32),
        ),
        grid_spec=pltpu.PrefetchScalarGridSpec(
            num_scalar_prefetch=0,
            grid=(N,),
            in_specs=[
                pl.BlockSpec((1, R, Cin), lambda i: (i, 0, 0)),
                pl.BlockSpec((KH * KW, Cin, Cout), lambda i: (0, 0, 0)),  # resident
                pl.BlockSpec((rows_p, 1), lambda i: (0, 0)),              # resident
            ],
            out_specs=[
                pl.BlockSpec((1, rows_p, Cout), lambda i: (i, 0, 0)),
                pl.BlockSpec((1, 2, Cout), lambda i: (i, 0, 0)),
            ],
        ),
        compiler_params=pltpu.CompilerParams(
            dimension_semantics=("parallel",),
            vmem_limit_bytes=_VMEM_LIMIT,
        ),
    )(x_flat, w_taps, mask)

    # ---- tiny reduction + BN parameter folding (f32, outside the kernel) ----
    m_count = float(N * Ho * Wo)
    total_sum = jnp.sum(stats[:, 0, :], axis=0)  # (Cout,)
    total_ssq = jnp.sum(stats[:, 1, :], axis=0)  # (Cout,)
    mean = total_sum / m_count
    var = jnp.maximum(total_ssq / m_count - mean * mean, 0.0)  # biased variance
    inv_std = lax.rsqrt(var + BN_EPS)
    ch_scale = gamma.astype(jnp.float32) * inv_std
    ch_bias = beta.astype(jnp.float32) - mean * ch_scale

    # ---- kernel 2: lane-dense BN affine + ReLU ----
    lane_w = _LANE * Cout
    rows2 = rows_p // _LANE
    conv_lane = conv.reshape(N, rows2, lane_w)  # contiguous -> free reshape
    scale_lane = jnp.tile(ch_scale, _LANE).reshape(1, lane_w)
    bias_lane = jnp.tile(ch_bias, _LANE).reshape(1, lane_w)

    out_lane = pl.pallas_call(
        _bn_relu_kernel,
        out_shape=jax.ShapeDtypeStruct((N, rows2, lane_w), x.dtype),
        grid_spec=pltpu.PrefetchScalarGridSpec(
            num_scalar_prefetch=0,
            grid=(N,),
            in_specs=[
                pl.BlockSpec((1, rows2, lane_w), lambda i: (i, 0, 0)),
                pl.BlockSpec((1, lane_w), lambda i: (0, 0)),
                pl.BlockSpec((1, lane_w), lambda i: (0, 0)),
            ],
            out_specs=pl.BlockSpec((1, rows2, lane_w), lambda i: (i, 0, 0)),
        ),
        compiler_params=pltpu.CompilerParams(
            dimension_semantics=("parallel",),
            vmem_limit_bytes=_VMEM_LIMIT,
        ),
    )(conv_lane, scale_lane, bias_lane)

    # Drop the garbage columns / padding rows (single fused XLA copy, folded
    # into the layout transpose below when NCHW output is requested).
    out = out_lane.reshape(N, rows_p, Cout)[:, :rows_valid, :]
    out = out.reshape(N, Ho, Wp, Cout)[:, :, :Wo, :]
    if out_layout == "NHWC":
        return out
    return jnp.transpose(out, (0, 3, 1, 2))


def reference_forward(x, w, gamma, beta, stride=1, padding=1):
    conv = lax.conv_general_dilated(
        x, w, window_strides=(stride, stride),
        padding=((padding, padding), (padding, padding)),
        dimension_numbers=("NCHW", "OIHW", "NCHW"))
    mean = conv.mean(axis=(0, 2, 3), keepdims=True)
    var = jnp.square(conv - mean).mean(axis=(0, 2, 3), keepdims=True)
    y = (conv - mean) * lax.rsqrt(var + BN_EPS)
    y = y * gamma.reshape(1, -1, 1, 1) + beta.reshape(1, -1, 1, 1)
    return jnp.maximum(y, 0.0)


if __name__ == "__main__":
    # Small deterministic example: in_planes=4, planes=8, stride=1, 3x3 conv, pad=1.
    N, Cin, H, W = 2, 4, 16, 16
    Cout, KH, KW = 8, 3, 3

    key = jax.random.PRNGKey(0)
    kx, kw, kg, kb = jax.random.split(key, 4)
    x = jax.random.normal(kx, (N, Cin, H, W), dtype=jnp.float32)
    w = jax.random.normal(kw, (Cout, Cin, KH, KW), dtype=jnp.float32) * 0.1
    gamma = 1.0 + 0.1 * jax.random.normal(kg, (Cout,), dtype=jnp.float32)
    beta = 0.1 * jax.random.normal(kb, (Cout,), dtype=jnp.float32)

    ref = reference_forward(x, w, gamma, beta, stride=1, padding=1)

    # f32 path (f32 intermediate): tight tolerance.
    out_f32 = basic_block_forward(
        x, w, gamma, beta, stride=1, padding=1, compute_dtype=jnp.float32)
    out_f32 = jax.block_until_ready(out_f32)
    assert out_f32.shape == (N, Cout, H, W), out_f32.shape
    assert jnp.allclose(out_f32, ref, atol=1e-3, rtol=1e-3), float(
        jnp.abs(out_f32 - ref).max())

    # Default bf16 path (bf16 inputs + bf16 intermediate, f32 accumulation):
    # relaxed tolerance since BN normalizes bf16-rounded activations.
    out_bf16 = basic_block_forward(x, w, gamma, beta, stride=1, padding=1)
    out_bf16 = jax.block_until_ready(out_bf16)
    assert out_bf16.shape == (N, Cout, H, W), out_bf16.shape
    assert jnp.allclose(out_bf16, ref, atol=1e-1, rtol=5e-2), float(
        jnp.abs(out_bf16 - ref).max())

    print("KERNEL_OK")
</pallas_src>

<mosaic_0001>
module attributes {stable_mosaic.version = 11 : i64} {
  func.func @_conv_stats_kernel(%arg0: i32, %arg1: memref<1x422x4xf32, #tpu.memory_space<vmem>>, %arg2: memref<9x4x8xf32, #tpu.memory_space<vmem>>, %arg3: memref<384x1xf32, #tpu.memory_space<vmem>>, %arg4: memref<1x384x8xf32, #tpu.memory_space<vmem>>, %arg5: memref<1x2x8xf32, #tpu.memory_space<vmem>>) attributes {dimension_semantics = [#tpu.dimension_semantics<parallel>], iteration_bounds = array<i64: 2>, scalar_prefetch = 0 : i64, scratch_operands = 0 : i64, tpu.core_type = #tpu.core_type<tc>, window_params = [{transform_indices = @transform_0, window_bounds = array<i64: 1, 422, 4>}, {pipeline_mode = #tpu.pipeline_mode<synchronous>, transform_indices = @transform_1, window_bounds = array<i64: 9, 4, 8>}, {pipeline_mode = #tpu.pipeline_mode<synchronous>, transform_indices = @transform_2, window_bounds = array<i64: 384, 1>}, {transform_indices = @transform_3, window_bounds = array<i64: 1, 384, 8>}, {transform_indices = @transform_4, window_bounds = array<i64: 1, 2, 8>}]} {
    %c0 = arith.constant 0 : index
    %c0_0 = arith.constant 0 : index
    %c0_1 = arith.constant 0 : index
    %0 = vector.load %arg1[%c0, %c0_0, %c0_1] : memref<1x422x4xf32, #tpu.memory_space<vmem>>, vector<1x384x4xf32>
    %1 = vector.shape_cast %0 : vector<1x384x4xf32> to vector<384x4xf32>
    %c0_2 = arith.constant 0 : index
    %c0_3 = arith.constant 0 : index
    %c0_4 = arith.constant 0 : index
    %2 = vector.load %arg2[%c0_2, %c0_3, %c0_4] : memref<9x4x8xf32, #tpu.memory_space<vmem>>, vector<1x4x8xf32>
    %3 = vector.shape_cast %2 : vector<1x4x8xf32> to vector<4x8xf32>
    %cst = arith.constant dense<0.000000e+00> : vector<384x8xf32>
    %4 = tpu.matmul %1, %3, %cst {dimension_numbers = #tpu.dot_dimension_numbers<[1], [0], [0], [1], [0, 0, 1, 1], [], []>} : vector<384x4xf32>, vector<4x8xf32>, vector<384x8xf32> -> vector<384x8xf32>
    %c0_5 = arith.constant 0 : index
    %c1 = arith.constant 1 : index
    %c0_6 = arith.constant 0 : index
    %5 = vector.load %arg1[%c0_5, %c1, %c0_6] : memref<1x422x4xf32, #tpu.memory_space<vmem>>, vector<1x384x4xf32>
    %6 = vector.shape_cast %5 : vector<1x384x4xf32> to vector<384x4xf32>
    %c1_7 = arith.constant 1 : index
    %c0_8 = arith.constant 0 : index
    %c0_9 = arith.constant 0 : index
    %7 = vector.load %arg2[%c1_7, %c0_8, %c0_9] : memref<9x4x8xf32, #tpu.memory_space<vmem>>, vector<1x4x8xf32>
    %8 = vector.shape_cast %7 : vector<1x4x8xf32> to vector<4x8xf32>
    %cst_10 = arith.constant dense<0.000000e+00> : vector<384x8xf32>
    %9 = tpu.matmul %6, %8, %cst_10 {dimension_numbers = #tpu.dot_dimension_numbers<[1], [0], [0], [1], [0, 0, 1, 1], [], []>} : vector<384x4xf32>, vector<4x8xf32>, vector<384x8xf32> -> vector<384x8xf32>
    %10 = arith.addf %4, %9 : vector<384x8xf32>
    %c0_11 = arith.constant 0 : index
    %c2 = arith.constant 2 : index
    %c0_12 = arith.constant 0 : index
    %11 = vector.load %arg1[%c0_11, %c2, %c0_12] : memref<1x422x4xf32, #tpu.memory_space<vmem>>, vector<1x384x4xf32>
    %12 = vector.shape_cast %11 : vector<1x384x4xf32> to vector<384x4xf32>
    %c2_13 = arith.constant 2 : index
    %c0_14 = arith.constant 0 : index
    %c0_15 = arith.constant 0 : index
    %13 = vector.load %arg2[%c2_13, %c0_14, %c0_15] : memref<9x4x8xf32, #tpu.memory_space<vmem>>, vector<1x4x8xf32>
    %14 = vector.shape_cast %13 : vector<1x4x8xf32> to vector<4x8xf32>
    %cst_16 = arith.constant dense<0.000000e+00> : vector<384x8xf32>
    %15 = tpu.matmul %12, %14, %cst_16 {dimension_numbers = #tpu.dot_dimension_numbers<[1], [0], [0], [1], [0, 0, 1, 1], [], []>} : vector<384x4xf32>, vector<4x8xf32>, vector<384x8xf32> -> vector<384x8xf32>
    %16 = arith.addf %10, %15 : vector<384x8xf32>
    %c0_17 = arith.constant 0 : index
    %c18 = arith.constant 18 : index
    %c0_18 = arith.constant 0 : index
    %17 = vector.load %arg1[%c0_17, %c18, %c0_18] : memref<1x422x4xf32, #tpu.memory_space<vmem>>, vector<1x384x4xf32>
    %18 = vector.shape_cast %17 : vector<1x384x4xf32> to vector<384x4xf32>
    %c3 = arith.constant 3 : index
    %c0_19 = arith.constant 0 : index
    %c0_20 = arith.constant 0 : index
    %19 = vector.load %arg2[%c3, %c0_19, %c0_20] : memref<9x4x8xf32, #tpu.memory_space<vmem>>, vector<1x4x8xf32>
    %20 = vector.shape_cast %19 : vector<1x4x8xf32> to vector<4x8xf32>
    %cst_21 = arith.constant dense<0.000000e+00> : vector<384x8xf32>
    %21 = tpu.matmul %18, %20, %cst_21 {dimension_numbers = #tpu.dot_dimension_numbers<[1], [0], [0], [1], [0, 0, 1, 1], [], []>} : vector<384x4xf32>, vector<4x8xf32>, vector<384x8xf32> -> vector<384x8xf32>
    %22 = arith.addf %16, %21 : vector<384x8xf32>
    %c0_22 = arith.constant 0 : index
    %c19 = arith.constant 19 : index
    %c0_23 = arith.constant 0 : index
    %23 = vector.load %arg1[%c0_22, %c19, %c0_23] : memref<1x422x4xf32, #tpu.memory_space<vmem>>, vector<1x384x4xf32>
    %24 = vector.shape_cast %23 : vector<1x384x4xf32> to vector<384x4xf32>
    %c4 = arith.constant 4 : index
    %c0_24 = arith.constant 0 : index
    %c0_25 = arith.constant 0 : index
    %25 = vector.load %arg2[%c4, %c0_24, %c0_25] : memref<9x4x8xf32, #tpu.memory_space<vmem>>, vector<1x4x8xf32>
    %26 = vector.shape_cast %25 : vector<1x4x8xf32> to vector<4x8xf32>
    %cst_26 = arith.constant dense<0.000000e+00> : vector<384x8xf32>
    %27 = tpu.matmul %24, %26, %cst_26 {dimension_numbers = #tpu.dot_dimension_numbers<[1], [0], [0], [1], [0, 0, 1, 1], [], []>} : vector<384x4xf32>, vector<4x8xf32>, vector<384x8xf32> -> vector<384x8xf32>
    %28 = arith.addf %22, %27 : vector<384x8xf32>
    %c0_27 = arith.constant 0 : index
    %c20 = arith.constant 20 : index
    %c0_28 = arith.constant 0 : index
    %29 = vector.load %arg1[%c0_27, %c20, %c0_28] : memref<1x422x4xf32, #tpu.memory_space<vmem>>, vector<1x384x4xf32>
    %30 = vector.shape_cast %29 : vector<1x384x4xf32> to vector<384x4xf32>
    %c5 = arith.constant 5 : index
    %c0_29 = arith.constant 0 : index
    %c0_30 = arith.constant 0 : index
    %31 = vector.load %arg2[%c5, %c0_29, %c0_30] : memref<9x4x8xf32, #tpu.memory_space<vmem>>, vector<1x4x8xf32>
    %32 = vector.shape_cast %31 : vector<1x4x8xf32> to vector<4x8xf32>
    %cst_31 = arith.constant dense<0.000000e+00> : vector<384x8xf32>
    %33 = tpu.matmul %30, %32, %cst_31 {dimension_numbers = #tpu.dot_dimension_numbers<[1], [0], [0], [1], [0, 0, 1, 1], [], []>} : vector<384x4xf32>, vector<4x8xf32>, vector<384x8xf32> -> vector<384x8xf32>
    %34 = arith.addf %28, %33 : vector<384x8xf32>
    %c0_32 = arith.constant 0 : index
    %c36 = arith.constant 36 : index
    %c0_33 = arith.constant 0 : index
    %35 = vector.load %arg1[%c0_32, %c36, %c0_33] : memref<1x422x4xf32, #tpu.memory_space<vmem>>, vector<1x384x4xf32>
    %36 = vector.shape_cast %35 : vector<1x384x4xf32> to vector<384x4xf32>
    %c6 = arith.constant 6 : index
    %c0_34 = arith.constant 0 : index
    %c0_35 = arith.constant 0 : index
    %37 = vector.load %arg2[%c6, %c0_34, %c0_35] : memref<9x4x8xf32, #tpu.memory_space<vmem>>, vector<1x4x8xf32>
    %38 = vector.shape_cast %37 : vector<1x4x8xf32> to vector<4x8xf32>
    %cst_36 = arith.constant dense<0.000000e+00> : vector<384x8xf32>
    %39 = tpu.matmul %36, %38, %cst_36 {dimension_numbers = #tpu.dot_dimension_numbers<[1], [0], [0], [1], [0, 0, 1, 1], [], []>} : vector<384x4xf32>, vector<4x8xf32>, vector<384x8xf32> -> vector<384x8xf32>
    %40 = arith.addf %34, %39 : vector<384x8xf32>
    %c0_37 = arith.constant 0 : index
    %c37 = arith.constant 37 : index
    %c0_38 = arith.constant 0 : index
    %41 = vector.load %arg1[%c0_37, %c37, %c0_38] : memref<1x422x4xf32, #tpu.memory_space<vmem>>, vector<1x384x4xf32>
    %42 = vector.shape_cast %41 : vector<1x384x4xf32> to vector<384x4xf32>
    %c7 = arith.constant 7 : index
    %c0_39 = arith.constant 0 : index
    %c0_40 = arith.constant 0 : index
    %43 = vector.load %arg2[%c7, %c0_39, %c0_40] : memref<9x4x8xf32, #tpu.memory_space<vmem>>, vector<1x4x8xf32>
    %44 = vector.shape_cast %43 : vector<1x4x8xf32> to vector<4x8xf32>
    %cst_41 = arith.constant dense<0.000000e+00> : vector<384x8xf32>
    %45 = tpu.matmul %42, %44, %cst_41 {dimension_numbers = #tpu.dot_dimension_numbers<[1], [0], [0], [1], [0, 0, 1, 1], [], []>} : vector<384x4xf32>, vector<4x8xf32>, vector<384x8xf32> -> vector<384x8xf32>
    %46 = arith.addf %40, %45 : vector<384x8xf32>
    %c0_42 = arith.constant 0 : index
    %c38 = arith.constant 38 : index
    %c0_43 = arith.constant 0 : index
    %47 = vector.load %arg1[%c0_42, %c38, %c0_43] : memref<1x422x4xf32, #tpu.memory_space<vmem>>, vector<1x384x4xf32>
    %48 = vector.shape_cast %47 : vector<1x384x4xf32> to vector<384x4xf32>
    %c8 = arith.constant 8 : index
    %c0_44 = arith.constant 0 : index
    %c0_45 = arith.constant 0 : index
    %49 = vector.load %arg2[%c8, %c0_44, %c0_45] : memref<9x4x8xf32, #tpu.memory_space<vmem>>, vector<1x4x8xf32>
    %50 = vector.shape_cast %49 : vector<1x4x8xf32> to vector<4x8xf32>
    %cst_46 = arith.constant dense<0.000000e+00> : vector<384x8xf32>
    %51 = tpu.matmul %48, %50, %cst_46 {dimension_numbers = #tpu.dot_dimension_numbers<[1], [0], [0], [1], [0, 0, 1, 1], [], []>} : vector<384x4xf32>, vector<4x8xf32>, vector<384x8xf32> -> vector<384x8xf32>
    %52 = arith.addf %46, %51 : vector<384x8xf32>
    %c0_47 = arith.constant 0 : index
    %c0_48 = arith.constant 0 : index
    %c0_49 = arith.constant 0 : index
    %53 = vector.load %arg4[%c0_47, %c0_48, %c0_49] : memref<1x384x8xf32, #tpu.memory_space<vmem>>, vector<1x384x8xf32>
    %54 = vector.shape_cast %53 : vector<1x384x8xf32> to vector<384x8xf32>
    %55 = vector.shape_cast %52 : vector<384x8xf32> to vector<1x384x8xf32>
    tpu.vector_store %arg4[%c0_47, %c0_48, %c0_49], %55 {strides = array<i32>} : memref<1x384x8xf32, #tpu.memory_space<vmem>>, vector<1x384x8xf32>,
    %c0_50 = arith.constant 0 : index
    %c0_51 = arith.constant 0 : index
    %56 = vector.load %arg3[%c0_50, %c0_51] : memref<384x1xf32, #tpu.memory_space<vmem>>, vector<384x1xf32>
    %57 = vector.broadcast %56 : vector<384x1xf32> to vector<384x8xf32>
    %58 = arith.mulf %52, %57 : vector<384x8xf32>
    %cst_52 = arith.constant dense<0.000000e+00> : vector<8xf32>
    %59 = vector.multi_reduction <add>, %58, %cst_52 [0] : vector<384x8xf32> to vector<8xf32>
    %60 = vector.shape_cast %59 : vector<8xf32> to vector<1x8xf32>
    %c0_53 = arith.constant 0 : index
    %c0_54 = arith.constant 0 : index
    %c0_55 = arith.constant 0 : index
    %61 = vector.load %arg5[%c0_53, %c0_54, %c0_55] : memref<1x2x8xf32, #tpu.memory_space<vmem>>, vector<1x1x8xf32>
    %62 = vector.shape_cast %61 : vector<1x1x8xf32> to vector<1x8xf32>
    %63 = vector.shape_cast %60 : vector<1x8xf32> to vector<1x1x8xf32>
    tpu.vector_store %arg5[%c0_53, %c0_54, %c0_55], %63 {strides = array<i32>} : memref<1x2x8xf32, #tpu.memory_space<vmem>>, vector<1x1x8xf32>,
    %64 = arith.mulf %52, %58 : vector<384x8xf32>
    %cst_56 = arith.constant dense<0.000000e+00> : vector<8xf32>
    %65 = vector.multi_reduction <add>, %64, %cst_56 [0] : vector<384x8xf32> to vector<8xf32>
    %66 = vector.shape_cast %65 : vector<8xf32> to vector<1x8xf32>
    %c0_57 = arith.constant 0 : index
    %c1_58 = arith.constant 1 : index
    %c0_59 = arith.constant 0 : index
    %67 = vector.load %arg5[%c0_57, %c1_58, %c0_59] : memref<1x2x8xf32, #tpu.memory_space<vmem>>, vector<1x1x8xf32>
    %68 = vector.shape_cast %67 : vector<1x1x8xf32> to vector<1x8xf32>
    %69 = vector.shape_cast %66 : vector<1x8xf32> to vector<1x1x8xf32>
    tpu.vector_store %arg5[%c0_57, %c1_58, %c0_59], %69 {strides = array<i32>} : memref<1x2x8xf32, #tpu.memory_space<vmem>>, vector<1x1x8xf32>,
    return
  }
  func.func @transform_0(%arg0: i32) -> (i32, i32, i32) {
    %c0_i32 = arith.constant 0 : i32
    %c0_i32_0 = arith.constant 0 : i32
    %c0_i32_1 = arith.constant 0 : i32
    return %arg0, %c0_i32, %c0_i32_0 : i32, i32, i32
  }
  func.func @transform_1(%arg0: i32) -> (i32, i32, i32) {
    %c0_i32 = arith.constant 0 : i32
    %c0_i32_0 = arith.constant 0 : i32
    %c0_i32_1 = arith.constant 0 : i32
    %c0_i32_2 = arith.constant 0 : i32
    return %c0_i32, %c0_i32_0, %c0_i32_1 : i32, i32, i32
  }
  func.func @transform_2(%arg0: i32) -> (i32, i32) {
    %c0_i32 = arith.constant 0 : i32
    %c0_i32_0 = arith.constant 0 : i32
    %c0_i32_1 = arith.constant 0 : i32
    return %c0_i32, %c0_i32_0 : i32, i32
  }
  func.func @transform_3(%arg0: i32) -> (i32, i32, i32) {
    %c0_i32 = arith.constant 0 : i32
    %c0_i32_0 = arith.constant 0 : i32
    %c0_i32_1 = arith.constant 0 : i32
    return %arg0, %c0_i32, %c0_i32_0 : i32, i32, i32
  }
  func.func @transform_4(%arg0: i32) -> (i32, i32, i32) {
    %c0_i32 = arith.constant 0 : i32
    %c0_i32_0 = arith.constant 0 : i32
    %c0_i32_1 = arith.constant 0 : i32
    return %arg0, %c0_i32, %c0_i32_0 : i32, i32, i32
  }
}

module attributes {stable_mosaic.version = 11 : i64} {
  func.func @_bn_relu_kernel(%arg0: i32, %arg1: memref<1x3x1024xf32, #tpu.memory_space<vmem>>, %arg2: memref<1x1024xf32, #tpu.memory_space<vmem>>, %arg3: memref<1x1024xf32, #tpu.memory_space<vmem>>, %arg4: memref<1x3x1024xf32, #tpu.memory_space<vmem>>) attributes {dimension_semantics = [#tpu.dimension_semantics<parallel>], iteration_bounds = array<i64: 2>, scalar_prefetch = 0 : i64, scratch_operands = 0 : i64, tpu.core_type = #tpu.core_type<tc>, window_params = [{transform_indices = @transform_0, window_bounds = array<i64: 1, 3, 1024>}, {pipeline_mode = #tpu.pipeline_mode<synchronous>, transform_indices = @transform_1, window_bounds = array<i64: 1, 1024>}, {pipeline_mode = #tpu.pipeline_mode<synchronous>, transform_indices = @transform_2, window_bounds = array<i64: 1, 1024>}, {transform_indices = @transform_3, window_bounds = array<i64: 1, 3, 1024>}]} {
    %c0 = arith.constant 0 : index
    %c0_0 = arith.constant 0 : index
    %c0_1 = arith.constant 0 : index
    %0 = vector.load %arg1[%c0, %c0_0, %c0_1] : memref<1x3x1024xf32, #tpu.memory_space<vmem>>, vector<1x3x1024xf32>
    %1 = vector.shape_cast %0 : vector<1x3x1024xf32> to vector<3x1024xf32>
    %c0_2 = arith.constant 0 : index
    %c0_3 = arith.constant 0 : index
    %2 = vector.load %arg2[%c0_2, %c0_3] : memref<1x1024xf32, #tpu.memory_space<vmem>>, vector<1x1024xf32>
    %3 = vector.broadcast %2 : vector<1x1024xf32> to vector<3x1024xf32>
    %4 = arith.mulf %1, %3 : vector<3x1024xf32>
    %c0_4 = arith.constant 0 : index
    %c0_5 = arith.constant 0 : index
    %5 = vector.load %arg3[%c0_4, %c0_5] : memref<1x1024xf32, #tpu.memory_space<vmem>>, vector<1x1024xf32>
    %6 = vector.broadcast %5 : vector<1x1024xf32> to vector<3x1024xf32>
    %7 = arith.addf %4, %6 : vector<3x1024xf32>
    %cst = arith.constant 0.000000e+00 : f32
    %8 = vector.broadcast %cst : f32 to vector<3x1024xf32>
    %9 = arith.maximumf %7, %8 : vector<3x1024xf32>
    %c0_6 = arith.constant 0 : index
    %c0_7 = arith.constant 0 : index
    %c0_8 = arith.constant 0 : index
    %10 = vector.load %arg4[%c0_6, %c0_7, %c0_8] : memref<1x3x1024xf32, #tpu.memory_space<vmem>>, vector<1x3x1024xf32>
    %11 = vector.shape_cast %10 : vector<1x3x1024xf32> to vector<3x1024xf32>
    %12 = vector.shape_cast %9 : vector<3x1024xf32> to vector<1x3x1024xf32>
    tpu.vector_store %arg4[%c0_6, %c0_7, %c0_8], %12 {strides = array<i32>} : memref<1x3x1024xf32, #tpu.memory_space<vmem>>, vector<1x3x1024xf32>,
    return
  }
  func.func @transform_0(%arg0: i32) -> (i32, i32, i32) {
    %c0_i32 = arith.constant 0 : i32
    %c0_i32_0 = arith.constant 0 : i32
    %c0_i32_1 = arith.constant 0 : i32
    return %arg0, %c0_i32, %c0_i32_0 : i32, i32, i32
  }
  func.func @transform_1(%arg0: i32) -> (i32, i32) {
    %c0_i32 = arith.constant 0 : i32
    %c0_i32_0 = arith.constant 0 : i32
    %c0_i32_1 = arith.constant 0 : i32
    return %c0_i32, %c0_i32_0 : i32, i32
  }
  func.func @transform_2(%arg0: i32) -> (i32, i32) {
    %c0_i32 = arith.constant 0 : i32
    %c0_i32_0 = arith.constant 0 : i32
    %c0_i32_1 = arith.constant 0 : i32
    return %c0_i32, %c0_i32_0 : i32, i32
  }
  func.func @transform_3(%arg0: i32) -> (i32, i32, i32) {
    %c0_i32 = arith.constant 0 : i32
    %c0_i32_0 = arith.constant 0 : i32
    %c0_i32_1 = arith.constant 0 : i32
    return %arg0, %c0_i32, %c0_i32_0 : i32, i32, i32
  }
}

</mosaic_0001>

<bundles_post_ra>
// kernel: tile.18
= control target key start
LH: loop header
LB: loop body
LE: loop exit
PB: predicated region body
PF: predicated region fallthrough
CT: control target
= control target key end

     0   :  { %s112_s0 = inlined_call_operand.vmem [shape: f32[8], index: 0, kind: input, shape index: {}]   ;;  %s113_s1 = inlined_call_operand.vmem [shape: f32[128,8], index: 1, kind: output, shape index: {}]  }
   0x1   :  { %v4_v0 = vld [vmem:[%s112_s0] ss:$0 sm:$0xff] }
   0x2   :  { %5 = vst [vmem:[%s113_s1] sm:$0xff] %v4_v0  ;;  %36 = vst [vmem:[%s113_s1 + $0x8] sm:$0xff] %v4_v0 }
   0x3   :  { %37 = vst [vmem:[%s113_s1 + $0x10] sm:$0xff] %v4_v0  ;;  %38 = vst [vmem:[%s113_s1 + $0x18] sm:$0xff] %v4_v0 }
   0x4   :  { %39 = vst [vmem:[%s113_s1 + $0x20] sm:$0xff] %v4_v0  ;;  %40 = vst [vmem:[%s113_s1 + $0x28] sm:$0xff] %v4_v0 }
   0x5   :  { %41 = vst [vmem:[%s113_s1 + $0x30] sm:$0xff] %v4_v0  ;;  %42 = vst [vmem:[%s113_s1 + $0x38] sm:$0xff] %v4_v0 }
   0x6   :  { %43 = vst [vmem:[%s113_s1 + $0x40] sm:$0xff] %v4_v0  ;;  %44 = vst [vmem:[%s113_s1 + $0x48] sm:$0xff] %v4_v0 }
   0x7   :  { %45 = vst [vmem:[%s113_s1 + $0x50] sm:$0xff] %v4_v0  ;;  %46 = vst [vmem:[%s113_s1 + $0x58] sm:$0xff] %v4_v0 }
   0x8   :  { %47 = vst [vmem:[%s113_s1 + $0x60] sm:$0xff] %v4_v0  ;;  %48 = vst [vmem:[%s113_s1 + $0x68] sm:$0xff] %v4_v0 }
   0x9   :  { %49 = vst [vmem:[%s113_s1 + $0x70] sm:$0xff] %v4_v0  ;;  %50 = vst [vmem:[%s113_s1 + $0x78] sm:$0xff] %v4_v0 }

// kernel: tile.19
= control target key start
LH: loop header
LB: loop body
LE: loop exit
PB: predicated region body
PF: predicated region fallthrough
CT: control target
= control target key end

     0   :  { %vm6_vm0 = vcmask 1043458   ;;  %vm10_vm1 = vcmask 1045508   ;;  %vm14_vm2 = vcmask 1047558   ;;  %s20_s6 = smov 3  ;;  %s23_s7 = smov 12  ;;  %vm16_vm3 = vcmask 64512   ;;  %s797_s0 = inlined_call_operand.vmem [shape: f32[128,8], index: 0, kind: input, shape index: {}]   ;;  %s798_s1 = inlined_call_operand.vmem [shape: f32[1,1024], index: 1, kind: output, shape index: {}]  }
   0x1   :  { %v426_v0 = vld [vmem:[%s797_s0 + $0xf] ss:$16 sm:%s20_s6]   ;;  %s28_s12 = smov 48  ;;  %s33_s13 = smov 192  ;;  %vm39_vm4 = vcmask 1048512   ;;  %vm62_vm5 = vcmask 982912  }
   0x2   :  { %v427_v1 = vld [vmem:[%s797_s0 + $0xf] ss:$16 sm:%s23_s7]   ;;  %s66_s18 = smov 3  ;;  %s69_s21 = smov 12  ;;  %vm85_vm6 = vcmask 917312   ;;  %vm108_vm7 = vcmask 851712  }
   0x3   :  { %v26_v2 = vsel %vm6_vm0, %v427_v1, %v426_v0  ;;  %v428_v3 = vld [vmem:[%s797_s0 + $0xf] ss:$16 sm:%s28_s12]   ;;  %v434_v6 = vld [vmem:[%s797_s0 + $0xd] ss:$16 sm:%s66_s18]   ;;  %s74_s22 = smov 48  ;;  %s79_s27 = smov 192 }
   0x4   :  { %v429_v4 = vld [vmem:[%s797_s0 + $0xf] ss:$16 sm:%s33_s13]   ;;  %v31_v5 = vsel %vm10_vm1, %v428_v3, %v26_v2  ;;  %v435_v8 = vld [vmem:[%s797_s0 + $0xd] ss:$16 sm:%s69_s21]   ;;  %s508_s28 = smov 120   ;;  %s43_s2 = smov 3 }
   0x5   :  { %v36_v7 = vsel %vm14_vm2, %v429_v4, %v31_v5  ;;  %v436_v9 = vld [vmem:[%s797_s0 + $0xd] ss:$16 sm:%s74_s22]   ;;  %v72_v10 = vsel %vm6_vm0, %v435_v8, %v434_v6  ;;  %s46_s3 = smov 12  ;;  %v430_v13 = vld [vmem:[%s797_s0 + $0xe] ss:$16 sm:%s43_s2]   ;;  %s51_s8 = smov 48 }
   0x6   :  { %37 = vrot.lane.b32.xlu0 %v36_v7, %s508_s28  ;;  %v437_v11 = vld [vmem:[%s797_s0 + $0xd] ss:$16 sm:%s79_s27]   ;;  %v77_v12 = vsel %vm10_vm1, %v436_v9, %v72_v10  ;;  %s56_s9 = smov 192  ;;  %s89_s14 = smov 3  ;;  %vm131_vm8 = vcmask 786112   ;;  %vm154_vm9 = vcmask 720512  }
   0x7   :  { %v431_v14 = vld [vmem:[%s797_s0 + $0xe] ss:$16 sm:%s46_s3]   ;;  %v82_v15 = vsel %vm14_vm2, %v437_v11, %v77_v12  ;;  %s509_s15 = smov 104   ;;  %v438_v20 = vld [vmem:[%s797_s0 + $0xc] ss:$16 sm:%s89_s14]   ;;  %s92_s18 = smov 12 }
   0x8   :  { %v49_v16 = vsel %vm6_vm0, %v431_v14, %v430_v13  ;;  %v432_v17 = vld [vmem:[%s797_s0 + $0xe] ss:$16 sm:%s51_s8]   ;;  %83 = vrot.lane.b32.xlu1 %v82_v15, %s509_s15  ;;  %s97_s19 = smov 48  ;;  %s102_s24 = smov 192  ;;  %vm177_vm10 = vcmask 654912   ;;  %vm200_vm11 = vcmask 589312  }
   0x9   :  { %v433_v18 = vld [vmem:[%s797_s0 + $0xe] ss:$16 sm:%s56_s9]   ;;  %v54_v19 = vsel %vm10_vm1, %v432_v17, %v49_v16  ;;  %v439_v22 = vld [vmem:[%s797_s0 + $0xc] ss:$16 sm:%s92_s18]   ;;  %s510_s25 = smov 112   ;;  %s112_s28 = smov 3 }
   0xa   :  { %v59_v21 = vsel %vm14_vm2, %v433_v18, %v54_v19  ;;  %v440_v23 = vld [vmem:[%s797_s0 + $0xc] ss:$16 sm:%s97_s19]   ;;  %v95_v24 = vsel %vm6_vm0, %v439_v22, %v438_v20  ;;  %s115_s29 = smov 12  ;;  %v442_v27 = vld [vmem:[%s797_s0 + $0xb] ss:$16 sm:%s112_s28]   ;;  %s120_s5 = smov 48 }
   0xb   :  { %60 = vrot.lane.b32.xlu0 %v59_v21, %s510_s25  ;;  %v441_v25 = vld [vmem:[%s797_s0 + $0xc] ss:$16 sm:%s102_s24]   ;;  %v100_v26 = vsel %vm10_vm1, %v440_v23, %v95_v24  ;;  %s125_s6 = smov 192  ;;  %s135_s11 = smov 3  ;;  %vm223_vm12 = vcmask 523712   ;;  %vm246_vm13 = vcmask 458112  }
   0xc   :  { %v443_v28 = vld [vmem:[%s797_s0 + $0xb] ss:$16 sm:%s115_s29]   ;;  %v105_v29 = vsel %vm14_vm2, %v441_v25, %v100_v26  ;;  %s511_s12 = smov 96   ;;  %v446_v34 = vld [vmem:[%s797_s0 + $0xa] ss:$16 sm:%s135_s11]   ;;  %s138_s15 = smov 12 }
   0xd   :  { %v118_v30 = vsel %vm6_vm0, %v443_v28, %v442_v27  ;;  %v444_v31 = vld [vmem:[%s797_s0 + $0xb] ss:$16 sm:%s120_s5]   ;;  %106 = vrot.lane.b32.xlu1 %v105_v29, %s511_s12  ;;  %s143_s16 = smov 48  ;;  %s148_s21 = smov 192  ;;  %vm269_vm14 = vcmask 392512   ;;  %vm292_vm15 = vcmask 326912  }
   0xe   :  { %v445_v32 = vld [vmem:[%s797_s0 + $0xb] ss:$16 sm:%s125_s6]   ;;  %v123_v33 = vsel %vm10_vm1, %v444_v31, %v118_v30  ;;  %v447_v36 = vld [vmem:[%s797_s0 + $0xa] ss:$16 sm:%s138_s15]   ;;  %s512_s22 = smov 88   ;;  %s158_s25 = smov 3 }
   0xf   :  { %v128_v35 = vsel %vm14_vm2, %v445_v32, %v123_v33  ;;  %v448_v37 = vld [vmem:[%s797_s0 + $0xa] ss:$16 sm:%s143_s16]   ;;  %v141_v38 = vsel %vm6_vm0, %v447_v36, %v446_v34  ;;  %s161_s26 = smov 12  ;;  %v450_v41 = vld [vmem:[%s797_s0 + $0x9] ss:$16 sm:%s158_s25]   ;;  %s166_s2 = smov 48 }
  0x10   :  { %129 = vrot.lane.b32.xlu0 %v128_v35, %s512_s22  ;;  %v449_v39 = vld [vmem:[%s797_s0 + $0xa] ss:$16 sm:%s148_s21]   ;;  %v146_v40 = vsel %vm10_vm1, %v448_v37, %v141_v38  ;;  %s171_s3 = smov 192  ;;  %s181_s8 = smov 3 }
  0x11   :  { %v451_v42 = vld [vmem:[%s797_s0 + $0x9] ss:$16 sm:%s161_s26]   ;;  %v151_v43 = vsel %vm14_vm2, %v449_v39, %v146_v40  ;;  %s513_s9 = smov 80   ;;  %v454_v48 = vld [vmem:[%s797_s0 + $0x8] ss:$16 sm:%s181_s8]   ;;  %s184_s12 = smov 12 }
  0x12   :  { %v164_v44 = vsel %vm6_vm0, %v451_v42, %v450_v41  ;;  %v452_v45 = vld [vmem:[%s797_s0 + $0x9] ss:$16 sm:%s166_s2]   ;;  %152 = vrot.lane.b32.xlu1 %v151_v43, %s513_s9  ;;  %s189_s13 = smov 48  ;;  %s194_s18 = smov 192 }
  0x13   :  { %v453_v46 = vld [vmem:[%s797_s0 + $0x9] ss:$16 sm:%s171_s3]   ;;  %v169_v47 = vsel %vm10_vm1, %v452_v45, %v164_v44  ;;  %v455_v50 = vld [vmem:[%s797_s0 + $0x8] ss:$16 sm:%s184_s12]   ;;  %s514_s19 = smov 72   ;;  %s204_s22 = smov 3 }
  0x14   :  { %v174_v49 = vsel %vm14_vm2, %v453_v46, %v169_v47  ;;  %v456_v51 = vld [vmem:[%s797_s0 + $0x8] ss:$16 sm:%s189_s13]   ;;  %v187_v52 = vsel %vm6_vm0, %v455_v50, %v454_v48  ;;  %s207_s23 = smov 12  ;;  %v458_v55 = vld [vmem:[%s797_s0 + $0x7] ss:$16 sm:%s204_s22]   ;;  %s212_s28 = smov 48 }
  0x15   :  { %175 = vrot.lane.b32.xlu0 %v174_v49, %s514_s19  ;;  %v457_v53 = vld [vmem:[%s797_s0 + $0x8] ss:$16 sm:%s194_s18]   ;;  %v192_v54 = vsel %vm10_vm1, %v456_v51, %v187_v52  ;;  %s217_s29 = smov 192  ;;  %s227_s5 = smov 3 }
  0x16   :  { %v459_v56 = vld [vmem:[%s797_s0 + $0x7] ss:$16 sm:%s207_s23]   ;;  %v197_v57 = vsel %vm14_vm2, %v457_v53, %v192_v54  ;;  %s515_s6 = smov 64   ;;  %v462_v62 = vld [vmem:[%s797_s0 + $0x6] ss:$16 sm:%s227_s5]   ;;  %s230_s9 = smov 12 }
  0x17   :  { %v210_v58 = vsel %vm6_vm0, %v459_v56, %v458_v55  ;;  %v460_v59 = vld [vmem:[%s797_s0 + $0x7] ss:$16 sm:%s212_s28]   ;;  %198 = vrot.lane.b32.xlu1 %v197_v57, %s515_s6  ;;  %s235_s10 = smov 48  ;;  %s240_s15 = smov 192 }
  0x18   :  { %v461_v60 = vld [vmem:[%s797_s0 + $0x7] ss:$16 sm:%s217_s29]   ;;  %v215_v61 = vsel %vm10_vm1, %v460_v59, %v210_v58  ;;  %v463_v0 = vld [vmem:[%s797_s0 + $0x6] ss:$16 sm:%s230_s9]   ;;  %s516_s16 = smov 56   ;;  %s250_s19 = smov 3 }
  0x19   :  { %v220_v63 = vsel %vm14_vm2, %v461_v60, %v215_v61  ;;  %v464_v1 = vld [vmem:[%s797_s0 + $0x6] ss:$16 sm:%s235_s10]   ;;  %v233_v2 = vsel %vm6_vm0, %v463_v0, %v462_v62  ;;  %s253_s20 = smov 12  ;;  %v466_v5 = vld [vmem:[%s797_s0 + $0x5] ss:$16 sm:%s250_s19]   ;;  %s258_s25 = smov 48 }
  0x1a   :  { %221 = vrot.lane.b32.xlu0 %v220_v63, %s516_s16  ;;  %v465_v3 = vld [vmem:[%s797_s0 + $0x6] ss:$16 sm:%s240_s15]   ;;  %v238_v4 = vsel %vm10_vm1, %v464_v1, %v233_v2  ;;  %s263_s26 = smov 192  ;;  %s273_s2 = smov 3 }
  0x1b   :  { %v467_v6 = vld [vmem:[%s797_s0 + $0x5] ss:$16 sm:%s253_s20]   ;;  %v243_v7 = vsel %vm14_vm2, %v465_v3, %v238_v4  ;;  %s517_s3 = smov 48   ;;  %v470_v12 = vld [vmem:[%s797_s0 + $0x4] ss:$16 sm:%s273_s2]   ;;  %s276_s6 = smov 12 }
  0x1c   :  { %v256_v8 = vsel %vm6_vm0, %v467_v6, %v466_v5  ;;  %v468_v9 = vld [vmem:[%s797_s0 + $0x5] ss:$16 sm:%s258_s25]   ;;  %244 = vrot.lane.b32.xlu1 %v243_v7, %s517_s3  ;;  %s281_s7 = smov 48  ;;  %s286_s12 = smov 192 }
  0x1d   :  { %v469_v10 = vld [vmem:[%s797_s0 + $0x5] ss:$16 sm:%s263_s26]   ;;  %v261_v11 = vsel %vm10_vm1, %v468_v9, %v256_v8  ;;  %v471_v14 = vld [vmem:[%s797_s0 + $0x4] ss:$16 sm:%s276_s6]   ;;  %s518_s13 = smov 40   ;;  %s296_s16 = smov 3 }
  0x1e   :  { %v266_v13 = vsel %vm14_vm2, %v469_v10, %v261_v11  ;;  %v472_v15 = vld [vmem:[%s797_s0 + $0x4] ss:$16 sm:%s281_s7]   ;;  %v279_v16 = vsel %vm6_vm0, %v471_v14, %v470_v12  ;;  %s299_s17 = smov 12  ;;  %v474_v19 = vld [vmem:[%s797_s0 + $0x3] ss:$16 sm:%s296_s16]   ;;  %s304_s22 = smov 48 }
  0x1f   :  { %267 = vrot.lane.b32.xlu0 %v266_v13, %s518_s13  ;;  %v473_v17 = vld [vmem:[%s797_s0 + $0x4] ss:$16 sm:%s286_s12]   ;;  %v284_v18 = vsel %vm10_vm1, %v472_v15, %v279_v16  ;;  %s309_s23 = smov 192  ;;  %s319_s28 = smov 3 }
  0x20   :  { %v475_v20 = vld [vmem:[%s797_s0 + $0x3] ss:$16 sm:%s299_s17]   ;;  %v289_v21 = vsel %vm14_vm2, %v473_v17, %v284_v18  ;;  %s519_s29 = smov 32   ;;  %v478_v26 = vld [vmem:[%s797_s0 + $0x2] ss:$16 sm:%s319_s28]   ;;  %s322_s3 = smov 12 }
  0x21   :  { %v302_v22 = vsel %vm6_vm0, %v475_v20, %v474_v19  ;;  %v476_v23 = vld [vmem:[%s797_s0 + $0x3] ss:$16 sm:%s304_s22]   ;;  %290 = vrot.lane.b32.xlu1 %v289_v21, %s519_s29  ;;  %s327_s4 = smov 48  ;;  %s332_s9 = smov 192 }
  0x22   :  { %v477_v24 = vld [vmem:[%s797_s0 + $0x3] ss:$16 sm:%s309_s23]   ;;  %v307_v25 = vsel %vm10_vm1, %v476_v23, %v302_v22  ;;  %v479_v28 = vld [vmem:[%s797_s0 + $0x2] ss:$16 sm:%s322_s3]   ;;  %s520_s10 = smov 24   ;;  %s342_s13 = smov 3 }
  0x23   :  { %v312_v27 = vsel %vm14_vm2, %v477_v24, %v307_v25  ;;  %v480_v29 = vld [vmem:[%s797_s0 + $0x2] ss:$16 sm:%s327_s4]   ;;  %v325_v30 = vsel %vm6_vm0, %v479_v28, %v478_v26  ;;  %s345_s14 = smov 12  ;;  %v482_v33 = vld [vmem:[%s797_s0 + $0x1] ss:$16 sm:%s342_s13]   ;;  %s350_s19 = smov 48 }
  0x24   :  { %313 = vrot.lane.b32.xlu0 %v312_v27, %s520_s10  ;;  %v481_v31 = vld [vmem:[%s797_s0 + $0x2] ss:$16 sm:%s332_s9]   ;;  %v330_v32 = vsel %vm10_vm1, %v480_v29, %v325_v30  ;;  %s355_s20 = smov 192  ;;  %s8_s25 = smov 48 }
  0x25   :  { %v483_v34 = vld [vmem:[%s797_s0 + $0x1] ss:$16 sm:%s345_s14]   ;;  %v335_v35 = vsel %vm14_vm2, %v481_v31, %v330_v32  ;;  %s521_s26 = smov 16   ;;  %v9_v40 = vld [vmem:[%s797_s0] ss:$16 sm:%s8_s25]   ;;  %s12_s29 = smov 192 }
  0x26   :  { %v348_v36 = vsel %vm6_vm0, %v483_v34, %v482_v33  ;;  %v484_v37 = vld [vmem:[%s797_s0 + $0x1] ss:$16 sm:%s350_s19]   ;;  %336 = vrot.lane.b32.xlu1 %v335_v35, %s521_s26  ;;  %s2_s30 = smov 3  ;;  %s4_s6 = smov 12 }
  0x27   :  { %v485_v38 = vld [vmem:[%s797_s0 + $0x1] ss:$16 sm:%s355_s20]   ;;  %v353_v39 = vsel %vm10_vm1, %v484_v37, %v348_v36  ;;  %v13_v42 = vld [vmem:[%s797_s0] ss:$16 sm:%s12_s29]   ;;  %s522_s7 = smov 8  }
  0x28   :  { %v358_v41 = vsel %vm14_vm2, %v485_v38, %v353_v39  ;;  %v3_v43 = vld [vmem:[%s797_s0] ss:$16 sm:%s2_s30]  }
  0x29   :  { %359 = vrot.lane.b32.xlu0 %v358_v41, %s522_s7  ;;  %v5_v44 = vld [vmem:[%s797_s0] ss:$16 sm:%s4_s6]  }
  0x2a   :  { %v7_v45 = vsel %vm6_vm0, %v5_v44, %v3_v43  ;;  %vm315_vm0 = vcmask 261312  }
  0x2b   :  { %v11_v46 = vsel %vm10_vm1, %v9_v40, %v7_v45  ;;  %vm338_vm1 = vcmask 195712  }
  0x2c   :  { %v15_v47 = vsel %vm14_vm2, %v13_v42, %v11_v46  ;;  %vm361_vm2 = vcmask 130112  }
  0x2d   :  { %17 = vst.msk [vmem:[#allocation0] ss:$8 sm:$0xf] %vm16_vm3, %v15_v47   ;;  %18 = vst.msk [vmem:[#allocation0] ss:$8 sm:$0xf0] %vm16_vm3, %v15_v47  }
  0x78   :  { %v38_v48 = vpop.permute.xlu0 %37  }
  0x79   :  { %40 = vst.msk [vmem:[#allocation0] ss:$8 sm:$0xf] %vm39_vm4, %v38_v48   ;;  %41 = vst.msk [vmem:[#allocation0] ss:$8 sm:$0xf0] %vm39_vm4, %v38_v48  }
  0x7a   :  { %v84_v49 = vpop.permute.xlu1 %83  }
  0x7d   :  { %v61_v50 = vpop.permute.xlu0 %60  }
  0x7e   :  { %63 = vst.msk [vmem:[#allocation0] ss:$8 sm:$0xf] %vm62_vm5, %v61_v50   ;;  %64 = vst.msk [vmem:[#allocation0] ss:$8 sm:$0xf0] %vm62_vm5, %v61_v50  }
  0x7f   :  { %86 = vst.msk [vmem:[#allocation0] ss:$8 sm:$0xf] %vm85_vm6, %v84_v49   ;;  %87 = vst.msk [vmem:[#allocation0] ss:$8 sm:$0xf0] %vm85_vm6, %v84_v49   ;;  %v107_v51 = vpop.permute.xlu1 %106  }
  0x80   :  { %109 = vst.msk [vmem:[#allocation0] ss:$8 sm:$0xf] %vm108_vm7, %v107_v51   ;;  %110 = vst.msk [vmem:[#allocation0] ss:$8 sm:$0xf0] %vm108_vm7, %v107_v51  }
  0x82   :  { %v130_v52 = vpop.permute.xlu0 %129  }
  0x83   :  { %132 = vst.msk [vmem:[#allocation0] ss:$8 sm:$0xf] %vm131_vm8, %v130_v52   ;;  %133 = vst.msk [vmem:[#allocation0] ss:$8 sm:$0xf0] %vm131_vm8, %v130_v52  }
  0x84   :  { %v153_v53 = vpop.permute.xlu1 %152  }
  0x85   :  { %155 = vst.msk [vmem:[#allocation0] ss:$8 sm:$0xf] %vm154_vm9, %v153_v53   ;;  %156 = vst.msk [vmem:[#allocation0] ss:$8 sm:$0xf0] %vm154_vm9, %v153_v53  }
  0x87   :  { %v176_v54 = vpop.permute.xlu0 %175  }
  0x88   :  { %178 = vst.msk [vmem:[#allocation0] ss:$8 sm:$0xf] %vm177_vm10, %v176_v54   ;;  %179 = vst.msk [vmem:[#allocation0] ss:$8 sm:$0xf0] %vm177_vm10, %v176_v54  }
  0x89   :  { %v199_v55 = vpop.permute.xlu1 %198  }
  0x8a   :  { %201 = vst.msk [vmem:[#allocation0] ss:$8 sm:$0xf] %vm200_vm11, %v199_v55   ;;  %202 = vst.msk [vmem:[#allocation0] ss:$8 sm:$0xf0] %vm200_vm11, %v199_v55  }
  0x8c   :  { %v222_v56 = vpop.permute.xlu0 %221  }
  0x8d   :  { %224 = vst.msk [vmem:[#allocation0] ss:$8 sm:$0xf] %vm223_vm12, %v222_v56   ;;  %225 = vst.msk [vmem:[#allocation0] ss:$8 sm:$0xf0] %vm223_vm12, %v222_v56  }
  0x8e   :  { %v245_v57 = vpop.permute.xlu1 %244  }
  0x8f   :  { %247 = vst.msk [vmem:[#allocation0] ss:$8 sm:$0xf] %vm246_vm13, %v245_v57   ;;  %248 = vst.msk [vmem:[#allocation0] ss:$8 sm:$0xf0] %vm246_vm13, %v245_v57  }
  0x91   :  { %v268_v58 = vpop.permute.xlu0 %267  }
  0x92   :  { %270 = vst.msk [vmem:[#allocation0] ss:$8 sm:$0xf] %vm269_vm14, %v268_v58   ;;  %271 = vst.msk [vmem:[#allocation0] ss:$8 sm:$0xf0] %vm269_vm14, %v268_v58  }
  0x93   :  { %v291_v59 = vpop.permute.xlu1 %290  }
  0x94   :  { %293 = vst.msk [vmem:[#allocation0] ss:$8 sm:$0xf] %vm292_vm15, %v291_v59   ;;  %294 = vst.msk [vmem:[#allocation0] ss:$8 sm:$0xf0] %vm292_vm15, %v291_v59  }
  0x96   :  { %v314_v60 = vpop.permute.xlu0 %313  }
  0x97   :  { %316 = vst.msk [vmem:[#allocation0] ss:$8 sm:$0xf] %vm315_vm0, %v314_v60   ;;  %317 = vst.msk [vmem:[#allocation0] ss:$8 sm:$0xf0] %vm315_vm0, %v314_v60  }
  0x98   :  { %v337_v61 = vpop.permute.xlu1 %336  }
  0x99   :  { %339 = vst.msk [vmem:[#allocation0] ss:$8 sm:$0xf] %vm338_vm1, %v337_v61   ;;  %340 = vst.msk [vmem:[#allocation0] ss:$8 sm:$0xf0] %vm338_vm1, %v337_v61  }
  0x9b   :  { %v360_v62 = vpop.permute.xlu0 %359  }
  0x9c   :  { %362 = vst.msk [vmem:[#allocation0] ss:$8 sm:$0xf] %vm361_vm2, %v360_v62   ;;  %363 = vst.msk [vmem:[#allocation0] ss:$8 sm:$0xf0] %vm361_vm2, %v360_v62  }
  0xa3   :  { %v368_v63 = vld [vmem:[#allocation0] sm:$0x1]  ;;  %v373_v0 = vld [vmem:[#allocation0 + $0x8] sm:$0x1]  ;;  %v379_v1 = vld [vmem:[#allocation0 + $0x10] sm:$0x1] }
  0xa4   :  { %371 = vst [vmem:[%s798_s1] sm:$0x1] %v368_v63  ;;  %486 = vst [vmem:[%s798_s1 + $0x1] sm:$0x1] %v373_v0  ;;  %v386_v2 = vld [vmem:[#allocation0 + $0x18] sm:$0x1] }
  0xa5   :  { %487 = vst [vmem:[%s798_s1 + $0x2] sm:$0x1] %v379_v1  ;;  %v393_v3 = vld [vmem:[#allocation0 + $0x20] sm:$0x1]  ;;  %v400_v4 = vld [vmem:[#allocation0 + $0x28] sm:$0x1] }
  0xa6   :  { %488 = vst [vmem:[%s798_s1 + $0x3] sm:$0x1] %v386_v2  ;;  %489 = vst [vmem:[%s798_s1 + $0x4] sm:$0x1] %v393_v3  ;;  %v407_v5 = vld [vmem:[#allocation0 + $0x30] sm:$0x1] }
  0xa7   :  { %490 = vst [vmem:[%s798_s1 + $0x5] sm:$0x1] %v400_v4  ;;  %v414_v6 = vld [vmem:[#allocation0 + $0x38] sm:$0x1]  ;;  %491 = vst [vmem:[%s798_s1 + $0x6] sm:$0x1] %v407_v5 }
  0xa8   :  { %492 = vst [vmem:[%s798_s1 + $0x7] sm:$0x1] %v414_v6 }

// kernel: basic_block_forward.3
= control target key start
LH: loop header
LB: loop body
LE: loop exit
PB: predicated region body
PF: predicated region fallthrough
CT: control target
= control target key end

     0   :  { %s379_s12 = smov 0   ;;  %s409_s0 = inlined_call_operand.vmem [shape: f32[2,3,1024], index: 0, kind: input, shape index: {}]   ;;  %s410_s1 = inlined_call_operand.vmem [shape: f32[1,1024], index: 1, kind: input, shape index: {}]   ;;  %s411_s2 = inlined_call_operand.vmem [shape: f32[1,1024], index: 2, kind: input, shape index: {}]   ;;  %s412_s3 = inlined_call_operand.vmem [shape: f32[2,3,1024], index: 3, kind: output, shape index: {}]  }
   0x1 LB: > { %s330_s13 = sadd.s32 4294967295, %s357_s12   ;;  %p334_p0 = scmp.ge.s32.totalorder %s357_s12, 1  ;;  %s357_s12 = sphi %s379_s12, %s13_s12  }
   0x2   : > { %p137_p1 = scmp.lt.s32.totalorder %s357_s12, 3 }
   0x4   : > { %p138_p2 = pnand %p334_p0, %p137_p1 }
   0x5   : > { %p161_p3 = scmp.lt.s32.totalorder (!%p138_p2), %s330_s13, 1 }
   0x6   : > { %141 = sbr.rel (%p138_p2) target bundleno = 32 (0x20), region = 32 }
   0xb   : > { %v177_v0 = vlaneseq  ;;  %s414_s13 = smov (!%p161_p3, %s330_s13), 1  ;;  %v175_v2 = vld [vmem:[%s410_s1] sm:$0xff] }
   0xc   : > { %v221_v3 = vld [vmem:[%s411_s2] sm:$0xff]  ;;  %s341_s18 = sshll.u32 %s414_s13, 5 }
   0xd   : > { %v178_v1 = vshrl.u32 %v177_v0, 7  ;;  %s165_s21 = scalar_lea.vmem %s409_s0, %s341_s18  ;;  %s170_s24 = scalar_lea.vmem %s412_s3, %s341_s18 }
   0xe   : > { %v171_v16 = vld [vmem:[%s165_s21] sm:$0x77]  ;;  %v172_v23 = vld [vmem:[%s165_s21 + $0x8] sm:$0x77]  ;;  %v173_v28 = vld [vmem:[%s165_s21 + $0x10] sm:$0x77] }
   0xf   : > { %v179_v4 = vsub.s32 0, %v178_v1  ;;  %v183_v5 = vsub.s32 1, %v178_v1  ;;  %v187_v6 = vsub.s32 2, %v178_v1  ;;  %v191_v7 = vsub.s32 3, %v178_v1  ;;  %v174_v37 = vld [vmem:[%s165_s21 + $0x18] sm:$0x77] }
  0x10   : > { %v195_v8 = vsub.s32 4, %v178_v1  ;;  %v199_v9 = vsub.s32 5, %v178_v1  ;;  %v203_v10 = vsub.s32 6, %v178_v1  ;;  %v207_v11 = vsub.s32 7, %v178_v1 }
  0x11   : > { %v180_v12 = vrot.slane %v175_v2, %v179_v4  ;;  %v184_v13 = vrot.slane %v175_v2, %v183_v5  ;;  %v226_v14 = vrot.slane %v221_v3, %v179_v4  ;;  %v230_v15 = vrot.slane %v221_v3, %v183_v5 }
  0x12   : > { %v188_v17 = vrot.slane %v175_v2, %v187_v6  ;;  %v192_v18 = vrot.slane %v175_v2, %v191_v7  ;;  %v234_v19 = vrot.slane %v221_v3, %v187_v6  ;;  %v238_v20 = vrot.slane %v221_v3, %v191_v7 }
  0x13   : > { %v209_v21 = vcombine.low %v180_v12, %v184_v13  ;;  %v255_v22 = vcombine.low %v226_v14, %v230_v15  ;;  %v196_v24 = vrot.slane %v175_v2, %v195_v8  ;;  %v200_v25 = vrot.slane %v175_v2, %v199_v9 }
  0x14   : > { %v210_v26 = vcombine.low %v188_v17, %v192_v18  ;;  %v256_v27 = vcombine.low %v234_v19, %v238_v20  ;;  %v242_v29 = vrot.slane %v221_v3, %v195_v8  ;;  %v246_v30 = vrot.slane %v221_v3, %v199_v9 }
  0x15   : > { %v217_v31 = vmul.f32 %v209_v21, %v171_v16  ;;  %v211_v32 = vcombine.low %v196_v24, %v200_v25  ;;  %v204_v33 = vrot.slane %v175_v2, %v203_v10  ;;  %v208_v34 = vrot.slane %v175_v2, %v207_v11 }
  0x16   : > { %v218_v35 = vmul.f32 %v210_v26, %v172_v23  ;;  %v257_v36 = vcombine.low %v242_v29, %v246_v30  ;;  %v250_v38 = vrot.slane %v221_v3, %v203_v10  ;;  %v254_v39 = vrot.slane %v221_v3, %v207_v11 }
  0x17   : > { %v263_v40 = vadd.f32 %v255_v22, %v217_v31  ;;  %v219_v41 = vmul.f32 %v211_v32, %v173_v28  ;;  %v212_v42 = vcombine.low %v204_v33, %v208_v34 }
  0x18   : > { %v264_v43 = vadd.f32 %v256_v27, %v218_v35  ;;  %v258_v44 = vcombine.low %v250_v38, %v254_v39 }
  0x19   : > { %v267_v45 = vmax.f32 %v263_v40, 0.0  ;;  %v265_v46 = vadd.f32 %v257_v36, %v219_v41  ;;  %v220_v47 = vmul.f32 %v212_v42, %v174_v37 }
  0x1a   : > { %v268_v48 = vmax.f32 %v264_v43, 0.0 }
  0x1b   : > { %271 = vst [vmem:[%s170_s24] sm:$0x77] %v267_v45  ;;  %v269_v49 = vmax.f32 %v265_v46, 0.0  ;;  %v266_v50 = vadd.f32 %v258_v44, %v220_v47 }
  0x1c   : > { %272 = vst [vmem:[%s170_s24 + $0x8] sm:$0x77] %v268_v48 }
  0x1d   : > { %273 = vst [vmem:[%s170_s24 + $0x10] sm:$0x77] %v269_v49  ;;  %v270_v51 = vmax.f32 %v266_v50, 0.0 }
  0x1f   : > { %274 = vst [vmem:[%s170_s24 + $0x18] sm:$0x77] %v270_v51 }
  0x20 PF: > { %s13_s12 = sadd.s32 1, %s357_s12  }
  0x21   : > { %p10_p4 = scmp.ge.s32.totalorder %s13_s12, 4  }
  0x23   :  { %12 = sbr.rel (!%p10_p4) target bundleno = 1 (0x1), region = 62 }

// kernel: basic_block_forward.2
= control target key start
LH: loop header
LB: loop body
LE: loop exit
PB: predicated region body
PF: predicated region fallthrough
CT: control target
= control target key end

     0   :  { %s7403_s15 = smov 0   ;;  %s9482_s0 = inlined_call_operand.vmem [shape: f32[2,422,4], index: 0, kind: input, shape index: {}]   ;;  %s9483_s1 = inlined_call_operand.vmem [shape: f32[9,4,8], index: 1, kind: input, shape index: {}]   ;;  %s9484_s2 = inlined_call_operand.vmem [shape: f32[384,1], index: 2, kind: input, shape index: {}]   ;;  %s9485_s3 = inlined_call_operand.vmem [shape: f32[2,384,8], index: 3, kind: output, shape index: {0}]   ;;  %s9486_s4 = inlined_call_operand.vmem [shape: f32[2,2,8], index: 4, kind: output, shape index: {1}]  }
   0x1 LB: > { %s5788_s16 = sadd.s32 4294967295, %s7375_s15   ;;  %p5792_p0 = scmp.ge.s32.totalorder %s7375_s15, 1  ;;  %s7375_s15 = sphi %s7403_s15, %s15_s15  }
   0x2   : > { %p165_p1 = scmp.lt.s32.totalorder %s7375_s15, 3 }
   0x4   : > { %p166_p2 = pnand %p5792_p0, %p165_p1 }
   0x6   : > { %169 = sbr.rel (%p166_p2) target bundleno = 669 (0x29d), region = 32 }
   0xb   : > { %v5796_v0 = vld [vmem:[%s9483_s1 + $0x4] sm:$0xf]  ;;  %vm453_vm0 = vcmask 1043456   ;;  %p195_p3 = scmp.lt.s32.totalorder %s5788_s16, 1  ;;  %v257_v1 = vld [vmem:[%s9483_s1] sm:$0xf] }
   0xc   : > { %7354 = vmatprep.subr.msk.mxu1 %vm453_vm0, %v5796_v0  ;;  %6688 = vmatprep.subr.msk.mxu0 %vm453_vm0, %v5796_v0  ;;  %v5895_v2 = vld [vmem:[%s9483_s1 + $0x8] sm:$0xf]  ;;  %vm308_vm1 = vcmask 31744   ;;  %v7447_v9 = vld [vmem:[%s9483_s1 + $0xc] sm:$0xf]  ;;  %vm5064_vm2 = vcmask 64512  }
   0xd   : > { %7355 = vmatpush3.msk.msra.mxu1 %vm453_vm0, %v5796_v0  ;;  %6689 = vmatpush3.msk.msra.mxu0 %vm453_vm0, %v5796_v0  ;;  %s9524_s16 = smov (!%p195_p3, %s5788_s16), 1  ;;  %v7452_v10 = vld [vmem:[%s9483_s1 + $0x10] sm:$0xf]  ;;  %v7561_v59 = vld [vmem:[%s9483_s1 + $0x14] sm:$0xf]  ;;  %vm5550_vm3 = vcmask 57344  }
   0xe   : > { %6762 = vmatprep.subr.msk.mxu1 %vm453_vm0, %v257_v1  ;;  %6836 = vmatprep.subr.msk.mxu0 %vm453_vm0, %v5895_v2  ;;  %s7356_s23 = smul.u32 424, %s9524_s16  ;;  %v7566_v60 = vld [vmem:[%s9483_s1 + $0x18] sm:$0xf]  ;;  %s5795_s22 = sshll.u32 %s9524_s16, 1 }
   0xf   : > { %s208_s25 = scalar_lea.vmem %s9486_s4, %s5795_s22 }
  0x10   : > { %s7432_s26 = scalar_lea.vmem %s9482_s0, %s7356_s23 }
  0x11   : > { %v258_v3 = vld [vmem:[%s7432_s26 + $0x1] sm:$0xff]  ;;  %v259_v5 = vld [vmem:[%s7432_s26 + $0x9] sm:$0xff]  ;;  %v260_v7 = vld [vmem:[%s7432_s26 + $0x11] sm:$0xff] }
  0x12   : > { %v282_v4 = vld [vmem:[%s7432_s26 + $0xc1] sm:$0xff]  ;;  %6690 = vmatprep.mubr.msk.f32.mxu0 %vm308_vm1, %v258_v3  ;;  %v283_v6 = vld [vmem:[%s7432_s26 + $0xc9] sm:$0xff]  ;;  %v284_v8 = vld [vmem:[%s7432_s26 + $0xd1] sm:$0xff] }
  0x13   : > { %6726 = vmatprep.mubr.msk.f32.mxu1 %vm308_vm1, %v282_v4  ;;  %6691 = vmatmul.mubr.msk.f32.vlgmr.msra.gmra.mxu0 %vm308_vm1, %v259_v5  ;;  %v261_v11 = vld [vmem:[%s7432_s26 + $0x19] sm:$0xff]  ;;  %v262_v13 = vld [vmem:[%s7432_s26 + $0x21] sm:$0xff]  ;;  %v263_v15 = vld [vmem:[%s7432_s26 + $0x29] sm:$0xff] }
  0x14   : > { %6727 = vmatmul.mubr.msk.f32.vlgmr.msra.gmra.mxu1 %vm308_vm1, %v283_v6  ;;  %6837 = vmatpush3.msk.msra.mxu0 %vm453_vm0, %v5895_v2  ;;  %v285_v12 = vld [vmem:[%s7432_s26 + $0xd9] sm:$0xff]  ;;  %v286_v14 = vld [vmem:[%s7432_s26 + $0xe1] sm:$0xff]  ;;  %v287_v16 = vld [vmem:[%s7432_s26 + $0xe9] sm:$0xff] }
  0x15   : > { %6763 = vmatpush3.msk.msra.mxu1 %vm453_vm0, %v257_v1  ;;  %6693 = vmatprep.mubr.msk.f32.mxu0 %vm308_vm1, %v260_v7  ;;  %v264_v17 = vld [vmem:[%s7432_s26 + $0x31] sm:$0xff]  ;;  %v265_v19 = vld [vmem:[%s7432_s26 + $0x39] sm:$0xff]  ;;  %v266_v21 = vld [vmem:[%s7432_s26 + $0x41] sm:$0xff] }
  0x16   : > { %6729 = vmatprep.mubr.msk.f32.mxu1 %vm308_vm1, %v284_v8  ;;  %6910 = vmatprep.subr.msk.mxu1 %vm453_vm0, %v7447_v9  ;;  %v288_v18 = vld [vmem:[%s7432_s26 + $0xf1] sm:$0xff]  ;;  %v289_v20 = vld [vmem:[%s7432_s26 + $0xf9] sm:$0xff]  ;;  %v290_v22 = vld [vmem:[%s7432_s26 + $0x101] sm:$0xff] }
  0x17   : > { %6984 = vmatprep.subr.msk.mxu0 %vm453_vm0, %v7452_v10  ;;  %6694 = vmatmul.mubr.msk.f32.gmra.mxu0 %vm308_vm1, %v261_v11  ;;  %v267_v23 = vld [vmem:[%s7432_s26 + $0x49] sm:$0xff]  ;;  %v268_v25 = vld [vmem:[%s7432_s26 + $0x51] sm:$0xff]  ;;  %v269_v27 = vld [vmem:[%s7432_s26 + $0x59] sm:$0xff] }
  0x18   : > { %6730 = vmatmul.mubr.msk.f32.gmra.mxu1 %vm308_vm1, %v285_v12  ;;  %6696 = vmatprep.mubr.msk.f32.mxu0 %vm308_vm1, %v262_v13  ;;  %v291_v24 = vld [vmem:[%s7432_s26 + $0x109] sm:$0xff]  ;;  %v292_v26 = vld [vmem:[%s7432_s26 + $0x111] sm:$0xff]  ;;  %v293_v28 = vld [vmem:[%s7432_s26 + $0x119] sm:$0xff] }
  0x19   : > { %6732 = vmatprep.mubr.msk.f32.mxu1 %vm308_vm1, %v286_v14  ;;  %v270_v29 = vld [vmem:[%s7432_s26 + $0x61] sm:$0xff]  ;;  %v271_v31 = vld [vmem:[%s7432_s26 + $0x69] sm:$0xff]  ;;  %v272_v33 = vld [vmem:[%s7432_s26 + $0x71] sm:$0xff] }
  0x1a   : > { %v294_v30 = vld [vmem:[%s7432_s26 + $0x121] sm:$0xff]  ;;  %v295_v32 = vld [vmem:[%s7432_s26 + $0x129] sm:$0xff]  ;;  %v296_v34 = vld [vmem:[%s7432_s26 + $0x131] sm:$0xff] }
  0x1b   : > { %6697 = vmatmul.mubr.msk.f32.gmra.mxu0 %vm308_vm1, %v263_v15  ;;  %v273_v35 = vld [vmem:[%s7432_s26 + $0x79] sm:$0xff]  ;;  %v274_v37 = vld [vmem:[%s7432_s26 + $0x81] sm:$0xff]  ;;  %v275_v39 = vld [vmem:[%s7432_s26 + $0x89] sm:$0xff] }
  0x1c   : > { %6733 = vmatmul.mubr.msk.f32.gmra.mxu1 %vm308_vm1, %v287_v16  ;;  %6699 = vmatprep.mubr.msk.f32.mxu0 %vm308_vm1, %v264_v17  ;;  %v297_v36 = vld [vmem:[%s7432_s26 + $0x139] sm:$0xff]  ;;  %v298_v38 = vld [vmem:[%s7432_s26 + $0x141] sm:$0xff]  ;;  %v299_v40 = vld [vmem:[%s7432_s26 + $0x149] sm:$0xff] }
  0x1d   : > { %6735 = vmatprep.mubr.msk.f32.mxu1 %vm308_vm1, %v288_v18  ;;  %v276_v41 = vld [vmem:[%s7432_s26 + $0x91] sm:$0xff]  ;;  %v277_v43 = vld [vmem:[%s7432_s26 + $0x99] sm:$0xff]  ;;  %v278_v45 = vld [vmem:[%s7432_s26 + $0xa1] sm:$0xff] }
  0x1e   : > { %v300_v42 = vld [vmem:[%s7432_s26 + $0x151] sm:$0xff]  ;;  %v301_v44 = vld [vmem:[%s7432_s26 + $0x159] sm:$0xff]  ;;  %v302_v46 = vld [vmem:[%s7432_s26 + $0x161] sm:$0xff] }
  0x1f   : > { %6700 = vmatmul.mubr.msk.f32.gmra.mxu0 %vm308_vm1, %v265_v19  ;;  %v279_v47 = vld [vmem:[%s7432_s26 + $0xa9] sm:$0xff]  ;;  %v280_v49 = vld [vmem:[%s7432_s26 + $0xb1] sm:$0xff]  ;;  %v281_v51 = vld [vmem:[%s7432_s26 + $0xb9] sm:$0xff] }
  0x20   : > { %6736 = vmatmul.mubr.msk.f32.gmra.mxu1 %vm308_vm1, %v289_v20  ;;  %6702 = vmatprep.mubr.msk.f32.mxu0 %vm308_vm1, %v266_v21  ;;  %v303_v48 = vld [vmem:[%s7432_s26 + $0x169] sm:$0xff]  ;;  %v304_v50 = vld [vmem:[%s7432_s26 + $0x171] sm:$0xff]  ;;  %v305_v52 = vld [vmem:[%s7432_s26 + $0x179] sm:$0xff] }
  0x21   : > { %6738 = vmatprep.mubr.msk.f32.mxu1 %vm308_vm1, %v290_v22  ;;  %v209_v53 = vld [vmem:[%s7432_s26] sm:$0xff]  ;;  %v210_v55 = vld [vmem:[%s7432_s26 + $0x8] sm:$0xff]  ;;  %v211_v57 = vld [vmem:[%s7432_s26 + $0x10] sm:$0xff] }
  0x22   : > { %v1214_v54 = vld [vmem:[%s7432_s26 + $0x2] sm:$0xff]  ;;  %v1215_v56 = vld [vmem:[%s7432_s26 + $0xa] sm:$0xff]  ;;  %v7554_v58 = vld [vmem:[%s7432_s26 + $0x12] sm:$0xff] }
  0x23   : > { %6703 = vmatmul.mubr.msk.f32.gmra.mxu0 %vm308_vm1, %v267_v23  ;;  %v212_v61 = vld [vmem:[%s7432_s26 + $0x18] sm:$0xff]  ;;  %v213_v63 = vld [vmem:[%s7432_s26 + $0x20] sm:$0xff]  ;;  %v214_v1 = vld [vmem:[%s7432_s26 + $0x28] sm:$0xff] }
  0x24   : > { %6739 = vmatmul.mubr.msk.f32.gmra.mxu1 %vm308_vm1, %v291_v24  ;;  %6705 = vmatprep.mubr.msk.f32.mxu0 %vm308_vm1, %v268_v25  ;;  %v7574_v62 = vld [vmem:[%s7432_s26 + $0x1a] sm:$0xff]  ;;  %v7581_v0 = vld [vmem:[%s7432_s26 + $0x22] sm:$0xff]  ;;  %v7595_v2 = vld [vmem:[%s7432_s26 + $0x2a] sm:$0xff] }
  0x25   : > { %6741 = vmatprep.mubr.msk.f32.mxu1 %vm308_vm1, %v292_v26  ;;  %v215_v3 = vld [vmem:[%s7432_s26 + $0x30] sm:$0xff]  ;;  %v216_v5 = vld [vmem:[%s7432_s26 + $0x38] sm:$0xff]  ;;  %v217_v7 = vld [vmem:[%s7432_s26 + $0x40] sm:$0xff] }
  0x26   : > { %v7599_v4 = vld [vmem:[%s7432_s26 + $0x32] sm:$0xff]  ;;  %v7609_v6 = vld [vmem:[%s7432_s26 + $0x3a] sm:$0xff]  ;;  %v7613_v8 = vld [vmem:[%s7432_s26 + $0x42] sm:$0xff] }
  0x27   : > { %6706 = vmatmul.mubr.msk.f32.gmra.mxu0 %vm308_vm1, %v269_v27  ;;  %v219_v11 = vld [vmem:[%s7432_s26 + $0x50] sm:$0xff]  ;;  %v220_v13 = vld [vmem:[%s7432_s26 + $0x58] sm:$0xff]  ;;  %v221_v15 = vld [vmem:[%s7432_s26 + $0x60] sm:$0xff] }
  0x28   : > { %6742 = vmatmul.mubr.msk.f32.gmra.mxu1 %vm308_vm1, %v293_v28  ;;  %6708 = vmatprep.mubr.msk.f32.mxu0 %vm308_vm1, %v270_v29  ;;  %v7627_v12 = vld [vmem:[%s7432_s26 + $0x52] sm:$0xff]  ;;  %v7637_v14 = vld [vmem:[%s7432_s26 + $0x5a] sm:$0xff]  ;;  %v7641_v16 = vld [vmem:[%s7432_s26 + $0x62] sm:$0xff] }
  0x29   : > { %6744 = vmatprep.mubr.msk.f32.mxu1 %vm308_vm1, %v294_v30  ;;  %v222_v17 = vld [vmem:[%s7432_s26 + $0x68] sm:$0xff]  ;;  %v223_v19 = vld [vmem:[%s7432_s26 + $0x70] sm:$0xff]  ;;  %v224_v21 = vld [vmem:[%s7432_s26 + $0x78] sm:$0xff] }
  0x2a   : > { %v7651_v18 = vld [vmem:[%s7432_s26 + $0x6a] sm:$0xff]  ;;  %v7655_v20 = vld [vmem:[%s7432_s26 + $0x72] sm:$0xff]  ;;  %v7665_v22 = vld [vmem:[%s7432_s26 + $0x7a] sm:$0xff] }
  0x2b   : > { %6709 = vmatmul.mubr.msk.f32.gmra.mxu0 %vm308_vm1, %v271_v31  ;;  %v225_v23 = vld [vmem:[%s7432_s26 + $0x80] sm:$0xff]  ;;  %v226_v25 = vld [vmem:[%s7432_s26 + $0x88] sm:$0xff]  ;;  %v227_v27 = vld [vmem:[%s7432_s26 + $0x90] sm:$0xff] }
  0x2c   : > { %6745 = vmatmul.mubr.msk.f32.gmra.mxu1 %vm308_vm1, %v295_v32  ;;  %6711 = vmatprep.mubr.msk.f32.mxu0 %vm308_vm1, %v272_v33  ;;  %v7669_v24 = vld [vmem:[%s7432_s26 + $0x82] sm:$0xff]  ;;  %v7679_v26 = vld [vmem:[%s7432_s26 + $0x8a] sm:$0xff]  ;;  %v7683_v28 = vld [vmem:[%s7432_s26 + $0x92] sm:$0xff] }
  0x2d   : > { %6747 = vmatprep.mubr.msk.f32.mxu1 %vm308_vm1, %v296_v34  ;;  %v228_v29 = vld [vmem:[%s7432_s26 + $0x98] sm:$0xff]  ;;  %v229_v31 = vld [vmem:[%s7432_s26 + $0xa0] sm:$0xff]  ;;  %v230_v33 = vld [vmem:[%s7432_s26 + $0xa8] sm:$0xff] }
  0x2e   : > { %v7693_v30 = vld [vmem:[%s7432_s26 + $0x9a] sm:$0xff]  ;;  %v7697_v32 = vld [vmem:[%s7432_s26 + $0xa2] sm:$0xff]  ;;  %v7707_v34 = vld [vmem:[%s7432_s26 + $0xaa] sm:$0xff] }
  0x2f   : > { %6712 = vmatmul.mubr.msk.f32.gmra.mxu0 %vm308_vm1, %v273_v35  ;;  %v231_v35 = vld [vmem:[%s7432_s26 + $0xb0] sm:$0xff] }
  0x30   : > { %6748 = vmatmul.mubr.msk.f32.gmra.mxu1 %vm308_vm1, %v297_v36  ;;  %6714 = vmatprep.mubr.msk.f32.mxu0 %vm308_vm1, %v274_v37  ;;  %v7711_v36 = vld [vmem:[%s7432_s26 + $0xb2] sm:$0xff] }
  0x31   : > { %6750 = vmatprep.mubr.msk.f32.mxu1 %vm308_vm1, %v298_v38  ;;  %v232_v37 = vld [vmem:[%s7432_s26 + $0xb8] sm:$0xff] }
  0x32   : > { %v7721_v38 = vld [vmem:[%s7432_s26 + $0xba] sm:$0xff] }
  0x33   : > { %6715 = vmatmul.mubr.msk.f32.gmra.mxu0 %vm308_vm1, %v275_v39  ;;  %v233_v39 = vld [vmem:[%s7432_s26 + $0xc0] sm:$0xff] }
  0x34   : > { %6751 = vmatmul.mubr.msk.f32.gmra.mxu1 %vm308_vm1, %v299_v40  ;;  %6717 = vmatprep.mubr.msk.f32.mxu0 %vm308_vm1, %v276_v41  ;;  %v7725_v40 = vld [vmem:[%s7432_s26 + $0xc2] sm:$0xff] }
  0x35   : > { %6753 = vmatprep.mubr.msk.f32.mxu1 %vm308_vm1, %v300_v42  ;;  %v234_v41 = vld [vmem:[%s7432_s26 + $0xc8] sm:$0xff] }
  0x36   : > { %v7735_v42 = vld [vmem:[%s7432_s26 + $0xca] sm:$0xff] }
  0x37   : > { %6718 = vmatmul.mubr.msk.f32.gmra.mxu0 %vm308_vm1, %v277_v43  ;;  %v235_v43 = vld [vmem:[%s7432_s26 + $0xd0] sm:$0xff] }
  0x38   : > { %6754 = vmatmul.mubr.msk.f32.gmra.mxu1 %vm308_vm1, %v301_v44  ;;  %6720 = vmatprep.mubr.msk.f32.mxu0 %vm308_vm1, %v278_v45  ;;  %v7739_v44 = vld [vmem:[%s7432_s26 + $0xd2] sm:$0xff] }
  0x39   : > { %6756 = vmatprep.mubr.msk.f32.mxu1 %vm308_vm1, %v302_v46  ;;  %v236_v45 = vld [vmem:[%s7432_s26 + $0xd8] sm:$0xff] }
  0x3a   : > { %v7749_v46 = vld [vmem:[%s7432_s26 + $0xda] sm:$0xff] }
  0x3b   : > { %6721 = vmatmul.mubr.msk.f32.gmra.mxu0 %vm308_vm1, %v279_v47  ;;  %v237_v47 = vld [vmem:[%s7432_s26 + $0xe0] sm:$0xff] }
  0x3c   : > { %6757 = vmatmul.mubr.msk.f32.gmra.mxu1 %vm308_vm1, %v303_v48  ;;  %6723 = vmatprep.mubr.msk.f32.mxu0 %vm308_vm1, %v280_v49  ;;  %v7753_v48 = vld [vmem:[%s7432_s26 + $0xe2] sm:$0xff] }
  0x3d   : > { %6759 = vmatprep.mubr.msk.f32.mxu1 %vm308_vm1, %v304_v50  ;;  %v238_v49 = vld [vmem:[%s7432_s26 + $0xe8] sm:$0xff] }
  0x3e   : > { %v7763_v50 = vld [vmem:[%s7432_s26 + $0xea] sm:$0xff] }
  0x3f   : > { %6724 = vmatmul.mubr.msk.f32.gmra.mxu0 %vm308_vm1, %v281_v51  ;;  %v239_v51 = vld [vmem:[%s7432_s26 + $0xf0] sm:$0xff] }
  0x40   : > { %6760 = vmatmul.mubr.msk.f32.gmra.mxu1 %vm308_vm1, %v305_v52  ;;  %6838 = vmatprep.mubr.msk.f32.mxu0 %vm308_vm1, %v1214_v54  ;;  %v7767_v52 = vld [vmem:[%s7432_s26 + $0xf2] sm:$0xff]  ;;  %v7777_v54 = vld [vmem:[%s7432_s26 + $0xfa] sm:$0xff] }
  0x41   : > { %6764 = vmatprep.mubr.msk.f32.mxu1 %vm308_vm1, %v209_v53  ;;  %v240_v53 = vld [vmem:[%s7432_s26 + $0xf8] sm:$0xff] }
  0x43   : > { %6839 = vmatmul.mubr.msk.f32.vlgmr.msra.gmra.mxu0 %vm308_vm1, %v1215_v56  ;;  %v7781_v56 = vld [vmem:[%s7432_s26 + $0x102] sm:$0xff] }
  0x44   : > { %6765 = vmatmul.mubr.msk.f32.vlgmr.msra.gmra.mxu1 %vm308_vm1, %v210_v55  ;;  %6985 = vmatpush3.msk.msra.mxu0 %vm453_vm0, %v7452_v10  ;;  %v7623_v10 = vld [vmem:[%s7432_s26 + $0x4a] sm:$0xff]  ;;  %v241_v55 = vld [vmem:[%s7432_s26 + $0x100] sm:$0xff] }
  0x45   : > { %6911 = vmatpush3.msk.msra.mxu1 %vm453_vm0, %v7447_v9  ;;  %6767 = vmatprep.mubr.msk.f32.mxu1 %vm308_vm1, %v211_v57  ;;  %v218_v9 = vld [vmem:[%s7432_s26 + $0x48] sm:$0xff] }
  0x46   : > { %6841 = vmatprep.mubr.msk.f32.mxu0 %vm308_vm1, %v7554_v58  ;;  %7058 = vmatprep.subr.msk.mxu1 %vm453_vm0, %v7561_v59  ;;  %v242_v57 = vld [vmem:[%s7432_s26 + $0x108] sm:$0xff] }
  0x47   : > { %7132 = vmatprep.subr.msk.mxu0 %vm453_vm0, %v7566_v60  ;;  %6842 = vmatmul.mubr.msk.f32.gmra.mxu0 %vm308_vm1, %v7574_v62 }
  0x48   : > { %6768 = vmatmul.mubr.msk.f32.gmra.mxu1 %vm308_vm1, %v212_v61  ;;  %6844 = vmatprep.mubr.msk.f32.mxu0 %vm308_vm1, %v7581_v0  ;;  %v7791_v61 = vld [vmem:[%s7432_s26 + $0x10a] sm:$0xff] }
  0x49   : > { %6770 = vmatprep.mubr.msk.f32.mxu1 %vm308_vm1, %v213_v63  ;;  %v243_v63 = vld [vmem:[%s7432_s26 + $0x110] sm:$0xff] }
  0x4b   : > { %6845 = vmatmul.mubr.msk.f32.gmra.mxu0 %vm308_vm1, %v7595_v2 }
  0x4c   : > { %6771 = vmatmul.mubr.msk.f32.gmra.mxu1 %vm308_vm1, %v214_v1  ;;  %6847 = vmatprep.mubr.msk.f32.mxu0 %vm308_vm1, %v7599_v4  ;;  %v7795_v1 = vld [vmem:[%s7432_s26 + $0x112] sm:$0xff] }
  0x4d   : > { %6773 = vmatprep.mubr.msk.f32.mxu1 %vm308_vm1, %v215_v3  ;;  %v244_v3 = vld [vmem:[%s7432_s26 + $0x118] sm:$0xff] }
  0x4f   : > { %6848 = vmatmul.mubr.msk.f32.gmra.mxu0 %vm308_vm1, %v7609_v6 }
  0x50   : > { %6774 = vmatmul.mubr.msk.f32.gmra.mxu1 %vm308_vm1, %v216_v5  ;;  %6850 = vmatprep.mubr.msk.f32.mxu0 %vm308_vm1, %v7613_v8  ;;  %v7805_v5 = vld [vmem:[%s7432_s26 + $0x11a] sm:$0xff] }
  0x51   : > { %6776 = vmatprep.mubr.msk.f32.mxu1 %vm308_vm1, %v217_v7  ;;  %v245_v7 = vld [vmem:[%s7432_s26 + $0x120] sm:$0xff] }
  0x53   : > { %6851 = vmatmul.mubr.msk.f32.gmra.mxu0 %vm308_vm1, %v7623_v10 }
  0x54   : > { %6777 = vmatmul.mubr.msk.f32.gmra.mxu1 %vm308_vm1, %v218_v9  ;;  %6853 = vmatprep.mubr.msk.f32.mxu0 %vm308_vm1, %v7627_v12  ;;  %v7809_v9 = vld [vmem:[%s7432_s26 + $0x122] sm:$0xff] }
  0x55   : > { %6779 = vmatprep.mubr.msk.f32.mxu1 %vm308_vm1, %v219_v11  ;;  %v246_v11 = vld [vmem:[%s7432_s26 + $0x128] sm:$0xff] }
  0x57   : > { %6854 = vmatmul.mubr.msk.f32.gmra.mxu0 %vm308_vm1, %v7637_v14 }
  0x58   : > { %6780 = vmatmul.mubr.msk.f32.gmra.mxu1 %vm308_vm1, %v220_v13  ;;  %6856 = vmatprep.mubr.msk.f32.mxu0 %vm308_vm1, %v7641_v16  ;;  %v7819_v13 = vld [vmem:[%s7432_s26 + $0x12a] sm:$0xff] }
  0x59   : > { %6782 = vmatprep.mubr.msk.f32.mxu1 %vm308_vm1, %v221_v15  ;;  %v247_v15 = vld [vmem:[%s7432_s26 + $0x130] sm:$0xff] }
  0x5b   : > { %6857 = vmatmul.mubr.msk.f32.gmra.mxu0 %vm308_vm1, %v7651_v18 }
  0x5c   : > { %6783 = vmatmul.mubr.msk.f32.gmra.mxu1 %vm308_vm1, %v222_v17  ;;  %6859 = vmatprep.mubr.msk.f32.mxu0 %vm308_vm1, %v7655_v20  ;;  %v7823_v17 = vld [vmem:[%s7432_s26 + $0x132] sm:$0xff] }
  0x5d   : > { %6785 = vmatprep.mubr.msk.f32.mxu1 %vm308_vm1, %v223_v19  ;;  %v248_v19 = vld [vmem:[%s7432_s26 + $0x138] sm:$0xff] }
  0x5f   : > { %6860 = vmatmul.mubr.msk.f32.gmra.mxu0 %vm308_vm1, %v7665_v22 }
  0x60   : > { %6786 = vmatmul.mubr.msk.f32.gmra.mxu1 %vm308_vm1, %v224_v21  ;;  %6862 = vmatprep.mubr.msk.f32.mxu0 %vm308_vm1, %v7669_v24  ;;  %v7833_v21 = vld [vmem:[%s7432_s26 + $0x13a] sm:$0xff] }
  0x61   : > { %6788 = vmatprep.mubr.msk.f32.mxu1 %vm308_vm1, %v225_v23  ;;  %v249_v23 = vld [vmem:[%s7432_s26 + $0x140] sm:$0xff] }
  0x63   : > { %6863 = vmatmul.mubr.msk.f32.gmra.mxu0 %vm308_vm1, %v7679_v26 }
  0x64   : > { %6789 = vmatmul.mubr.msk.f32.gmra.mxu1 %vm308_vm1, %v226_v25  ;;  %6865 = vmatprep.mubr.msk.f32.mxu0 %vm308_vm1, %v7683_v28  ;;  %v7837_v25 = vld [vmem:[%s7432_s26 + $0x142] sm:$0xff] }
  0x65   : > { %6791 = vmatprep.mubr.msk.f32.mxu1 %vm308_vm1, %v227_v27  ;;  %v250_v27 = vld [vmem:[%s7432_s26 + $0x148] sm:$0xff] }
  0x67   : > { %6866 = vmatmul.mubr.msk.f32.gmra.mxu0 %vm308_vm1, %v7693_v30 }
  0x68   : > { %6792 = vmatmul.mubr.msk.f32.gmra.mxu1 %vm308_vm1, %v228_v29  ;;  %6868 = vmatprep.mubr.msk.f32.mxu0 %vm308_vm1, %v7697_v32  ;;  %v7847_v29 = vld [vmem:[%s7432_s26 + $0x14a] sm:$0xff] }
  0x69   : > { %6794 = vmatprep.mubr.msk.f32.mxu1 %vm308_vm1, %v229_v31  ;;  %v251_v31 = vld [vmem:[%s7432_s26 + $0x150] sm:$0xff] }
  0x6b   : > { %6869 = vmatmul.mubr.msk.f32.gmra.mxu0 %vm308_vm1, %v7707_v34 }
  0x6c   : > { %6795 = vmatmul.mubr.msk.f32.gmra.mxu1 %vm308_vm1, %v230_v33  ;;  %6871 = vmatprep.mubr.msk.f32.mxu0 %vm308_vm1, %v7711_v36  ;;  %v7851_v33 = vld [vmem:[%s7432_s26 + $0x152] sm:$0xff] }
  0x6d   : > { %6797 = vmatprep.mubr.msk.f32.mxu1 %vm308_vm1, %v231_v35  ;;  %v252_v35 = vld [vmem:[%s7432_s26 + $0x158] sm:$0xff] }
  0x6f   : > { %6872 = vmatmul.mubr.msk.f32.gmra.mxu0 %vm308_vm1, %v7721_v38 }
  0x70   : > { %6798 = vmatmul.mubr.msk.f32.gmra.mxu1 %vm308_vm1, %v232_v37  ;;  %6874 = vmatprep.mubr.msk.f32.mxu0 %vm308_vm1, %v7725_v40  ;;  %v7861_v37 = vld [vmem:[%s7432_s26 + $0x15a] sm:$0xff] }
  0x71   : > { %6800 = vmatprep.mubr.msk.f32.mxu1 %vm308_vm1, %v233_v39  ;;  %v253_v39 = vld [vmem:[%s7432_s26 + $0x160] sm:$0xff] }
  0x73   : > { %6875 = vmatmul.mubr.msk.f32.gmra.mxu0 %vm308_vm1, %v7735_v42 }
  0x74   : > { %6801 = vmatmul.mubr.msk.f32.gmra.mxu1 %vm308_vm1, %v234_v41  ;;  %6877 = vmatprep.mubr.msk.f32.mxu0 %vm308_vm1, %v7739_v44  ;;  %v7865_v41 = vld [vmem:[%s7432_s26 + $0x162] sm:$0xff] }
  0x75   : > { %6803 = vmatprep.mubr.msk.f32.mxu1 %vm308_vm1, %v235_v43  ;;  %v254_v43 = vld [vmem:[%s7432_s26 + $0x168] sm:$0xff] }
  0x77   : > { %6878 = vmatmul.mubr.msk.f32.gmra.mxu0 %vm308_vm1, %v7749_v46 }
  0x78   : > { %6804 = vmatmul.mubr.msk.f32.gmra.mxu1 %vm308_vm1, %v236_v45  ;;  %6880 = vmatprep.mubr.msk.f32.mxu0 %vm308_vm1, %v7753_v48  ;;  %v7875_v45 = vld [vmem:[%s7432_s26 + $0x16a] sm:$0xff] }
  0x79   : > { %6806 = vmatprep.mubr.msk.f32.mxu1 %vm308_vm1, %v237_v47  ;;  %v255_v47 = vld [vmem:[%s7432_s26 + $0x170] sm:$0xff] }
  0x7b   : > { %6881 = vmatmul.mubr.msk.f32.gmra.mxu0 %vm308_vm1, %v7763_v50 }
  0x7c   : > { %6807 = vmatmul.mubr.msk.f32.gmra.mxu1 %vm308_vm1, %v238_v49  ;;  %6883 = vmatprep.mubr.msk.f32.mxu0 %vm308_vm1, %v7767_v52  ;;  %v7879_v49 = vld [vmem:[%s7432_s26 + $0x172] sm:$0xff] }
  0x7d   : > { %6809 = vmatprep.mubr.msk.f32.mxu1 %vm308_vm1, %v239_v51  ;;  %v256_v51 = vld [vmem:[%s7432_s26 + $0x178] sm:$0xff] }
  0x7f   : > { %6884 = vmatmul.mubr.msk.f32.gmra.mxu0 %vm308_vm1, %v7777_v54 }
  0x80   : > { %6810 = vmatmul.mubr.msk.f32.gmra.mxu1 %vm308_vm1, %v240_v53  ;;  %6886 = vmatprep.mubr.msk.f32.mxu0 %vm308_vm1, %v7781_v56  ;;  %v7889_v53 = vld [vmem:[%s7432_s26 + $0x17a] sm:$0xff] }
  0x81   : > { %6812 = vmatprep.mubr.msk.f32.mxu1 %vm308_vm1, %v241_v55  ;;  %v2314_v55 = vld [vmem:[%s7432_s26 + $0x13] sm:$0xff] }
  0x83   : > { %6887 = vmatmul.mubr.msk.f32.gmra.mxu0 %vm308_vm1, %v7791_v61 }
  0x84   : > { %6813 = vmatmul.mubr.msk.f32.gmra.mxu1 %vm308_vm1, %v242_v57  ;;  %6889 = vmatprep.mubr.msk.f32.mxu0 %vm308_vm1, %v7795_v1  ;;  %v2315_v57 = vld [vmem:[%s7432_s26 + $0x1b] sm:$0xff] }
  0x85   : > { %6815 = vmatprep.mubr.msk.f32.mxu1 %vm308_vm1, %v243_v63  ;;  %v2316_v63 = vld [vmem:[%s7432_s26 + $0x23] sm:$0xff] }
  0x87   : > { %6890 = vmatmul.mubr.msk.f32.gmra.mxu0 %vm308_vm1, %v7805_v5 }
  0x88   : > { %6816 = vmatmul.mubr.msk.f32.gmra.mxu1 %vm308_vm1, %v244_v3  ;;  %6892 = vmatprep.mubr.msk.f32.mxu0 %vm308_vm1, %v7809_v9  ;;  %v7906_v3 = vld [vmem:[%s9483_s1 + $0x1c] sm:$0xf] }
  0x89   : > { %6818 = vmatprep.mubr.msk.f32.mxu1 %vm308_vm1, %v245_v7  ;;  %v2318_v7 = vld [vmem:[%s7432_s26 + $0x33] sm:$0xff] }
  0x8b   : > { %6893 = vmatmul.mubr.msk.f32.gmra.mxu0 %vm308_vm1, %v7819_v13 }
  0x8c   : > { %6819 = vmatmul.mubr.msk.f32.gmra.mxu1 %vm308_vm1, %v246_v11  ;;  %6895 = vmatprep.mubr.msk.f32.mxu0 %vm308_vm1, %v7823_v17  ;;  %v7377_v11 = vmov 0  }
  0x8d   : > { %6821 = vmatprep.mubr.msk.f32.mxu1 %vm308_vm1, %v247_v15  ;;  %7367 = vset.pattern.permute.xlu0 %v7377_v11 }
  0x8e   : > { %7368 = vset.pattern.permute.xlu1 %v7377_v11  ;;  %v2353_v11 = vld [vmem:[%s7432_s26 + $0x14b] sm:$0xff] }
  0x8f   : > { %6896 = vmatmul.mubr.msk.f32.gmra.mxu0 %vm308_vm1, %v7833_v21 }
  0x90   : > { %6822 = vmatmul.mubr.msk.f32.gmra.mxu1 %vm308_vm1, %v248_v19  ;;  %6898 = vmatprep.mubr.msk.f32.mxu0 %vm308_vm1, %v7837_v25  ;;  %v5114_v19 = vld [vmem:[%s9484_s2 + $0x8] sm:$0xff] }
  0x91   : > { %6824 = vmatprep.mubr.msk.f32.mxu1 %vm308_vm1, %v249_v23  ;;  %v2341_v23 = vld [vmem:[%s7432_s26 + $0xeb] sm:$0xff] }
  0x93   : > { %6899 = vmatmul.mubr.msk.f32.gmra.mxu0 %vm308_vm1, %v7847_v29 }
  0x94   : > { %6825 = vmatmul.mubr.msk.f32.gmra.mxu1 %vm308_vm1, %v250_v27  ;;  %6901 = vmatprep.mubr.msk.f32.mxu0 %vm308_vm1, %v7851_v33 }
  0x95   : > { %6827 = vmatprep.mubr.msk.f32.mxu1 %vm308_vm1, %v251_v31  ;;  %v2342_v31 = vld [vmem:[%s7432_s26 + $0xf3] sm:$0xff] }
  0x97   : > { %6902 = vmatmul.mubr.msk.f32.gmra.mxu0 %vm308_vm1, %v7861_v37 }
  0x98   : > { %6828 = vmatmul.mubr.msk.f32.gmra.mxu1 %vm308_vm1, %v252_v35  ;;  %6904 = vmatprep.mubr.msk.f32.mxu0 %vm308_vm1, %v7865_v41 }
  0x99   : > { %6830 = vmatprep.mubr.msk.f32.mxu1 %vm308_vm1, %v253_v39 }
  0x9b   : > { %6905 = vmatmul.mubr.msk.f32.gmra.mxu0 %vm308_vm1, %v7875_v45 }
  0x9c   : > { %6831 = vmatmul.mubr.msk.f32.gmra.mxu1 %vm308_vm1, %v254_v43  ;;  %6907 = vmatprep.mubr.msk.f32.mxu0 %vm308_vm1, %v7879_v49  ;;  %v5117_v43 = vld [vmem:[%s9484_s2 + $0x20] sm:$0xff] }
  0x9d   : > { %6833 = vmatprep.mubr.msk.f32.mxu1 %vm308_vm1, %v255_v47  ;;  %v2343_v47 = vld [vmem:[%s7432_s26 + $0xfb] sm:$0xff] }
  0x9f   : > { %6908 = vmatmul.mubr.msk.f32.gmra.mxu0 %vm308_vm1, %v7889_v53 }
  0xa0   : > { %6834 = vmatmul.mubr.msk.f32.gmra.mxu1 %vm308_vm1, %v256_v51  ;;  %6986 = vmatprep.mubr.msk.f32.mxu0 %vm308_vm1, %v2314_v55  ;;  %v2344_v55 = vld [vmem:[%s7432_s26 + $0x103] sm:$0xff] }
  0xa1   : > { %6912 = vmatprep.mubr.msk.f32.mxu1 %vm308_vm1, %v7554_v58  ;;  %v7911_v58 = vld [vmem:[%s9483_s1 + $0x20] sm:$0xf] }
  0xa3   : > { %6987 = vmatmul.mubr.msk.f32.vlgmr.msra.gmra.mxu0 %vm308_vm1, %v2315_v57 }
  0xa4   : > { %6913 = vmatmul.mubr.msk.f32.vlgmr.msra.gmra.mxu1 %vm308_vm1, %v7574_v62  ;;  %7133 = vmatpush3.msk.msra.mxu0 %vm453_vm0, %v7566_v60  ;;  %v2317_v62 = vld [vmem:[%s7432_s26 + $0x2b] sm:$0xff]  ;;  %v2320_v60 = vld [vmem:[%s7432_s26 + $0x43] sm:$0xff] }
  0xa5   : > { %7059 = vmatpush3.msk.msra.mxu1 %vm453_vm0, %v7561_v59  ;;  %6915 = vmatprep.mubr.msk.f32.mxu1 %vm308_vm1, %v7581_v0  ;;  %v2319_v59 = vld [vmem:[%s7432_s26 + $0x3b] sm:$0xff]  ;;  %v2321_v0 = vld [vmem:[%s7432_s26 + $0x4b] sm:$0xff] }
  0xa6   : > { %6989 = vmatprep.mubr.msk.f32.mxu0 %vm308_vm1, %v2316_v63  ;;  %7206 = vmatprep.subr.msk.mxu1 %vm453_vm0, %v7906_v3 }
  0xa7   : > { %7280 = vmatprep.subr.msk.mxu0 %vm453_vm0, %v7911_v58  ;;  %6990 = vmatmul.mubr.msk.f32.gmra.mxu0 %vm308_vm1, %v2317_v62  ;;  %v5119_v62 = vld [vmem:[%s9484_s2 + $0x30] sm:$0xff] }
  0xa8   : > { %6916 = vmatmul.mubr.msk.f32.gmra.mxu1 %vm308_vm1, %v7595_v2  ;;  %6992 = vmatprep.mubr.msk.f32.mxu0 %vm308_vm1, %v2318_v7  ;;  %v2322_v2 = vld [vmem:[%s7432_s26 + $0x53] sm:$0xff]  ;;  %v2345_v7 = vld [vmem:[%s7432_s26 + $0x10b] sm:$0xff] }
  0xa9   : > { %6918 = vmatprep.mubr.msk.f32.mxu1 %vm308_vm1, %v7599_v4  ;;  %v2323_v4 = vld [vmem:[%s7432_s26 + $0x5b] sm:$0xff] }
  0xab   : > { %6993 = vmatmul.mubr.msk.f32.gmra.mxu0 %vm308_vm1, %v2319_v59 }
  0xac   : > { %6919 = vmatmul.mubr.msk.f32.gmra.mxu1 %vm308_vm1, %v7609_v6  ;;  %6995 = vmatprep.mubr.msk.f32.mxu0 %vm308_vm1, %v2320_v60  ;;  %v2324_v6 = vld [vmem:[%s7432_s26 + $0x63] sm:$0xff]  ;;  %v2346_v60 = vld [vmem:[%s7432_s26 + $0x113] sm:$0xff] }
  0xad   : > { %6921 = vmatprep.mubr.msk.f32.mxu1 %vm308_vm1, %v7613_v8  ;;  %v2325_v8 = vld [vmem:[%s7432_s26 + $0x6b] sm:$0xff] }
  0xaf   : > { %6996 = vmatmul.mubr.msk.f32.gmra.mxu0 %vm308_vm1, %v2321_v0 }
  0xb0   : > { %6922 = vmatmul.mubr.msk.f32.gmra.mxu1 %vm308_vm1, %v7623_v10  ;;  %6998 = vmatprep.mubr.msk.f32.mxu0 %vm308_vm1, %v2322_v2  ;;  %v2326_v10 = vld [vmem:[%s7432_s26 + $0x73] sm:$0xff] }
  0xb1   : > { %6924 = vmatprep.mubr.msk.f32.mxu1 %vm308_vm1, %v7627_v12  ;;  %v2327_v12 = vld [vmem:[%s7432_s26 + $0x7b] sm:$0xff] }
  0xb3   : > { %6999 = vmatmul.mubr.msk.f32.gmra.mxu0 %vm308_vm1, %v2323_v4  ;;  %v5121_v4 = vld [vmem:[%s9484_s2 + $0x40] sm:$0xff] }
  0xb4   : > { %6925 = vmatmul.mubr.msk.f32.gmra.mxu1 %vm308_vm1, %v7637_v14  ;;  %7001 = vmatprep.mubr.msk.f32.mxu0 %vm308_vm1, %v2324_v6  ;;  %v2328_v14 = vld [vmem:[%s7432_s26 + $0x83] sm:$0xff]  ;;  %v2347_v6 = vld [vmem:[%s7432_s26 + $0x11b] sm:$0xff] }
  0xb5   : > { %6927 = vmatprep.mubr.msk.f32.mxu1 %vm308_vm1, %v7641_v16  ;;  %v2329_v16 = vld [vmem:[%s7432_s26 + $0x8b] sm:$0xff] }
  0xb7   : > { %7002 = vmatmul.mubr.msk.f32.gmra.mxu0 %vm308_vm1, %v2325_v8 }
  0xb8   : > { %6928 = vmatmul.mubr.msk.f32.gmra.mxu1 %vm308_vm1, %v7651_v18  ;;  %7004 = vmatprep.mubr.msk.f32.mxu0 %vm308_vm1, %v2326_v10  ;;  %v2330_v18 = vld [vmem:[%s7432_s26 + $0x93] sm:$0xff]  ;;  %v2348_v10 = vld [vmem:[%s7432_s26 + $0x123] sm:$0xff] }
  0xb9   : > { %6930 = vmatprep.mubr.msk.f32.mxu1 %vm308_vm1, %v7655_v20  ;;  %v2331_v20 = vld [vmem:[%s7432_s26 + $0x9b] sm:$0xff] }
  0xbb   : > { %7005 = vmatmul.mubr.msk.f32.gmra.mxu0 %vm308_vm1, %v2327_v12 }
  0xbc   : > { %6931 = vmatmul.mubr.msk.f32.gmra.mxu1 %vm308_vm1, %v7665_v22  ;;  %7007 = vmatprep.mubr.msk.f32.mxu0 %vm308_vm1, %v2328_v14  ;;  %v2332_v22 = vld [vmem:[%s7432_s26 + $0xa3] sm:$0xff] }
  0xbd   : > { %6933 = vmatprep.mubr.msk.f32.mxu1 %vm308_vm1, %v7669_v24  ;;  %v2333_v24 = vld [vmem:[%s7432_s26 + $0xab] sm:$0xff] }
  0xbf   : > { %7008 = vmatmul.mubr.msk.f32.gmra.mxu0 %vm308_vm1, %v2329_v16  ;;  %v5123_v16 = vld [vmem:[%s9484_s2 + $0x50] sm:$0xff] }
  0xc0   : > { %6934 = vmatmul.mubr.msk.f32.gmra.mxu1 %vm308_vm1, %v7679_v26  ;;  %7010 = vmatprep.mubr.msk.f32.mxu0 %vm308_vm1, %v2330_v18  ;;  %v2334_v26 = vld [vmem:[%s7432_s26 + $0xb3] sm:$0xff]  ;;  %v2349_v18 = vld [vmem:[%s7432_s26 + $0x12b] sm:$0xff] }
  0xc1   : > { %6936 = vmatprep.mubr.msk.f32.mxu1 %vm308_vm1, %v7683_v28  ;;  %v2335_v28 = vld [vmem:[%s7432_s26 + $0xbb] sm:$0xff] }
  0xc3   : > { %7011 = vmatmul.mubr.msk.f32.gmra.mxu0 %vm308_vm1, %v2331_v20 }
  0xc4   : > { %6937 = vmatmul.mubr.msk.f32.gmra.mxu1 %vm308_vm1, %v7693_v30  ;;  %7013 = vmatprep.mubr.msk.f32.mxu0 %vm308_vm1, %v2332_v22  ;;  %v2336_v30 = vld [vmem:[%s7432_s26 + $0xc3] sm:$0xff]  ;;  %v2350_v22 = vld [vmem:[%s7432_s26 + $0x133] sm:$0xff] }
  0xc5   : > { %6939 = vmatprep.mubr.msk.f32.mxu1 %vm308_vm1, %v7697_v32  ;;  %v2337_v32 = vld [vmem:[%s7432_s26 + $0xcb] sm:$0xff] }
  0xc7   : > { %7014 = vmatmul.mubr.msk.f32.gmra.mxu0 %vm308_vm1, %v2333_v24 }
  0xc8   : > { %6940 = vmatmul.mubr.msk.f32.gmra.mxu1 %vm308_vm1, %v7707_v34  ;;  %7016 = vmatprep.mubr.msk.f32.mxu0 %vm308_vm1, %v2334_v26  ;;  %v2338_v34 = vld [vmem:[%s7432_s26 + $0xd3] sm:$0xff] }
  0xc9   : > { %6942 = vmatprep.mubr.msk.f32.mxu1 %vm308_vm1, %v7711_v36  ;;  %v5113_v36 = vld [vmem:[%s9484_s2] sm:$0xff] }
  0xca   : > { %5163 = vperm.xlu0 %7367, %v5113_v36  }
  0xcb   : > { %7017 = vmatmul.mubr.msk.f32.gmra.mxu0 %vm308_vm1, %v2335_v28  ;;  %v5125_v28 = vld [vmem:[%s9484_s2 + $0x60] sm:$0xff] }
  0xcc   : > { %6943 = vmatmul.mubr.msk.f32.gmra.mxu1 %vm308_vm1, %v7721_v38  ;;  %7019 = vmatprep.mubr.msk.f32.mxu0 %vm308_vm1, %v2336_v30  ;;  %v2339_v38 = vld [vmem:[%s7432_s26 + $0xdb] sm:$0xff] }
  0xcd   : > { %6945 = vmatprep.mubr.msk.f32.mxu1 %vm308_vm1, %v7725_v40  ;;  %v2340_v40 = vld [vmem:[%s7432_s26 + $0xe3] sm:$0xff]  ;;  %v2351_v30 = vld [vmem:[%s7432_s26 + $0x13b] sm:$0xff] }
  0xce   : > { %5168 = vperm.xlu0 %7367, %v5114_v19   ;;  %v2354_v19 = vld [vmem:[%s7432_s26 + $0x153] sm:$0xff] }
  0xcf   : > { %7020 = vmatmul.mubr.msk.f32.gmra.mxu0 %vm308_vm1, %v2337_v32 }
  0xd0   : > { %6946 = vmatmul.mubr.msk.f32.gmra.mxu1 %vm308_vm1, %v7735_v42  ;;  %7022 = vmatprep.mubr.msk.f32.mxu0 %vm308_vm1, %v2338_v34  ;;  %v2352_v34 = vld [vmem:[%s7432_s26 + $0x143] sm:$0xff] }
  0xd1   : > { %6948 = vmatprep.mubr.msk.f32.mxu1 %vm308_vm1, %v7739_v44  ;;  %v5115_v44 = vld [vmem:[%s9484_s2 + $0x10] sm:$0xff] }
  0xd2   : > { %5173 = vperm.xlu1 %7368, %v5115_v44   ;;  %5183 = vperm.xlu0 %7367, %v5117_v43   ;;  %v2355_v43 = vld [vmem:[%s7432_s26 + $0x15b] sm:$0xff] }
  0xd3   : > { %v8017_v42 = vpop.f32.mrf.mxu0  ;;  %7023 = vmatmul.mubr.msk.f32.gmra.mxu0 %vm308_vm1, %v2339_v38 }
  0xd4   : > { %v8019_v15 = vpop.f32.mrf.mxu1  ;;  %6949 = vmatmul.mubr.msk.f32.gmra.mxu1 %vm308_vm1, %v7749_v46  ;;  %7025 = vmatprep.mubr.msk.f32.mxu0 %vm308_vm1, %v2340_v40  ;;  %v5127_v40 = vld [vmem:[%s9484_s2 + $0x70] sm:$0xff] }
  0xd5   : > { %6951 = vmatprep.mubr.msk.f32.mxu1 %vm308_vm1, %v7753_v48  ;;  %v8034_v27 = vpop.f32.mrf.mxu0  ;;  %v5116_v48 = vld [vmem:[%s9484_s2 + $0x18] sm:$0xff] }
  0xd6   : > { %v8036_v46 = vpop.f32.mrf.mxu1  ;;  %5178 = vperm.xlu1 %7368, %v5116_v48   ;;  %5193 = vperm.xlu0 %7367, %v5119_v62   ;;  %v5129_v48 = vld [vmem:[%s9484_s2 + $0x80] sm:$0xff] }
  0xd7   : > { %v8039_v35 = vpop.f32.mrf.mxu0  ;;  %7026 = vmatmul.mubr.msk.f32.gmra.mxu0 %vm308_vm1, %v2341_v23 }
  0xd8   : > { %v8041_v39 = vpop.f32.mrf.mxu1  ;;  %6952 = vmatmul.mubr.msk.f32.gmra.mxu1 %vm308_vm1, %v7763_v50  ;;  %7028 = vmatprep.mubr.msk.f32.mxu0 %vm308_vm1, %v2342_v31 }
  0xd9   : > { %6954 = vmatprep.mubr.msk.f32.mxu1 %vm308_vm1, %v7767_v52  ;;  %v8056_v51 = vpop.f32.mrf.mxu0  ;;  %v5118_v52 = vld [vmem:[%s9484_s2 + $0x28] sm:$0xff] }
  0xda   : > { %v8058_v50 = vpop.f32.mrf.mxu1  ;;  %5188 = vperm.xlu1 %7368, %v5118_v52   ;;  %5203 = vperm.xlu0 %7367, %v5121_v4   ;;  %v2358_v4 = vld [vmem:[%s7432_s26 + $0x173] sm:$0xff] }
  0xdb   : > { %v8061_v57 = vpop.f32.mrf.mxu0  ;;  %7029 = vmatmul.mubr.msk.f32.gmra.mxu0 %vm308_vm1, %v2343_v47 }
  0xdc   : > { %v8063_v63 = vpop.f32.mrf.mxu1  ;;  %6955 = vmatmul.mubr.msk.f32.gmra.mxu1 %vm308_vm1, %v7777_v54  ;;  %7031 = vmatprep.mubr.msk.f32.mxu0 %vm308_vm1, %v2344_v55  ;;  %v2356_v55 = vld [vmem:[%s7432_s26 + $0x163] sm:$0xff] }
  0xdd   : > { %6957 = vmatprep.mubr.msk.f32.mxu1 %vm308_vm1, %v7781_v56  ;;  %v8078_v59 = vpop.f32.mrf.mxu0  ;;  %v5120_v56 = vld [vmem:[%s9484_s2 + $0x38] sm:$0xff] }
  0xde   : > { %v8080_v54 = vpop.f32.mrf.mxu1  ;;  %5198 = vperm.xlu1 %7368, %v5120_v56   ;;  %5213 = vperm.xlu0 %7367, %v5123_v16   ;;  %v2359_v16 = vld [vmem:[%s7432_s26 + $0x17b] sm:$0xff] }
  0xdf   : > { %v8083_v0 = vpop.f32.mrf.mxu0  ;;  %7032 = vmatmul.mubr.msk.f32.gmra.mxu0 %vm308_vm1, %v2345_v7  ;;  %v5131_v7 = vld [vmem:[%s9484_s2 + $0x90] sm:$0xff] }
  0xe0   : > { %v8085_v2 = vpop.f32.mrf.mxu1  ;;  %6958 = vmatmul.mubr.msk.f32.gmra.mxu1 %vm308_vm1, %v7791_v61  ;;  %7034 = vmatprep.mubr.msk.f32.mxu0 %vm308_vm1, %v2346_v60  ;;  %v2357_v60 = vld [vmem:[%s7432_s26 + $0x16b] sm:$0xff] }
  0xe1   : > { %6960 = vmatprep.mubr.msk.f32.mxu1 %vm308_vm1, %v7795_v1  ;;  %v8100_v8 = vpop.f32.mrf.mxu0  ;;  %v5122_v1 = vld [vmem:[%s9484_s2 + $0x48] sm:$0xff] }
  0xe2   : > { %v8102_v61 = vpop.f32.mrf.mxu1  ;;  %5208 = vperm.xlu1 %7368, %v5122_v1   ;;  %5223 = vperm.xlu0 %7367, %v5125_v28   ;;  %v5133_v1 = vld [vmem:[%s9484_s2 + $0xa0] sm:$0xff] }
  0xe3   : > { %v8105_v12 = vpop.f32.mrf.mxu0  ;;  %7035 = vmatmul.mubr.msk.f32.gmra.mxu0 %vm308_vm1, %v2347_v6 }
  0xe4   : > { %v8107_v14 = vpop.f32.mrf.mxu1  ;;  %6961 = vmatmul.mubr.msk.f32.gmra.mxu1 %vm308_vm1, %v7805_v5  ;;  %7037 = vmatprep.mubr.msk.f32.mxu0 %vm308_vm1, %v2348_v10 }
  0xe5   : > { %6963 = vmatprep.mubr.msk.f32.mxu1 %vm308_vm1, %v7809_v9  ;;  %v8122_v20 = vpop.f32.mrf.mxu0  ;;  %v5124_v9 = vld [vmem:[%s9484_s2 + $0x58] sm:$0xff] }
  0xe6   : > { %v8124_v5 = vpop.f32.mrf.mxu1  ;;  %5218 = vperm.xlu1 %7368, %v5124_v9   ;;  %5233 = vperm.xlu0 %7367, %v5127_v40   ;;  %v2360_v9 = vld [vmem:[%s7432_s26 + $0x183] sm:$0xff]  ;;  %v2361_v40 = vld [vmem:[%s7432_s26 + $0x18b] sm:$0xff] }
  0xe7   : > { %v8127_v24 = vpop.f32.mrf.mxu0  ;;  %7038 = vmatmul.mubr.msk.f32.gmra.mxu0 %vm308_vm1, %v2349_v18 }
  0xe8   : > { %v8129_v26 = vpop.f32.mrf.mxu1  ;;  %6964 = vmatmul.mubr.msk.f32.gmra.mxu1 %vm308_vm1, %v7819_v13  ;;  %7040 = vmatprep.mubr.msk.f32.mxu0 %vm308_vm1, %v2350_v22  ;;  %v1810_v22 = vld [vmem:[%s7432_s26 + $0x182] sm:$0xff] }
  0xe9   : > { %6966 = vmatprep.mubr.msk.f32.mxu1 %vm308_vm1, %v7823_v17  ;;  %v8144_v32 = vpop.f32.mrf.mxu0  ;;  %v5126_v17 = vld [vmem:[%s9484_s2 + $0x68] sm:$0xff] }
  0xea   : > { %v8146_v13 = vpop.f32.mrf.mxu1  ;;  %5228 = vperm.xlu1 %7368, %v5126_v17   ;;  %5243 = vperm.xlu0 %7367, %v5129_v48   ;;  %v1811_v17 = vld [vmem:[%s7432_s26 + $0x18a] sm:$0xff] }
  0xeb   : > { %v8149_v36 = vpop.f32.mrf.mxu0  ;;  %7041 = vmatmul.mubr.msk.f32.gmra.mxu0 %vm308_vm1, %v2351_v30 }
  0xec   : > { %v8151_v38 = vpop.f32.mrf.mxu1  ;;  %6967 = vmatmul.mubr.msk.f32.gmra.mxu1 %vm308_vm1, %v7833_v21  ;;  %7043 = vmatprep.mubr.msk.f32.mxu0 %vm308_vm1, %v2352_v34  ;;  %v5135_v34 = vld [vmem:[%s9484_s2 + $0xb0] sm:$0xff] }
  0xed   : > { %6969 = vmatprep.mubr.msk.f32.mxu1 %vm308_vm1, %v7837_v25  ;;  %v8166_v44 = vpop.f32.mrf.mxu0  ;;  %v5128_v25 = vld [vmem:[%s9484_s2 + $0x78] sm:$0xff] }
  0xee   : > { %v8168_v21 = vpop.f32.mrf.mxu1  ;;  %5238 = vperm.xlu1 %7368, %v5128_v25   ;;  %5253 = vperm.xlu0 %7367, %v5131_v7   ;;  %v3414_v25 = vld [vmem:[%s7432_s26 + $0x24] sm:$0xff]  ;;  %v2865_v7 = vld [vmem:[%s7432_s26 + $0x1c] sm:$0xff] }
  0xef   : > { %v8171_v23 = vpop.f32.mrf.mxu0  ;;  %7044 = vmatmul.mubr.msk.f32.gmra.mxu0 %vm308_vm1, %v2353_v11 }
  0xf0   : > { %v8173_v31 = vpop.f32.mrf.mxu1  ;;  %6970 = vmatmul.mubr.msk.f32.gmra.mxu1 %vm308_vm1, %v7847_v29  ;;  %7046 = vmatprep.mubr.msk.f32.mxu0 %vm308_vm1, %v2354_v19  ;;  %v2864_v19 = vld [vmem:[%s7432_s26 + $0x14] sm:$0xff] }
  0xf1   : > { %6972 = vmatprep.mubr.msk.f32.mxu1 %vm308_vm1, %v7851_v33  ;;  %v8188_v47 = vpop.f32.mrf.mxu0  ;;  %v5130_v33 = vld [vmem:[%s9484_s2 + $0x88] sm:$0xff] }
  0xf2   : > { %v8190_v29 = vpop.f32.mrf.mxu1  ;;  %5248 = vperm.xlu1 %7368, %v5130_v33   ;;  %5263 = vperm.xlu0 %7367, %v5133_v1   ;;  %v5137_v33 = vld [vmem:[%s9484_s2 + $0xc0] sm:$0xff]  ;;  %v3416_v1 = vld [vmem:[%s7432_s26 + $0x34] sm:$0xff] }
  0xf3   : > { %v8193_v52 = vpop.f32.mrf.mxu0  ;;  %7047 = vmatmul.mubr.msk.f32.gmra.mxu0 %vm308_vm1, %v2355_v43 }
  0xf4   : > { %v8195_v62 = vpop.f32.mrf.mxu1  ;;  %6973 = vmatmul.mubr.msk.f32.gmra.mxu1 %vm308_vm1, %v7861_v37  ;;  %7049 = vmatprep.mubr.msk.f32.mxu0 %vm308_vm1, %v2356_v55  ;;  %v5136_v55 = vld [vmem:[%s9484_s2 + $0xb8] sm:$0xff] }
  0xf5   : > { %6975 = vmatprep.mubr.msk.f32.mxu1 %vm308_vm1, %v7865_v41  ;;  %v8210_v56 = vpop.f32.mrf.mxu0  ;;  %v5132_v41 = vld [vmem:[%s9484_s2 + $0x98] sm:$0xff] }
  0xf6   : > { %v8212_v37 = vpop.f32.mrf.mxu1  ;;  %5258 = vperm.xlu1 %7368, %v5132_v41   ;;  %5273 = vperm.xlu0 %7367, %v5135_v34  }
  0xf7   : > { %v8215_v6 = vpop.f32.mrf.mxu0  ;;  %7050 = vmatmul.mubr.msk.f32.gmra.mxu0 %vm308_vm1, %v2357_v60  ;;  %v3415_v60 = vld [vmem:[%s7432_s26 + $0x2c] sm:$0xff] }
  0xf8   : > { %v8217_v10 = vpop.f32.mrf.mxu1  ;;  %6976 = vmatmul.mubr.msk.f32.gmra.mxu1 %vm308_vm1, %v7875_v45  ;;  %7052 = vmatprep.mubr.msk.f32.mxu0 %vm308_vm1, %v2358_v4 }
  0xf9   : > { %6978 = vmatprep.mubr.msk.f32.mxu1 %vm308_vm1, %v7879_v49  ;;  %v8232_v18 = vpop.f32.mrf.mxu0  ;;  %v5134_v49 = vld [vmem:[%s9484_s2 + $0xa8] sm:$0xff] }
  0xfa   : > { %v8234_v45 = vpop.f32.mrf.mxu1  ;;  %5268 = vperm.xlu1 %7368, %v5134_v49   ;;  %5283 = vperm.xlu0 %7367, %v5137_v33   ;;  %v5139_v49 = vld [vmem:[%s9484_s2 + $0xd0] sm:$0xff] }
  0xfb   : > { %v8238_v28 = vpop.f32.mrf.mxu0  ;;  %7053 = vmatmul.mubr.msk.f32.gmra.mxu0 %vm308_vm1, %v2359_v16 }
  0xfc   : > { %v8240_v30 = vpop.f32.mrf.mxu1  ;;  %6979 = vmatmul.mubr.msk.f32.gmra.mxu1 %vm308_vm1, %v7889_v53  ;;  %7055 = vmatprep.mubr.msk.f32.mxu0 %vm308_vm1, %v2360_v9  ;;  %v5138_v9 = vld [vmem:[%s9484_s2 + $0xc8] sm:$0xff] }
  0xfd   : > { %6981 = vmatprep.mubr.msk.f32.mxu1 %vm308_vm1, %v1810_v22  ;;  %v8255_v11 = vpop.f32.mrf.mxu0 }
  0xfe   : > { %v8257_v53 = vpop.f32.mrf.mxu1  ;;  %5278 = vperm.xlu1 %7368, %v5136_v55   ;;  %v3418_v55 = vld [vmem:[%s7432_s26 + $0x44] sm:$0xff]  ;;  %5293 = vperm.xlu0 %7367, %v5139_v49   ;;  %v3420_v49 = vld [vmem:[%s7432_s26 + $0x54] sm:$0xff] }
  0xff   : > { %v8261_v48 = vpop.f32.mrf.mxu0  ;;  %7056 = vmatmul.mubr.msk.f32.gmra.mxu0 %vm308_vm1, %v2361_v40 }
 0x100   : > { %v8263_v43 = vpop.f32.mrf.mxu1  ;;  %6982 = vmatmul.mubr.msk.f32.gmra.mxu1 %vm308_vm1, %v1811_v17  ;;  %7134 = vmatprep.mubr.msk.f32.mxu0 %vm308_vm1, %v3414_v25  ;;  %v3417_v17 = vld [vmem:[%s7432_s26 + $0x3c] sm:$0xff] }
 0x101   : > { %7060 = vmatprep.mubr.msk.f32.mxu1 %vm308_vm1, %v2864_v19  ;;  %v8277_v4 = vpop.f32.mrf.mxu0 }
 0x102   : > { %v8279_v41 = vpop.f32.mrf.mxu1  ;;  %5288 = vperm.xlu1 %7368, %v5138_v9  }
 0x103   : > { %v6840_v22 = vpop.f32.mrf.mxu0  ;;  %7135 = vmatmul.mubr.msk.f32.vlgmr.msra.gmra.mxu0 %vm308_vm1, %v3415_v60 }
 0x104   : > { %v6766_v16 = vpop.f32.mrf.mxu1  ;;  %7061 = vmatmul.mubr.msk.f32.vlgmr.msra.gmra.mxu1 %vm308_vm1, %v2865_v7  ;;  %7281 = vmatpush3.msk.msra.mxu0 %vm453_vm0, %v7911_v58  ;;  %v5140_v58 = vld [vmem:[%s9484_s2 + $0xd8] sm:$0xff] }
 0x105   : > { %v981_v34 = vadd.f32 %v6766_v16, %v8017_v42  ;;  %7207 = vmatpush3.msk.msra.mxu1 %vm453_vm0, %v7906_v3  ;;  %v1477_v19 = vpop.f32.mrf.mxu0  ;;  %7063 = vmatprep.mubr.msk.f32.mxu1 %vm308_vm1, %v3414_v25  ;;  %v5141_v25 = vld [vmem:[%s9484_s2 + $0xe0] sm:$0xff] }
 0x106   : > { %v975_v40 = vpop.f32.mrf.mxu1  ;;  %7137 = vmatprep.mubr.msk.f32.mxu0 %vm308_vm1, %v3416_v1  ;;  %5298 = vperm.xlu1 %7368, %v5140_v58  }
 0x107   : > { %v8299_v33 = vadd.f32 %v6840_v22, %v981_v34  ;;  %v976_v7 = vadd.f32 %v975_v40, %v8034_v27  ;;  %v6843_v42 = vpop.f32.mrf.mxu0  ;;  %7138 = vmatmul.mubr.msk.f32.gmra.mxu0 %vm308_vm1, %v3417_v17  ;;  %v3419_v22 = vld [vmem:[%s7432_s26 + $0x4c] sm:$0xff]  ;;  %5303 = vperm.xlu0 %7367, %v5141_v25   ;;  %v3422_v25 = vld [vmem:[%s7432_s26 + $0x64] sm:$0xff] }
 0x108   : > { %v6769_v3 = vpop.f32.mrf.mxu1  ;;  %7064 = vmatmul.mubr.msk.f32.gmra.mxu1 %vm308_vm1, %v3415_v60  ;;  %7140 = vmatprep.mubr.msk.f32.mxu0 %vm308_vm1, %v3418_v55 }
 0x109   : > { %v8310_v16 = vadd.f32 %v1477_v19, %v976_v7  ;;  %v991_v27 = vadd.f32 %v6769_v3, %v8039_v35  ;;  %7066 = vmatprep.mubr.msk.f32.mxu1 %vm308_vm1, %v3416_v1  ;;  %v1487_v9 = vpop.f32.mrf.mxu0  ;;  %v5142_v35 = vld [vmem:[%s9484_s2 + $0xe8] sm:$0xff]  ;;  %v5143_v1 = vld [vmem:[%s9484_s2 + $0xf0] sm:$0xff] }
 0x10a   : > { %v985_v60 = vpop.f32.mrf.mxu1  ;;  %5308 = vperm.xlu1 %7368, %v5142_v35  }
 0x10b   : > { %v8317_v34 = vadd.f32 %v6843_v42, %v991_v27  ;;  %v986_v40 = vadd.f32 %v985_v60, %v8056_v51  ;;  %v6846_v7 = vpop.f32.mrf.mxu0  ;;  %7141 = vmatmul.mubr.msk.f32.gmra.mxu0 %vm308_vm1, %v3419_v22  ;;  %v3421_v42 = vld [vmem:[%s7432_s26 + $0x5c] sm:$0xff]  ;;  %5313 = vperm.xlu0 %7367, %v5143_v1   ;;  %v3424_v1 = vld [vmem:[%s7432_s26 + $0x74] sm:$0xff] }
 0x10c   : > { %v6772_v19 = vpop.f32.mrf.mxu1  ;;  %7067 = vmatmul.mubr.msk.f32.gmra.mxu1 %vm308_vm1, %v3417_v17  ;;  %7143 = vmatprep.mubr.msk.f32.mxu0 %vm308_vm1, %v3420_v49 }
 0x10d   : > { %v8328_v3 = vadd.f32 %v1487_v9, %v986_v40  ;;  %v1001_v51 = vadd.f32 %v6772_v19, %v8061_v57  ;;  %7069 = vmatprep.mubr.msk.f32.mxu1 %vm308_vm1, %v3418_v55  ;;  %v1497_v58 = vpop.f32.mrf.mxu0  ;;  %v5144_v57 = vld [vmem:[%s9484_s2 + $0xf8] sm:$0xff]  ;;  %v5145_v55 = vld [vmem:[%s9484_s2 + $0x100] sm:$0xff] }
 0x10e   : > { %v995_v17 = vpop.f32.mrf.mxu1  ;;  %5318 = vperm.xlu1 %7368, %v5144_v57  }
 0x10f   : > { %v8335_v27 = vadd.f32 %v6846_v7, %v1001_v51  ;;  %v996_v60 = vadd.f32 %v995_v17, %v8078_v59  ;;  %v6849_v40 = vpop.f32.mrf.mxu0  ;;  %7144 = vmatmul.mubr.msk.f32.gmra.mxu0 %vm308_vm1, %v3421_v42  ;;  %v3423_v7 = vld [vmem:[%s7432_s26 + $0x6c] sm:$0xff]  ;;  %5323 = vperm.xlu0 %7367, %v5145_v55   ;;  %v3426_v55 = vld [vmem:[%s7432_s26 + $0x84] sm:$0xff] }
 0x110   : > { %v6775_v9 = vpop.f32.mrf.mxu1  ;;  %7070 = vmatmul.mubr.msk.f32.gmra.mxu1 %vm308_vm1, %v3419_v22  ;;  %7146 = vmatprep.mubr.msk.f32.mxu0 %vm308_vm1, %v3422_v25 }
 0x111   : > { %v8346_v19 = vadd.f32 %v1497_v58, %v996_v60  ;;  %v1011_v59 = vadd.f32 %v6775_v9, %v8083_v0  ;;  %7072 = vmatprep.mubr.msk.f32.mxu1 %vm308_vm1, %v3420_v49  ;;  %v1507_v35 = vpop.f32.mrf.mxu0  ;;  %v5146_v0 = vld [vmem:[%s9484_s2 + $0x108] sm:$0xff]  ;;  %v5147_v49 = vld [vmem:[%s9484_s2 + $0x110] sm:$0xff] }
 0x112   : > { %v1005_v22 = vpop.f32.mrf.mxu1  ;;  %5328 = vperm.xlu1 %7368, %v5146_v0  }
 0x113   : > { %v8353_v51 = vadd.f32 %v6849_v40, %v1011_v59  ;;  %v1006_v17 = vadd.f32 %v1005_v22, %v8100_v8  ;;  %v6852_v60 = vpop.f32.mrf.mxu0  ;;  %7147 = vmatmul.mubr.msk.f32.gmra.mxu0 %vm308_vm1, %v3423_v7  ;;  %v3425_v40 = vld [vmem:[%s7432_s26 + $0x7c] sm:$0xff]  ;;  %5333 = vperm.xlu0 %7367, %v5147_v49   ;;  %v3428_v49 = vld [vmem:[%s7432_s26 + $0x94] sm:$0xff] }
 0x114   : > { %v6778_v58 = vpop.f32.mrf.mxu1  ;;  %7073 = vmatmul.mubr.msk.f32.gmra.mxu1 %vm308_vm1, %v3421_v42  ;;  %7149 = vmatprep.mubr.msk.f32.mxu0 %vm308_vm1, %v3424_v1 }
 0x115   : > { %v8364_v9 = vadd.f32 %v1507_v35, %v1006_v17  ;;  %v1021_v8 = vadd.f32 %v6778_v58, %v8105_v12  ;;  %7075 = vmatprep.mubr.msk.f32.mxu1 %vm308_vm1, %v3422_v25  ;;  %v1517_v57 = vpop.f32.mrf.mxu0  ;;  %v5148_v12 = vld [vmem:[%s9484_s2 + $0x118] sm:$0xff]  ;;  %v5149_v25 = vld [vmem:[%s9484_s2 + $0x120] sm:$0xff] }
 0x116   : > { %v1015_v42 = vpop.f32.mrf.mxu1  ;;  %5338 = vperm.xlu1 %7368, %v5148_v12  }
 0x117   : > { %v8371_v59 = vadd.f32 %v6852_v60, %v1021_v8  ;;  %v1016_v22 = vadd.f32 %v1015_v42, %v8122_v20  ;;  %v6855_v17 = vpop.f32.mrf.mxu0  ;;  %7150 = vmatmul.mubr.msk.f32.gmra.mxu0 %vm308_vm1, %v3425_v40  ;;  %v3427_v60 = vld [vmem:[%s7432_s26 + $0x8c] sm:$0xff]  ;;  %5343 = vperm.xlu0 %7367, %v5149_v25   ;;  %v3430_v25 = vld [vmem:[%s7432_s26 + $0xa4] sm:$0xff] }
 0x118   : > { %v6781_v35 = vpop.f32.mrf.mxu1  ;;  %7076 = vmatmul.mubr.msk.f32.gmra.mxu1 %vm308_vm1, %v3423_v7  ;;  %7152 = vmatprep.mubr.msk.f32.mxu0 %vm308_vm1, %v3426_v55 }
 0x119   : > { %v8382_v58 = vadd.f32 %v1517_v57, %v1016_v22  ;;  %v1031_v20 = vadd.f32 %v6781_v35, %v8127_v24  ;;  %7078 = vmatprep.mubr.msk.f32.mxu1 %vm308_vm1, %v3424_v1  ;;  %v1527_v0 = vpop.f32.mrf.mxu0  ;;  %v5150_v24 = vld [vmem:[%s9484_s2 + $0x128] sm:$0xff]  ;;  %v5151_v1 = vld [vmem:[%s9484_s2 + $0x130] sm:$0xff] }
 0x11a   : > { %v1025_v7 = vpop.f32.mrf.mxu1  ;;  %5348 = vperm.xlu1 %7368, %v5150_v24  }
 0x11b   : > { %v8389_v8 = vadd.f32 %v6855_v17, %v1031_v20  ;;  %v1026_v42 = vadd.f32 %v1025_v7, %v8144_v32  ;;  %v6858_v22 = vpop.f32.mrf.mxu0  ;;  %7153 = vmatmul.mubr.msk.f32.gmra.mxu0 %vm308_vm1, %v3427_v60  ;;  %v3429_v17 = vld [vmem:[%s7432_s26 + $0x9c] sm:$0xff]  ;;  %5353 = vperm.xlu0 %7367, %v5151_v1   ;;  %v3432_v1 = vld [vmem:[%s7432_s26 + $0xb4] sm:$0xff] }
 0x11c   : > { %v6784_v57 = vpop.f32.mrf.mxu1  ;;  %7079 = vmatmul.mubr.msk.f32.gmra.mxu1 %vm308_vm1, %v3425_v40  ;;  %7155 = vmatprep.mubr.msk.f32.mxu0 %vm308_vm1, %v3428_v49 }
 0x11d   : > { %v8400_v35 = vadd.f32 %v1527_v0, %v1026_v42  ;;  %v1041_v32 = vadd.f32 %v6784_v57, %v8149_v36  ;;  %7081 = vmatprep.mubr.msk.f32.mxu1 %vm308_vm1, %v3426_v55  ;;  %v1537_v12 = vpop.f32.mrf.mxu0  ;;  %v5152_v36 = vld [vmem:[%s9484_s2 + $0x138] sm:$0xff]  ;;  %v5153_v55 = vld [vmem:[%s9484_s2 + $0x140] sm:$0xff] }
 0x11e   : > { %v1035_v40 = vpop.f32.mrf.mxu1  ;;  %5358 = vperm.xlu1 %7368, %v5152_v36  }
 0x11f   : > { %v8407_v20 = vadd.f32 %v6858_v22, %v1041_v32  ;;  %v1036_v7 = vadd.f32 %v1035_v40, %v8166_v44  ;;  %v6861_v42 = vpop.f32.mrf.mxu0  ;;  %7156 = vmatmul.mubr.msk.f32.gmra.mxu0 %vm308_vm1, %v3429_v17  ;;  %v3431_v22 = vld [vmem:[%s7432_s26 + $0xac] sm:$0xff]  ;;  %5363 = vperm.xlu0 %7367, %v5153_v55   ;;  %v3434_v55 = vld [vmem:[%s7432_s26 + $0xc4] sm:$0xff] }
 0x120   : > { %v6787_v0 = vpop.f32.mrf.mxu1  ;;  %7082 = vmatmul.mubr.msk.f32.gmra.mxu1 %vm308_vm1, %v3427_v60  ;;  %7158 = vmatprep.mubr.msk.f32.mxu0 %vm308_vm1, %v3430_v25 }
 0x121   : > { %v8418_v57 = vadd.f32 %v1537_v12, %v1036_v7  ;;  %v1051_v44 = vadd.f32 %v6787_v0, %v8171_v23  ;;  %7084 = vmatprep.mubr.msk.f32.mxu1 %vm308_vm1, %v3428_v49  ;;  %v1547_v24 = vpop.f32.mrf.mxu0  ;;  %v5154_v23 = vld [vmem:[%s9484_s2 + $0x148] sm:$0xff]  ;;  %v5155_v49 = vld [vmem:[%s9484_s2 + $0x150] sm:$0xff] }
 0x122   : > { %v1045_v60 = vpop.f32.mrf.mxu1  ;;  %5368 = vperm.xlu1 %7368, %v5154_v23  }
 0x123   : > { %v8425_v32 = vadd.f32 %v6861_v42, %v1051_v44  ;;  %v1046_v40 = vadd.f32 %v1045_v60, %v8188_v47  ;;  %v6864_v7 = vpop.f32.mrf.mxu0  ;;  %7159 = vmatmul.mubr.msk.f32.gmra.mxu0 %vm308_vm1, %v3431_v22  ;;  %v3433_v42 = vld [vmem:[%s7432_s26 + $0xbc] sm:$0xff]  ;;  %5373 = vperm.xlu0 %7367, %v5155_v49   ;;  %v3436_v49 = vld [vmem:[%s7432_s26 + $0xd4] sm:$0xff] }
 0x124   : > { %v6790_v12 = vpop.f32.mrf.mxu1  ;;  %7085 = vmatmul.mubr.msk.f32.gmra.mxu1 %vm308_vm1, %v3429_v17  ;;  %7161 = vmatprep.mubr.msk.f32.mxu0 %vm308_vm1, %v3432_v1 }
 0x125   : > { %v8436_v0 = vadd.f32 %v1547_v24, %v1046_v40  ;;  %v1061_v47 = vadd.f32 %v6790_v12, %v8193_v52  ;;  %7087 = vmatprep.mubr.msk.f32.mxu1 %vm308_vm1, %v3430_v25  ;;  %v1557_v36 = vpop.f32.mrf.mxu0  ;;  %v5156_v52 = vld [vmem:[%s9484_s2 + $0x158] sm:$0xff]  ;;  %v5157_v25 = vld [vmem:[%s9484_s2 + $0x160] sm:$0xff] }
 0x126   : > { %v1055_v17 = vpop.f32.mrf.mxu1  ;;  %5378 = vperm.xlu1 %7368, %v5156_v52  }
 0x127   : > { %v8443_v44 = vadd.f32 %v6864_v7, %v1061_v47  ;;  %v1056_v60 = vadd.f32 %v1055_v17, %v8210_v56  ;;  %v6867_v40 = vpop.f32.mrf.mxu0  ;;  %7162 = vmatmul.mubr.msk.f32.gmra.mxu0 %vm308_vm1, %v3433_v42  ;;  %v3435_v7 = vld [vmem:[%s7432_s26 + $0xcc] sm:$0xff]  ;;  %5383 = vperm.xlu0 %7367, %v5157_v25   ;;  %v3438_v25 = vld [vmem:[%s7432_s26 + $0xe4] sm:$0xff] }
 0x128   : > { %v6793_v24 = vpop.f32.mrf.mxu1  ;;  %7088 = vmatmul.mubr.msk.f32.gmra.mxu1 %vm308_vm1, %v3431_v22  ;;  %7164 = vmatprep.mubr.msk.f32.mxu0 %vm308_vm1, %v3434_v55 }
 0x129   : > { %v8454_v12 = vadd.f32 %v1557_v36, %v1056_v60  ;;  %v1071_v56 = vadd.f32 %v6793_v24, %v8215_v6  ;;  %7090 = vmatprep.mubr.msk.f32.mxu1 %vm308_vm1, %v3432_v1  ;;  %v1567_v23 = vpop.f32.mrf.mxu0  ;;  %v5158_v6 = vld [vmem:[%s9484_s2 + $0x168] sm:$0xff]  ;;  %v5159_v1 = vld [vmem:[%s9484_s2 + $0x170] sm:$0xff] }
 0x12a   : > { %v1065_v22 = vpop.f32.mrf.mxu1  ;;  %5388 = vperm.xlu1 %7368, %v5158_v6  }
 0x12b   : > { %v8461_v47 = vadd.f32 %v6867_v40, %v1071_v56  ;;  %v1066_v17 = vadd.f32 %v1065_v22, %v8232_v18  ;;  %v6870_v60 = vpop.f32.mrf.mxu0  ;;  %7165 = vmatmul.mubr.msk.f32.gmra.mxu0 %vm308_vm1, %v3435_v7  ;;  %v3437_v40 = vld [vmem:[%s7432_s26 + $0xdc] sm:$0xff]  ;;  %5393 = vperm.xlu0 %7367, %v5159_v1  }
 0x12c   : > { %v6796_v36 = vpop.f32.mrf.mxu1  ;;  %7091 = vmatmul.mubr.msk.f32.gmra.mxu1 %vm308_vm1, %v3433_v42  ;;  %7167 = vmatprep.mubr.msk.f32.mxu0 %vm308_vm1, %v3436_v49 }
 0x12d   : > { %v8472_v24 = vadd.f32 %v1567_v23, %v1066_v17  ;;  %v1081_v18 = vadd.f32 %v6796_v36, %v8238_v28  ;;  %7093 = vmatprep.mubr.msk.f32.mxu1 %vm308_vm1, %v3434_v55  ;;  %v1577_v52 = vpop.f32.mrf.mxu0  ;;  %v5160_v28 = vld [vmem:[%s9484_s2 + $0x178] sm:$0xff] }
 0x12e   : > { %v1075_v42 = vpop.f32.mrf.mxu1  ;;  %5398 = vperm.xlu1 %7368, %v5160_v28  }
 0x12f   : > { %v8479_v56 = vadd.f32 %v6870_v60, %v1081_v18  ;;  %v1076_v22 = vadd.f32 %v1075_v42, %v8255_v11  ;;  %v6873_v17 = vpop.f32.mrf.mxu0  ;;  %7168 = vmatmul.mubr.msk.f32.gmra.mxu0 %vm308_vm1, %v3437_v40  ;;  %v3439_v11 = vld [vmem:[%s7432_s26 + $0xec] sm:$0xff] }
 0x130   : > { %v6799_v23 = vpop.f32.mrf.mxu1  ;;  %7094 = vmatmul.mubr.msk.f32.gmra.mxu1 %vm308_vm1, %v3435_v7  ;;  %7170 = vmatprep.mubr.msk.f32.mxu0 %vm308_vm1, %v3438_v25  ;;  %v3440_v7 = vld [vmem:[%s7432_s26 + $0xf4] sm:$0xff] }
 0x131   : > { %v8487_v55 = vadd.f32 %v1577_v52, %v1076_v22  ;;  %v1091_v36 = vadd.f32 %v6799_v23, %v8261_v48  ;;  %7096 = vmatprep.mubr.msk.f32.mxu1 %vm308_vm1, %v3436_v49  ;;  %v1587_v6 = vpop.f32.mrf.mxu0  ;;  %v3441_v22 = vld [vmem:[%s7432_s26 + $0xfc] sm:$0xff] }
 0x132   : > { %v1085_v60 = vpop.f32.mrf.mxu1 }
 0x133   : > { %v8494_v1 = vadd.f32 %v6873_v17, %v1091_v36  ;;  %v1086_v18 = vadd.f32 %v1085_v60, %v8277_v4  ;;  %v6876_v52 = vpop.f32.mrf.mxu0  ;;  %7171 = vmatmul.mubr.msk.f32.gmra.mxu0 %vm308_vm1, %v3439_v11  ;;  %v3442_v17 = vld [vmem:[%s7432_s26 + $0x104] sm:$0xff] }
 0x134   : > { %v6802_v42 = vpop.f32.mrf.mxu1  ;;  %7097 = vmatmul.mubr.msk.f32.gmra.mxu1 %vm308_vm1, %v3437_v40  ;;  %7173 = vmatprep.mubr.msk.f32.mxu0 %vm308_vm1, %v3440_v7 }
 0x135   : > { %v8499_v48 = vadd.f32 %v1587_v6, %v1086_v18  ;;  %v1101_v49 = vadd.f32 %v6802_v42, %v8019_v15  ;;  %7099 = vmatprep.mubr.msk.f32.mxu1 %vm308_vm1, %v3438_v25  ;;  %v1597_v4 = vpop.f32.mrf.mxu0  ;;  %v3443_v6 = vld [vmem:[%s7432_s26 + $0x10c] sm:$0xff] }
 0x136   : > { %v1095_v23 = vpop.f32.mrf.mxu1 }
 0x137   : > { %v8506_v28 = vadd.f32 %v6876_v52, %v1101_v49  ;;  %v1096_v40 = vadd.f32 %v1095_v23, %v8036_v46  ;;  %v6879_v60 = vpop.f32.mrf.mxu0  ;;  %7174 = vmatmul.mubr.msk.f32.gmra.mxu0 %vm308_vm1, %v3441_v22  ;;  %v3444_v46 = vld [vmem:[%s7432_s26 + $0x114] sm:$0xff] }
 0x138   : > { %v6805_v36 = vpop.f32.mrf.mxu1  ;;  %7100 = vmatmul.mubr.msk.f32.gmra.mxu1 %vm308_vm1, %v3439_v11  ;;  %7176 = vmatprep.mubr.msk.f32.mxu0 %vm308_vm1, %v3442_v17 }
 0x139   : > { %v8511_v15 = vadd.f32 %v1597_v4, %v1096_v40  ;;  %v1111_v25 = vadd.f32 %v6805_v36, %v8041_v39  ;;  %7102 = vmatprep.mubr.msk.f32.mxu1 %vm308_vm1, %v3440_v7  ;;  %v1607_v42 = vpop.f32.mrf.mxu0  ;;  %v3445_v4 = vld [vmem:[%s7432_s26 + $0x11c] sm:$0xff] }
 0x13a   : > { %v1105_v18 = vpop.f32.mrf.mxu1 }
 0x13b   : > { %v8518_v52 = vadd.f32 %v6879_v60, %v1111_v25  ;;  %v1106_v11 = vadd.f32 %v1105_v18, %v8058_v50  ;;  %v6882_v23 = vpop.f32.mrf.mxu0  ;;  %7177 = vmatmul.mubr.msk.f32.gmra.mxu0 %vm308_vm1, %v3443_v6  ;;  %v3446_v50 = vld [vmem:[%s7432_s26 + $0x124] sm:$0xff] }
 0x13c   : > { %v6808_v49 = vpop.f32.mrf.mxu1  ;;  %7103 = vmatmul.mubr.msk.f32.gmra.mxu1 %vm308_vm1, %v3441_v22  ;;  %7179 = vmatprep.mubr.msk.f32.mxu0 %vm308_vm1, %v3444_v46 }
 0x13d   : > { %v8523_v39 = vadd.f32 %v1607_v42, %v1106_v11  ;;  %v1121_v7 = vadd.f32 %v6808_v49, %v8063_v63  ;;  %7105 = vmatprep.mubr.msk.f32.mxu1 %vm308_vm1, %v3442_v17  ;;  %v1617_v36 = vpop.f32.mrf.mxu0  ;;  %v3447_v42 = vld [vmem:[%s7432_s26 + $0x12c] sm:$0xff] }
 0x13e   : > { %v1115_v40 = vpop.f32.mrf.mxu1 }
 0x13f   : > { %v8530_v60 = vadd.f32 %v6882_v23, %v1121_v7  ;;  %v1116_v22 = vadd.f32 %v1115_v40, %v8080_v54  ;;  %v6885_v18 = vpop.f32.mrf.mxu0  ;;  %7180 = vmatmul.mubr.msk.f32.gmra.mxu0 %vm308_vm1, %v3445_v4  ;;  %v3448_v54 = vld [vmem:[%s7432_s26 + $0x134] sm:$0xff] }
 0x140   : > { %v6811_v25 = vpop.f32.mrf.mxu1  ;;  %7106 = vmatmul.mubr.msk.f32.gmra.mxu1 %vm308_vm1, %v3443_v6  ;;  %7182 = vmatprep.mubr.msk.f32.mxu0 %vm308_vm1, %v3446_v50 }
 0x141   : > { %v8535_v63 = vadd.f32 %v1617_v36, %v1116_v22  ;;  %v1131_v17 = vadd.f32 %v6811_v25, %v8085_v2  ;;  %7108 = vmatprep.mubr.msk.f32.mxu1 %vm308_vm1, %v3444_v46  ;;  %v1627_v49 = vpop.f32.mrf.mxu0  ;;  %v3449_v36 = vld [vmem:[%s7432_s26 + $0x13c] sm:$0xff] }
 0x142   : > { %v1125_v11 = vpop.f32.mrf.mxu1 }
 0x143   : > { %v8542_v23 = vadd.f32 %v6885_v18, %v1131_v17  ;;  %v1126_v6 = vadd.f32 %v1125_v11, %v8102_v61  ;;  %v6888_v40 = vpop.f32.mrf.mxu0  ;;  %7183 = vmatmul.mubr.msk.f32.gmra.mxu0 %vm308_vm1, %v3447_v42  ;;  %v3450_v61 = vld [vmem:[%s7432_s26 + $0x144] sm:$0xff] }
 0x144   : > { %v6814_v7 = vpop.f32.mrf.mxu1  ;;  %7109 = vmatmul.mubr.msk.f32.gmra.mxu1 %vm308_vm1, %v3445_v4  ;;  %7185 = vmatprep.mubr.msk.f32.mxu0 %vm308_vm1, %v3448_v54 }
 0x145   : > { %v8547_v2 = vadd.f32 %v1627_v49, %v1126_v6  ;;  %v1141_v46 = vadd.f32 %v6814_v7, %v8107_v14  ;;  %7111 = vmatprep.mubr.msk.f32.mxu1 %vm308_vm1, %v3446_v50  ;;  %v1637_v25 = vpop.f32.mrf.mxu0  ;;  %v3451_v49 = vld [vmem:[%s7432_s26 + $0x14c] sm:$0xff] }
 0x146   : > { %v1135_v22 = vpop.f32.mrf.mxu1 }
 0x147   : > { %v8554_v18 = vadd.f32 %v6888_v40, %v1141_v46  ;;  %v1136_v4 = vadd.f32 %v1135_v22, %v8124_v5  ;;  %v6891_v11 = vpop.f32.mrf.mxu0  ;;  %7186 = vmatmul.mubr.msk.f32.gmra.mxu0 %vm308_vm1, %v3449_v36  ;;  %v3452_v5 = vld [vmem:[%s7432_s26 + $0x154] sm:$0xff] }
 0x148   : > { %v6817_v17 = vpop.f32.mrf.mxu1  ;;  %7112 = vmatmul.mubr.msk.f32.gmra.mxu1 %vm308_vm1, %v3447_v42  ;;  %7188 = vmatprep.mubr.msk.f32.mxu0 %vm308_vm1, %v3450_v61 }
 0x149   : > { %v8559_v14 = vadd.f32 %v1637_v25, %v1136_v4  ;;  %v1151_v50 = vadd.f32 %v6817_v17, %v8129_v26  ;;  %7114 = vmatprep.mubr.msk.f32.mxu1 %vm308_vm1, %v3448_v54  ;;  %v1647_v7 = vpop.f32.mrf.mxu0  ;;  %v3453_v25 = vld [vmem:[%s7432_s26 + $0x15c] sm:$0xff] }
 0x14a   : > { %v1145_v6 = vpop.f32.mrf.mxu1 }
 0x14b   : > { %v8566_v40 = vadd.f32 %v6891_v11, %v1151_v50  ;;  %v1146_v42 = vadd.f32 %v1145_v6, %v8146_v13  ;;  %v6894_v22 = vpop.f32.mrf.mxu0  ;;  %7189 = vmatmul.mubr.msk.f32.gmra.mxu0 %vm308_vm1, %v3451_v49  ;;  %v3454_v13 = vld [vmem:[%s7432_s26 + $0x164] sm:$0xff] }
 0x14c   : > { %v6820_v46 = vpop.f32.mrf.mxu1  ;;  %7115 = vmatmul.mubr.msk.f32.gmra.mxu1 %vm308_vm1, %v3449_v36  ;;  %7191 = vmatprep.mubr.msk.f32.mxu0 %vm308_vm1, %v3452_v5 }
 0x14d   : > { %v8571_v26 = vadd.f32 %v1647_v7, %v1146_v42  ;;  %v1161_v54 = vadd.f32 %v6820_v46, %v8151_v38  ;;  %7117 = vmatprep.mubr.msk.f32.mxu1 %vm308_vm1, %v3450_v61  ;;  %v1657_v17 = vpop.f32.mrf.mxu0  ;;  %v3455_v7 = vld [vmem:[%s7432_s26 + $0x16c] sm:$0xff] }
 0x14e   : > { %v1155_v4 = vpop.f32.mrf.mxu1 }
 0x14f   : > { %v8578_v11 = vadd.f32 %v6894_v22, %v1161_v54  ;;  %v1156_v36 = vadd.f32 %v1155_v4, %v8168_v21  ;;  %v6897_v6 = vpop.f32.mrf.mxu0  ;;  %7192 = vmatmul.mubr.msk.f32.gmra.mxu0 %vm308_vm1, %v3453_v25  ;;  %v3456_v21 = vld [vmem:[%s7432_s26 + $0x174] sm:$0xff] }
 0x150   : > { %v6823_v50 = vpop.f32.mrf.mxu1  ;;  %7118 = vmatmul.mubr.msk.f32.gmra.mxu1 %vm308_vm1, %v3451_v49  ;;  %7194 = vmatprep.mubr.msk.f32.mxu0 %vm308_vm1, %v3454_v13 }
 0x151   : > { %v8583_v38 = vadd.f32 %v1657_v17, %v1156_v36  ;;  %v1171_v61 = vadd.f32 %v6823_v50, %v8173_v31  ;;  %7120 = vmatprep.mubr.msk.f32.mxu1 %vm308_vm1, %v3452_v5  ;;  %v1667_v46 = vpop.f32.mrf.mxu0  ;;  %v3457_v17 = vld [vmem:[%s7432_s26 + $0x17c] sm:$0xff] }
 0x152   : > { %v1165_v42 = vpop.f32.mrf.mxu1 }
 0x153   : > { %v8590_v22 = vadd.f32 %v6897_v6, %v1171_v61  ;;  %v1166_v49 = vadd.f32 %v1165_v42, %v8190_v29  ;;  %v6900_v4 = vpop.f32.mrf.mxu0  ;;  %7195 = vmatmul.mubr.msk.f32.gmra.mxu0 %vm308_vm1, %v3455_v7  ;;  %v3458_v29 = vld [vmem:[%s7432_s26 + $0x184] sm:$0xff] }
 0x154   : > { %v6826_v54 = vpop.f32.mrf.mxu1  ;;  %7121 = vmatmul.mubr.msk.f32.gmra.mxu1 %vm308_vm1, %v3453_v25  ;;  %7197 = vmatprep.mubr.msk.f32.mxu0 %vm308_vm1, %v3456_v21 }
 0x155   : > { %v8595_v31 = vadd.f32 %v1667_v46, %v1166_v49  ;;  %v1181_v5 = vadd.f32 %v6826_v54, %v8195_v62  ;;  %7123 = vmatprep.mubr.msk.f32.mxu1 %vm308_vm1, %v3454_v13  ;;  %v1677_v50 = vpop.f32.mrf.mxu0  ;;  %v3459_v46 = vld [vmem:[%s7432_s26 + $0x18c] sm:$0xff] }
 0x156   : > { %v1175_v36 = vpop.f32.mrf.mxu1 }
 0x157   : > { %v8602_v6 = vadd.f32 %v6900_v4, %v1181_v5  ;;  %v1176_v25 = vadd.f32 %v1175_v36, %v8212_v37  ;;  %v6903_v42 = vpop.f32.mrf.mxu0  ;;  %7198 = vmatmul.mubr.msk.f32.gmra.mxu0 %vm308_vm1, %v3457_v17  ;;  %v3460_v37 = vld [vmem:[%s7432_s26 + $0x194] sm:$0xff] }
 0x158   : > { %v6829_v61 = vpop.f32.mrf.mxu1  ;;  %7124 = vmatmul.mubr.msk.f32.gmra.mxu1 %vm308_vm1, %v3455_v7  ;;  %7200 = vmatprep.mubr.msk.f32.mxu0 %vm308_vm1, %v3458_v29 }
 0x159   : > { %v8607_v62 = vadd.f32 %v1677_v50, %v1176_v25  ;;  %v1191_v13 = vadd.f32 %v6829_v61, %v8217_v10  ;;  %7126 = vmatprep.mubr.msk.f32.mxu1 %vm308_vm1, %v3456_v21  ;;  %v1687_v54 = vpop.f32.mrf.mxu0  ;;  %v3461_v50 = vld [vmem:[%s7432_s26 + $0x19c] sm:$0xff] }
 0x15a   : > { %v1185_v49 = vpop.f32.mrf.mxu1 }
 0x15b   : > { %v8614_v4 = vadd.f32 %v6903_v42, %v1191_v13  ;;  %v1186_v7 = vadd.f32 %v1185_v49, %v8234_v45  ;;  %v6906_v36 = vpop.f32.mrf.mxu0  ;;  %7201 = vmatmul.mubr.msk.f32.gmra.mxu0 %vm308_vm1, %v3459_v46  ;;  %v3964_v45 = vld [vmem:[%s7432_s26 + $0x25] sm:$0xff] }
 0x15c   : > { %v6832_v5 = vpop.f32.mrf.mxu1  ;;  %7127 = vmatmul.mubr.msk.f32.gmra.mxu1 %vm308_vm1, %v3457_v17  ;;  %7203 = vmatprep.mubr.msk.f32.mxu0 %vm308_vm1, %v3460_v37  ;;  %v4514_v42 = vld [vmem:[%s7432_s26 + $0x26] sm:$0xff] }
 0x15d   : > { %v8619_v10 = vadd.f32 %v1687_v54, %v1186_v7  ;;  %v1201_v21 = vadd.f32 %v6832_v5, %v8240_v30  ;;  %7129 = vmatprep.mubr.msk.f32.mxu1 %vm308_vm1, %v3458_v29  ;;  %v1697_v61 = vpop.f32.mrf.mxu0  ;;  %v3965_v37 = vld [vmem:[%s7432_s26 + $0x2d] sm:$0xff] }
 0x15e   : > { %v1195_v25 = vpop.f32.mrf.mxu1  ;;  %v4515_v7 = vld [vmem:[%s7432_s26 + $0x2e] sm:$0xff] }
 0x15f   : > { %v8627_v17 = vadd.f32 %v6906_v36, %v1201_v21  ;;  %v1196_v13 = vadd.f32 %v1195_v25, %v8257_v53  ;;  %v6909_v54 = vpop.f32.mrf.mxu0  ;;  %7204 = vmatmul.mubr.msk.f32.gmra.mxu0 %vm308_vm1, %v3461_v50  ;;  %v3966_v36 = vld [vmem:[%s7432_s26 + $0x35] sm:$0xff] }
 0x160   : > { %v6835_v49 = vpop.f32.mrf.mxu1  ;;  %7130 = vmatmul.mubr.msk.f32.gmra.mxu1 %vm308_vm1, %v3459_v46  ;;  %7282 = vmatprep.mubr.msk.f32.mxu0 %vm308_vm1, %v4514_v42  ;;  %v4516_v21 = vld [vmem:[%s7432_s26 + $0x36] sm:$0xff] }
 0x161   : > { %v8632_v30 = vadd.f32 %v1697_v61, %v1196_v13  ;;  %v1211_v29 = vadd.f32 %v6835_v49, %v8263_v43  ;;  %7208 = vmatprep.mubr.msk.f32.mxu1 %vm308_vm1, %v3964_v45  ;;  %v1707_v53 = vpop.f32.mrf.mxu0  ;;  %v3967_v42 = vld [vmem:[%s7432_s26 + $0x3d] sm:$0xff] }
 0x162   : > { %v1205_v5 = vpop.f32.mrf.mxu1  ;;  %v4517_v13 = vld [vmem:[%s7432_s26 + $0x3e] sm:$0xff] }
 0x163   : > { %v8641_v46 = vadd.f32 %v6909_v54, %v1211_v29  ;;  %v1206_v50 = vadd.f32 %v1205_v5, %v8279_v41  ;;  %v6988_v43 = vpop.f32.mrf.mxu0  ;;  %7283 = vmatmul.mubr.msk.f32.vlgmr.msra.gmra.mxu0 %vm308_vm1, %v4515_v7  ;;  %v3968_v54 = vld [vmem:[%s7432_s26 + $0x45] sm:$0xff] }
 0x164   : > { %v6914_v25 = vpop.f32.mrf.mxu1  ;;  %7209 = vmatmul.mubr.msk.f32.vlgmr.msra.gmra.mxu1 %vm308_vm1, %v3965_v37  ;;  %7285 = vmatprep.mubr.msk.f32.mxu0 %vm308_vm1, %v4516_v21  ;;  %v4518_v29 = vld [vmem:[%s7432_s26 + $0x46] sm:$0xff] }
 0x165   : > { %v8646_v61 = vadd.f32 %v1707_v53, %v1206_v50  ;;  %v2267_v45 = vadd.f32 %v6914_v25, %v8299_v33  ;;  %7211 = vmatprep.mubr.msk.f32.mxu1 %vm308_vm1, %v3966_v36  ;;  %v2577_v41 = vpop.f32.mrf.mxu0  ;;  %v3969_v21 = vld [vmem:[%s7432_s26 + $0x4d] sm:$0xff] }
 0x166   : > { %v2027_v49 = vpop.f32.mrf.mxu1  ;;  %v4519_v50 = vld [vmem:[%s7432_s26 + $0x4e] sm:$0xff] }
 0x167   : > { %v8655_v37 = vadd.f32 %v6988_v43, %v2267_v45  ;;  %v2266_v7 = vadd.f32 %v2027_v49, %v8310_v16  ;;  %v6991_v33 = vpop.f32.mrf.mxu0  ;;  %7286 = vmatmul.mubr.msk.f32.gmra.mxu0 %vm308_vm1, %v4517_v13  ;;  %v3970_v43 = vld [vmem:[%s7432_s26 + $0x55] sm:$0xff] }
 0x168   : > { %v6917_v5 = vpop.f32.mrf.mxu1  ;;  %7212 = vmatmul.mubr.msk.f32.gmra.mxu1 %vm308_vm1, %v3967_v42  ;;  %7288 = vmatprep.mubr.msk.f32.mxu0 %vm308_vm1, %v4518_v29  ;;  %v4520_v45 = vld [vmem:[%s7432_s26 + $0x56] sm:$0xff] }
 0x169   : > { %v8660_v53 = vadd.f32 %v2577_v41, %v2266_v7  ;;  %v2269_v36 = vadd.f32 %v6917_v5, %v8317_v34  ;;  %7214 = vmatprep.mubr.msk.f32.mxu1 %vm308_vm1, %v3968_v54  ;;  %v2587_v16 = vpop.f32.mrf.mxu0  ;;  %v3971_v29 = vld [vmem:[%s7432_s26 + $0x5d] sm:$0xff] }
 0x16a   : > { %v2037_v25 = vpop.f32.mrf.mxu1  ;;  %v4521_v7 = vld [vmem:[%s7432_s26 + $0x5e] sm:$0xff] }
 0x16b   : > { %v8669_v42 = vadd.f32 %v6991_v33, %v2269_v36  ;;  %v2268_v13 = vadd.f32 %v2037_v25, %v8328_v3  ;;  %v6994_v34 = vpop.f32.mrf.mxu0  ;;  %7289 = vmatmul.mubr.msk.f32.gmra.mxu0 %vm308_vm1, %v4519_v50  ;;  %v3972_v33 = vld [vmem:[%s7432_s26 + $0x65] sm:$0xff] }
 0x16c   : > { %v6920_v49 = vpop.f32.mrf.mxu1  ;;  %7215 = vmatmul.mubr.msk.f32.gmra.mxu1 %vm308_vm1, %v3969_v21  ;;  %7291 = vmatprep.mubr.msk.f32.mxu0 %vm308_vm1, %v4520_v45  ;;  %v4522_v36 = vld [vmem:[%s7432_s26 + $0x66] sm:$0xff] }
 0x16d   : > { %v8674_v41 = vadd.f32 %v2587_v16, %v2268_v13  ;;  %v2271_v54 = vadd.f32 %v6920_v49, %v8335_v27  ;;  %7217 = vmatprep.mubr.msk.f32.mxu1 %vm308_vm1, %v3970_v43  ;;  %v2597_v3 = vpop.f32.mrf.mxu0  ;;  %v3973_v45 = vld [vmem:[%s7432_s26 + $0x6d] sm:$0xff] }
 0x16e   : > { %v2047_v5 = vpop.f32.mrf.mxu1  ;;  %v4523_v13 = vld [vmem:[%s7432_s26 + $0x6e] sm:$0xff] }
 0x16f   : > { %v8683_v21 = vadd.f32 %v6994_v34, %v2271_v54  ;;  %v2270_v50 = vadd.f32 %v2047_v5, %v8346_v19  ;;  %v6997_v27 = vpop.f32.mrf.mxu0  ;;  %7292 = vmatmul.mubr.msk.f32.gmra.mxu0 %vm308_vm1, %v4521_v7  ;;  %v3974_v34 = vld [vmem:[%s7432_s26 + $0x75] sm:$0xff] }
 0x170   : > { %v6923_v25 = vpop.f32.mrf.mxu1  ;;  %7218 = vmatmul.mubr.msk.f32.gmra.mxu1 %vm308_vm1, %v3971_v29  ;;  %7294 = vmatprep.mubr.msk.f32.mxu0 %vm308_vm1, %v4522_v36  ;;  %v4524_v54 = vld [vmem:[%s7432_s26 + $0x76] sm:$0xff] }
 0x171   : > { %v8688_v16 = vadd.f32 %v2597_v3, %v2270_v50  ;;  %v2273_v43 = vadd.f32 %v6923_v25, %v8353_v51  ;;  %7220 = vmatprep.mubr.msk.f32.mxu1 %vm308_vm1, %v3972_v33  ;;  %v2607_v19 = vpop.f32.mrf.mxu0  ;;  %v3975_v36 = vld [vmem:[%s7432_s26 + $0x7d] sm:$0xff] }
 0x172   : > { %v2057_v49 = vpop.f32.mrf.mxu1  ;;  %v4525_v50 = vld [vmem:[%s7432_s26 + $0x7e] sm:$0xff] }
 0x173   : > { %v8697_v29 = vadd.f32 %v6997_v27, %v2273_v43  ;;  %v2272_v7 = vadd.f32 %v2057_v49, %v8364_v9  ;;  %v7000_v51 = vpop.f32.mrf.mxu0  ;;  %7295 = vmatmul.mubr.msk.f32.gmra.mxu0 %vm308_vm1, %v4523_v13  ;;  %v3976_v27 = vld [vmem:[%s7432_s26 + $0x85] sm:$0xff] }
 0x174   : > { %v6926_v5 = vpop.f32.mrf.mxu1  ;;  %7221 = vmatmul.mubr.msk.f32.gmra.mxu1 %vm308_vm1, %v3973_v45  ;;  %7297 = vmatprep.mubr.msk.f32.mxu0 %vm308_vm1, %v4524_v54  ;;  %v4526_v43 = vld [vmem:[%s7432_s26 + $0x86] sm:$0xff] }
 0x175   : > { %v8702_v3 = vadd.f32 %v2607_v19, %v2272_v7  ;;  %v2275_v33 = vadd.f32 %v6926_v5, %v8371_v59  ;;  %7223 = vmatprep.mubr.msk.f32.mxu1 %vm308_vm1, %v3974_v34  ;;  %v2617_v9 = vpop.f32.mrf.mxu0  ;;  %v3977_v54 = vld [vmem:[%s7432_s26 + $0x8d] sm:$0xff] }
 0x176   : > { %v2067_v25 = vpop.f32.mrf.mxu1  ;;  %v4527_v7 = vld [vmem:[%s7432_s26 + $0x8e] sm:$0xff] }
 0x177   : > { %v8711_v45 = vadd.f32 %v7000_v51, %v2275_v33  ;;  %v2274_v13 = vadd.f32 %v2067_v25, %v8382_v58  ;;  %v7003_v59 = vpop.f32.mrf.mxu0  ;;  %7298 = vmatmul.mubr.msk.f32.gmra.mxu0 %vm308_vm1, %v4525_v50  ;;  %v3978_v51 = vld [vmem:[%s7432_s26 + $0x95] sm:$0xff] }
 0x178   : > { %v6929_v49 = vpop.f32.mrf.mxu1  ;;  %7224 = vmatmul.mubr.msk.f32.gmra.mxu1 %vm308_vm1, %v3975_v36  ;;  %7300 = vmatprep.mubr.msk.f32.mxu0 %vm308_vm1, %v4526_v43  ;;  %v4528_v33 = vld [vmem:[%s7432_s26 + $0x96] sm:$0xff] }
 0x179   : > { %v8716_v19 = vadd.f32 %v2617_v9, %v2274_v13  ;;  %v2277_v34 = vadd.f32 %v6929_v49, %v8389_v8  ;;  %7226 = vmatprep.mubr.msk.f32.mxu1 %vm308_vm1, %v3976_v27  ;;  %v2627_v58 = vpop.f32.mrf.mxu0  ;;  %v3979_v43 = vld [vmem:[%s7432_s26 + $0x9d] sm:$0xff] }
 0x17a   : > { %v2077_v5 = vpop.f32.mrf.mxu1  ;;  %v4529_v13 = vld [vmem:[%s7432_s26 + $0x9e] sm:$0xff] }
 0x17b   : > { %v8725_v36 = vadd.f32 %v7003_v59, %v2277_v34  ;;  %v2276_v50 = vadd.f32 %v2077_v5, %v8400_v35  ;;  %v7006_v8 = vpop.f32.mrf.mxu0  ;;  %7301 = vmatmul.mubr.msk.f32.gmra.mxu0 %vm308_vm1, %v4527_v7  ;;  %v3980_v59 = vld [vmem:[%s7432_s26 + $0xa5] sm:$0xff] }
 0x17c   : > { %v6932_v25 = vpop.f32.mrf.mxu1  ;;  %7227 = vmatmul.mubr.msk.f32.gmra.mxu1 %vm308_vm1, %v3977_v54  ;;  %7303 = vmatprep.mubr.msk.f32.mxu0 %vm308_vm1, %v4528_v33  ;;  %v4530_v34 = vld [vmem:[%s7432_s26 + $0xa6] sm:$0xff] }
 0x17d   : > { %v8730_v9 = vadd.f32 %v2627_v58, %v2276_v50  ;;  %v2279_v27 = vadd.f32 %v6932_v25, %v8407_v20  ;;  %7229 = vmatprep.mubr.msk.f32.mxu1 %vm308_vm1, %v3978_v51  ;;  %v2637_v35 = vpop.f32.mrf.mxu0  ;;  %v3981_v33 = vld [vmem:[%s7432_s26 + $0xad] sm:$0xff] }
 0x17e   : > { %v2087_v49 = vpop.f32.mrf.mxu1  ;;  %v4531_v50 = vld [vmem:[%s7432_s26 + $0xae] sm:$0xff] }
 0x17f   : > { %v8739_v54 = vadd.f32 %v7006_v8, %v2279_v27  ;;  %v2278_v7 = vadd.f32 %v2087_v49, %v8418_v57  ;;  %v7009_v20 = vpop.f32.mrf.mxu0  ;;  %7304 = vmatmul.mubr.msk.f32.gmra.mxu0 %vm308_vm1, %v4529_v13  ;;  %v3982_v8 = vld [vmem:[%s7432_s26 + $0xb5] sm:$0xff] }
 0x180   : > { %v6935_v5 = vpop.f32.mrf.mxu1  ;;  %7230 = vmatmul.mubr.msk.f32.gmra.mxu1 %vm308_vm1, %v3979_v43  ;;  %7306 = vmatprep.mubr.msk.f32.mxu0 %vm308_vm1, %v4530_v34  ;;  %v4532_v27 = vld [vmem:[%s7432_s26 + $0xb6] sm:$0xff] }
 0x181   : > { %v8744_v58 = vadd.f32 %v2637_v35, %v2278_v7  ;;  %v2281_v51 = vadd.f32 %v6935_v5, %v8425_v32  ;;  %7232 = vmatprep.mubr.msk.f32.mxu1 %vm308_vm1, %v3980_v59  ;;  %v2647_v57 = vpop.f32.mrf.mxu0  ;;  %v3983_v34 = vld [vmem:[%s7432_s26 + $0xbd] sm:$0xff] }
 0x182   : > { %v2097_v25 = vpop.f32.mrf.mxu1  ;;  %v4533_v7 = vld [vmem:[%s7432_s26 + $0xbe] sm:$0xff] }
 0x183   : > { %v8753_v43 = vadd.f32 %v7009_v20, %v2281_v51  ;;  %v2280_v13 = vadd.f32 %v2097_v25, %v8436_v0  ;;  %v7012_v32 = vpop.f32.mrf.mxu0  ;;  %7307 = vmatmul.mubr.msk.f32.gmra.mxu0 %vm308_vm1, %v4531_v50  ;;  %v3984_v20 = vld [vmem:[%s7432_s26 + $0xc5] sm:$0xff] }
 0x184   : > { %v6938_v49 = vpop.f32.mrf.mxu1  ;;  %7233 = vmatmul.mubr.msk.f32.gmra.mxu1 %vm308_vm1, %v3981_v33  ;;  %7309 = vmatprep.mubr.msk.f32.mxu0 %vm308_vm1, %v4532_v27  ;;  %v4534_v51 = vld [vmem:[%s7432_s26 + $0xc6] sm:$0xff] }
 0x185   : > { %v8758_v35 = vadd.f32 %v2647_v57, %v2280_v13  ;;  %v2283_v59 = vadd.f32 %v6938_v49, %v8443_v44  ;;  %7235 = vmatprep.mubr.msk.f32.mxu1 %vm308_vm1, %v3982_v8  ;;  %v2657_v0 = vpop.f32.mrf.mxu0  ;;  %v3985_v27 = vld [vmem:[%s7432_s26 + $0xcd] sm:$0xff] }
 0x186   : > { %v2107_v5 = vpop.f32.mrf.mxu1  ;;  %v4535_v13 = vld [vmem:[%s7432_s26 + $0xce] sm:$0xff] }
 0x187   : > { %v8767_v33 = vadd.f32 %v7012_v32, %v2283_v59  ;;  %v2282_v50 = vadd.f32 %v2107_v5, %v8454_v12  ;;  %v7015_v44 = vpop.f32.mrf.mxu0  ;;  %7310 = vmatmul.mubr.msk.f32.gmra.mxu0 %vm308_vm1, %v4533_v7  ;;  %v3986_v32 = vld [vmem:[%s7432_s26 + $0xd5] sm:$0xff] }
 0x188   : > { %v6941_v25 = vpop.f32.mrf.mxu1  ;;  %7236 = vmatmul.mubr.msk.f32.gmra.mxu1 %vm308_vm1, %v3983_v34  ;;  %7312 = vmatprep.mubr.msk.f32.mxu0 %vm308_vm1, %v4534_v51  ;;  %v4536_v59 = vld [vmem:[%s7432_s26 + $0xd6] sm:$0xff] }
 0x189   : > { %v8772_v57 = vadd.f32 %v2657_v0, %v2282_v50  ;;  %v2285_v8 = vadd.f32 %v6941_v25, %v8461_v47  ;;  %7238 = vmatprep.mubr.msk.f32.mxu1 %vm308_vm1, %v3984_v20  ;;  %v2667_v12 = vpop.f32.mrf.mxu0  ;;  %v3987_v51 = vld [vmem:[%s7432_s26 + $0xdd] sm:$0xff] }
 0x18a   : > { %v2117_v49 = vpop.f32.mrf.mxu1  ;;  %v4537_v50 = vld [vmem:[%s7432_s26 + $0xde] sm:$0xff] }
 0x18b   : > { %v8781_v34 = vadd.f32 %v7015_v44, %v2285_v8  ;;  %v2284_v7 = vadd.f32 %v2117_v49, %v8472_v24  ;;  %v7018_v47 = vpop.f32.mrf.mxu0  ;;  %7313 = vmatmul.mubr.msk.f32.gmra.mxu0 %vm308_vm1, %v4535_v13  ;;  %v3988_v44 = vld [vmem:[%s7432_s26 + $0xe5] sm:$0xff] }
 0x18c   : > { %v6944_v5 = vpop.f32.mrf.mxu1  ;;  %7239 = vmatmul.mubr.msk.f32.gmra.mxu1 %vm308_vm1, %v3985_v27  ;;  %7315 = vmatprep.mubr.msk.f32.mxu0 %vm308_vm1, %v4536_v59  ;;  %v4538_v8 = vld [vmem:[%s7432_s26 + $0xe6] sm:$0xff] }
 0x18d   : > { %v8786_v0 = vadd.f32 %v2667_v12, %v2284_v7  ;;  %v2287_v20 = vadd.f32 %v6944_v5, %v8479_v56  ;;  %7241 = vmatprep.mubr.msk.f32.mxu1 %vm308_vm1, %v3986_v32  ;;  %v2677_v24 = vpop.f32.mrf.mxu0  ;;  %v3989_v59 = vld [vmem:[%s7432_s26 + $0xed] sm:$0xff] }
 0x18e   : > { %v2127_v25 = vpop.f32.mrf.mxu1  ;;  %v4539_v7 = vld [vmem:[%s7432_s26 + $0xee] sm:$0xff] }
 0x18f   : > { %v8795_v27 = vadd.f32 %v7018_v47, %v2287_v20  ;;  %v2286_v13 = vadd.f32 %v2127_v25, %v8487_v55  ;;  %v7021_v56 = vpop.f32.mrf.mxu0  ;;  %7316 = vmatmul.mubr.msk.f32.gmra.mxu0 %vm308_vm1, %v4537_v50  ;;  %v3990_v47 = vld [vmem:[%s7432_s26 + $0xf5] sm:$0xff] }
 0x190   : > { %v6947_v49 = vpop.f32.mrf.mxu1  ;;  %7242 = vmatmul.mubr.msk.f32.gmra.mxu1 %vm308_vm1, %v3987_v51  ;;  %7318 = vmatprep.mubr.msk.f32.mxu0 %vm308_vm1, %v4538_v8  ;;  %v4540_v20 = vld [vmem:[%s7432_s26 + $0xf6] sm:$0xff] }
 0x191   : > { %v8800_v12 = vadd.f32 %v2677_v24, %v2286_v13  ;;  %v2289_v32 = vadd.f32 %v6947_v49, %v8494_v1  ;;  %7244 = vmatprep.mubr.msk.f32.mxu1 %vm308_vm1, %v3988_v44  ;;  %v2687_v55 = vpop.f32.mrf.mxu0  ;;  %v3991_v8 = vld [vmem:[%s7432_s26 + $0xfd] sm:$0xff] }
 0x192   : > { %v2137_v5 = vpop.f32.mrf.mxu1  ;;  %v4541_v13 = vld [vmem:[%s7432_s26 + $0xfe] sm:$0xff] }
 0x193   : > { %v8809_v51 = vadd.f32 %v7021_v56, %v2289_v32  ;;  %v2288_v50 = vadd.f32 %v2137_v5, %v8499_v48  ;;  %v7024_v1 = vpop.f32.mrf.mxu0  ;;  %7319 = vmatmul.mubr.msk.f32.gmra.mxu0 %vm308_vm1, %v4539_v7  ;;  %v3992_v56 = vld [vmem:[%s7432_s26 + $0x105] sm:$0xff] }
 0x194   : > { %v6950_v25 = vpop.f32.mrf.mxu1  ;;  %7245 = vmatmul.mubr.msk.f32.gmra.mxu1 %vm308_vm1, %v3989_v59  ;;  %7321 = vmatprep.mubr.msk.f32.mxu0 %vm308_vm1, %v4540_v20  ;;  %v4542_v32 = vld [vmem:[%s7432_s26 + $0x106] sm:$0xff] }
 0x195   : > { %v8814_v24 = vadd.f32 %v2687_v55, %v2288_v50  ;;  %v2291_v44 = vadd.f32 %v6950_v25, %v8506_v28  ;;  %7247 = vmatprep.mubr.msk.f32.mxu1 %vm308_vm1, %v3990_v47  ;;  %v2697_v48 = vpop.f32.mrf.mxu0  ;;  %v3993_v20 = vld [vmem:[%s7432_s26 + $0x10d] sm:$0xff] }
 0x196   : > { %v2147_v49 = vpop.f32.mrf.mxu1  ;;  %v4543_v50 = vld [vmem:[%s7432_s26 + $0x10e] sm:$0xff] }
 0x197   : > { %v8823_v59 = vadd.f32 %v7024_v1, %v2291_v44  ;;  %v2290_v7 = vadd.f32 %v2147_v49, %v8511_v15  ;;  %v7027_v28 = vpop.f32.mrf.mxu0  ;;  %7322 = vmatmul.mubr.msk.f32.gmra.mxu0 %vm308_vm1, %v4541_v13  ;;  %v3994_v1 = vld [vmem:[%s7432_s26 + $0x115] sm:$0xff] }
 0x198   : > { %v6953_v5 = vpop.f32.mrf.mxu1  ;;  %7248 = vmatmul.mubr.msk.f32.gmra.mxu1 %vm308_vm1, %v3991_v8  ;;  %7324 = vmatprep.mubr.msk.f32.mxu0 %vm308_vm1, %v4542_v32  ;;  %v4544_v44 = vld [vmem:[%s7432_s26 + $0x116] sm:$0xff] }
 0x199   : > { %v8828_v55 = vadd.f32 %v2697_v48, %v2290_v7  ;;  %v2293_v47 = vadd.f32 %v6953_v5, %v8518_v52  ;;  %7250 = vmatprep.mubr.msk.f32.mxu1 %vm308_vm1, %v3992_v56  ;;  %v2707_v15 = vpop.f32.mrf.mxu0  ;;  %v3995_v32 = vld [vmem:[%s7432_s26 + $0x11d] sm:$0xff] }
 0x19a   : > { %v2157_v25 = vpop.f32.mrf.mxu1  ;;  %v4545_v7 = vld [vmem:[%s7432_s26 + $0x11e] sm:$0xff] }
 0x19b   : > { %v8837_v8 = vadd.f32 %v7027_v28, %v2293_v47  ;;  %v2292_v13 = vadd.f32 %v2157_v25, %v8523_v39  ;;  %v7030_v52 = vpop.f32.mrf.mxu0  ;;  %7325 = vmatmul.mubr.msk.f32.gmra.mxu0 %vm308_vm1, %v4543_v50  ;;  %v3996_v28 = vld [vmem:[%s7432_s26 + $0x125] sm:$0xff] }
 0x19c   : > { %v6956_v49 = vpop.f32.mrf.mxu1  ;;  %7251 = vmatmul.mubr.msk.f32.gmra.mxu1 %vm308_vm1, %v3993_v20  ;;  %7327 = vmatprep.mubr.msk.f32.mxu0 %vm308_vm1, %v4544_v44  ;;  %v4546_v47 = vld [vmem:[%s7432_s26 + $0x126] sm:$0xff] }
 0x19d   : > { %v8842_v48 = vadd.f32 %v2707_v15, %v2292_v13  ;;  %v2295_v56 = vadd.f32 %v6956_v49, %v8530_v60  ;;  %7253 = vmatprep.mubr.msk.f32.mxu1 %vm308_vm1, %v3994_v1  ;;  %v2717_v39 = vpop.f32.mrf.mxu0  ;;  %v3997_v44 = vld [vmem:[%s7432_s26 + $0x12d] sm:$0xff] }
 0x19e   : > { %v2167_v5 = vpop.f32.mrf.mxu1  ;;  %v4547_v13 = vld [vmem:[%s7432_s26 + $0x12e] sm:$0xff] }
 0x19f   : > { %v8851_v20 = vadd.f32 %v7030_v52, %v2295_v56  ;;  %v2294_v50 = vadd.f32 %v2167_v5, %v8535_v63  ;;  %v7033_v60 = vpop.f32.mrf.mxu0  ;;  %7328 = vmatmul.mubr.msk.f32.gmra.mxu0 %vm308_vm1, %v4545_v7  ;;  %v3998_v52 = vld [vmem:[%s7432_s26 + $0x135] sm:$0xff] }
 0x1a0   : > { %v6959_v25 = vpop.f32.mrf.mxu1  ;;  %7254 = vmatmul.mubr.msk.f32.gmra.mxu1 %vm308_vm1, %v3995_v32  ;;  %7330 = vmatprep.mubr.msk.f32.mxu0 %vm308_vm1, %v4546_v47  ;;  %v4548_v56 = vld [vmem:[%s7432_s26 + $0x136] sm:$0xff] }
 0x1a1   : > { %v8856_v15 = vadd.f32 %v2717_v39, %v2294_v50  ;;  %v2297_v1 = vadd.f32 %v6959_v25, %v8542_v23  ;;  %7256 = vmatprep.mubr.msk.f32.mxu1 %vm308_vm1, %v3996_v28  ;;  %v2727_v63 = vpop.f32.mrf.mxu0  ;;  %v3999_v47 = vld [vmem:[%s7432_s26 + $0x13d] sm:$0xff] }
 0x1a2   : > { %v2177_v49 = vpop.f32.mrf.mxu1  ;;  %v4549_v50 = vld [vmem:[%s7432_s26 + $0x13e] sm:$0xff] }
 0x1a3   : > { %v8865_v32 = vadd.f32 %v7033_v60, %v2297_v1  ;;  %v2296_v7 = vadd.f32 %v2177_v49, %v8547_v2  ;;  %v7036_v23 = vpop.f32.mrf.mxu0  ;;  %7331 = vmatmul.mubr.msk.f32.gmra.mxu0 %vm308_vm1, %v4547_v13  ;;  %v4000_v60 = vld [vmem:[%s7432_s26 + $0x145] sm:$0xff] }
 0x1a4   : > { %v6962_v5 = vpop.f32.mrf.mxu1  ;;  %7257 = vmatmul.mubr.msk.f32.gmra.mxu1 %vm308_vm1, %v3997_v44  ;;  %7333 = vmatprep.mubr.msk.f32.mxu0 %vm308_vm1, %v4548_v56  ;;  %v4550_v1 = vld [vmem:[%s7432_s26 + $0x146] sm:$0xff] }
 0x1a5   : > { %v8870_v39 = vadd.f32 %v2727_v63, %v2296_v7  ;;  %v2299_v28 = vadd.f32 %v6962_v5, %v8554_v18  ;;  %7259 = vmatprep.mubr.msk.f32.mxu1 %vm308_vm1, %v3998_v52  ;;  %v2737_v2 = vpop.f32.mrf.mxu0  ;;  %v4001_v56 = vld [vmem:[%s7432_s26 + $0x14d] sm:$0xff] }
 0x1a6   : > { %v2187_v25 = vpop.f32.mrf.mxu1  ;;  %v4551_v7 = vld [vmem:[%s7432_s26 + $0x14e] sm:$0xff] }
 0x1a7   : > { %v8879_v44 = vadd.f32 %v7036_v23, %v2299_v28  ;;  %v2298_v13 = vadd.f32 %v2187_v25, %v8559_v14  ;;  %v7039_v18 = vpop.f32.mrf.mxu0  ;;  %7334 = vmatmul.mubr.msk.f32.gmra.mxu0 %vm308_vm1, %v4549_v50  ;;  %v4002_v23 = vld [vmem:[%s7432_s26 + $0x155] sm:$0xff] }
 0x1a8   : > { %v6965_v49 = vpop.f32.mrf.mxu1  ;;  %7260 = vmatmul.mubr.msk.f32.gmra.mxu1 %vm308_vm1, %v3999_v47  ;;  %7336 = vmatprep.mubr.msk.f32.mxu0 %vm308_vm1, %v4550_v1  ;;  %v4552_v28 = vld [vmem:[%s7432_s26 + $0x156] sm:$0xff] }
 0x1a9   : > { %v8884_v63 = vadd.f32 %v2737_v2, %v2298_v13  ;;  %v2301_v52 = vadd.f32 %v6965_v49, %v8566_v40  ;;  %7262 = vmatprep.mubr.msk.f32.mxu1 %vm308_vm1, %v4000_v60  ;;  %v2747_v14 = vpop.f32.mrf.mxu0  ;;  %v4003_v1 = vld [vmem:[%s7432_s26 + $0x15d] sm:$0xff] }
 0x1aa   : > { %v2197_v5 = vpop.f32.mrf.mxu1  ;;  %v4553_v13 = vld [vmem:[%s7432_s26 + $0x15e] sm:$0xff] }
 0x1ab   : > { %v8893_v47 = vadd.f32 %v7039_v18, %v2301_v52  ;;  %v2300_v50 = vadd.f32 %v2197_v5, %v8571_v26  ;;  %v7042_v40 = vpop.f32.mrf.mxu0  ;;  %7337 = vmatmul.mubr.msk.f32.gmra.mxu0 %vm308_vm1, %v4551_v7  ;;  %v4004_v18 = vld [vmem:[%s7432_s26 + $0x165] sm:$0xff] }
 0x1ac   : > { %v6968_v25 = vpop.f32.mrf.mxu1  ;;  %7263 = vmatmul.mubr.msk.f32.gmra.mxu1 %vm308_vm1, %v4001_v56  ;;  %7339 = vmatprep.mubr.msk.f32.mxu0 %vm308_vm1, %v4552_v28  ;;  %v4554_v52 = vld [vmem:[%s7432_s26 + $0x166] sm:$0xff] }
 0x1ad   : > { %v8898_v2 = vadd.f32 %v2747_v14, %v2300_v50  ;;  %v2303_v60 = vadd.f32 %v6968_v25, %v8578_v11  ;;  %7265 = vmatprep.mubr.msk.f32.mxu1 %vm308_vm1, %v4002_v23  ;;  %v2757_v26 = vpop.f32.mrf.mxu0  ;;  %v4005_v28 = vld [vmem:[%s7432_s26 + $0x16d] sm:$0xff] }
 0x1ae   : > { %v2207_v49 = vpop.f32.mrf.mxu1  ;;  %v4555_v50 = vld [vmem:[%s7432_s26 + $0x16e] sm:$0xff] }
 0x1af   : > { %v8907_v56 = vadd.f32 %v7042_v40, %v2303_v60  ;;  %v2302_v7 = vadd.f32 %v2207_v49, %v8583_v38  ;;  %v7045_v11 = vpop.f32.mrf.mxu0  ;;  %7340 = vmatmul.mubr.msk.f32.gmra.mxu0 %vm308_vm1, %v4553_v13  ;;  %v4006_v40 = vld [vmem:[%s7432_s26 + $0x175] sm:$0xff] }
 0x1b0   : > { %v6971_v5 = vpop.f32.mrf.mxu1  ;;  %7266 = vmatmul.mubr.msk.f32.gmra.mxu1 %vm308_vm1, %v4003_v1  ;;  %7342 = vmatprep.mubr.msk.f32.mxu0 %vm308_vm1, %v4554_v52  ;;  %v4556_v60 = vld [vmem:[%s7432_s26 + $0x176] sm:$0xff] }
 0x1b1   : > { %v8912_v14 = vadd.f32 %v2757_v26, %v2302_v7  ;;  %v2305_v23 = vadd.f32 %v6971_v5, %v8590_v22  ;;  %7268 = vmatprep.mubr.msk.f32.mxu1 %vm308_vm1, %v4004_v18  ;;  %v2767_v38 = vpop.f32.mrf.mxu0  ;;  %v4007_v52 = vld [vmem:[%s7432_s26 + $0x17d] sm:$0xff] }
 0x1b2   : > { %v2217_v25 = vpop.f32.mrf.mxu1  ;;  %v4557_v7 = vld [vmem:[%s7432_s26 + $0x17e] sm:$0xff] }
 0x1b3   : > { %v8921_v1 = vadd.f32 %v7045_v11, %v2305_v23  ;;  %v2304_v13 = vadd.f32 %v2217_v25, %v8595_v31  ;;  %v7048_v22 = vpop.f32.mrf.mxu0  ;;  %7343 = vmatmul.mubr.msk.f32.gmra.mxu0 %vm308_vm1, %v4555_v50  ;;  %v4008_v11 = vld [vmem:[%s7432_s26 + $0x185] sm:$0xff] }
 0x1b4   : > { %v6974_v49 = vpop.f32.mrf.mxu1  ;;  %7269 = vmatmul.mubr.msk.f32.gmra.mxu1 %vm308_vm1, %v4005_v28  ;;  %7345 = vmatprep.mubr.msk.f32.mxu0 %vm308_vm1, %v4556_v60  ;;  %v4558_v23 = vld [vmem:[%s7432_s26 + $0x186] sm:$0xff] }
 0x1b5   : > { %v8926_v26 = vadd.f32 %v2767_v38, %v2304_v13  ;;  %v2307_v18 = vadd.f32 %v6974_v49, %v8602_v6  ;;  %7271 = vmatprep.mubr.msk.f32.mxu1 %vm308_vm1, %v4006_v40  ;;  %v2777_v31 = vpop.f32.mrf.mxu0  ;;  %v4009_v60 = vld [vmem:[%s7432_s26 + $0x18d] sm:$0xff] }
 0x1b6   : > { %v2227_v5 = vpop.f32.mrf.mxu1  ;;  %v4559_v13 = vld [vmem:[%s7432_s26 + $0x18e] sm:$0xff] }
 0x1b7   : > { %v8935_v28 = vadd.f32 %v7048_v22, %v2307_v18  ;;  %v2306_v50 = vadd.f32 %v2227_v5, %v8607_v62  ;;  %v7051_v6 = vpop.f32.mrf.mxu0  ;;  %7346 = vmatmul.mubr.msk.f32.gmra.mxu0 %vm308_vm1, %v4557_v7  ;;  %v4010_v22 = vld [vmem:[%s7432_s26 + $0x195] sm:$0xff] }
 0x1b8   : > { %v6977_v25 = vpop.f32.mrf.mxu1  ;;  %7272 = vmatmul.mubr.msk.f32.gmra.mxu1 %vm308_vm1, %v4007_v52  ;;  %7348 = vmatprep.mubr.msk.f32.mxu0 %vm308_vm1, %v4558_v23  ;;  %v4560_v18 = vld [vmem:[%s7432_s26 + $0x196] sm:$0xff] }
 0x1b9   : > { %v8940_v38 = vadd.f32 %v2777_v31, %v2306_v50  ;;  %v2309_v40 = vadd.f32 %v6977_v25, %v8614_v4  ;;  %7274 = vmatprep.mubr.msk.f32.mxu1 %vm308_vm1, %v4008_v11  ;;  %v2787_v62 = vpop.f32.mrf.mxu0  ;;  %v4011_v23 = vld [vmem:[%s7432_s26 + $0x19d] sm:$0xff] }
 0x1ba   : > { %v2237_v49 = vpop.f32.mrf.mxu1  ;;  %v4561_v50 = vld [vmem:[%s7432_s26 + $0x19e] sm:$0xff]  ;;  %s7357_s26 = smul.u32 384, %s9524_s16 }
 0x1bb   : > { %v8949_v5 = vadd.f32 %v7051_v6, %v2309_v40  ;;  %v2308_v52 = vadd.f32 %v2237_v49, %v8619_v10  ;;  %v7054_v31 = vpop.f32.mrf.mxu0  ;;  %7349 = vmatmul.mubr.msk.f32.gmra.mxu0 %vm308_vm1, %v4559_v13 }
 0x1bc   : > { %v6980_v7 = vpop.f32.mrf.mxu1  ;;  %7275 = vmatmul.mubr.msk.f32.gmra.mxu1 %vm308_vm1, %v4009_v60  ;;  %7351 = vmatprep.mubr.msk.f32.mxu0 %vm308_vm1, %v4560_v18  ;;  %s9153_s21 = scalar_lea.vmem %s9485_s3, %s7357_s26 }
 0x1bd   : > { %v8954_v4 = vadd.f32 %v2787_v62, %v2308_v52  ;;  %v2311_v11 = vadd.f32 %v6980_v7, %v8627_v17  ;;  %7277 = vmatprep.mubr.msk.f32.mxu1 %vm308_vm1, %v4010_v22  ;;  %v2797_v6 = vpop.f32.mrf.mxu0 }
 0x1be   : > { %v2247_v25 = vpop.f32.mrf.mxu1 }
 0x1bf   : > { %v8961_v40 = vadd.f32 %v7054_v31, %v2311_v11  ;;  %v2310_v10 = vadd.f32 %v2247_v25, %v8632_v30  ;;  %v7057_v60 = vpop.f32.mrf.mxu0  ;;  %7352 = vmatmul.mubr.msk.f32.gmra.mxu0 %vm308_vm1, %v4561_v50 }
 0x1c0   : > { %v6983_v49 = vpop.f32.mrf.mxu1  ;;  %7278 = vmatmul.mubr.msk.f32.gmra.mxu1 %vm308_vm1, %v4011_v23 }
 0x1c1   : > { %9487 = vst [vmem:[#allocation2_spill] sm:$0xff] %v8961_v40  ;;  %v8966_v13 = vadd.f32 %v2797_v6, %v2310_v10  ;;  %v2313_v17 = vadd.f32 %v6983_v49, %v8641_v46  ;;  %v2807_v22 = vpop.f32.mrf.mxu0 }
 0x1c2   : > { %v2257_v62 = vpop.f32.mrf.mxu1 }
 0x1c3   : > { %v8969_v18 = vadd.f32 %v7057_v60, %v2313_v17  ;;  %v2312_v52 = vadd.f32 %v2257_v62, %v8646_v61  ;;  %v7136_v31 = vpop.f32.mrf.mxu0 }
 0x1c4   : > { %v7062_v7 = vpop.f32.mrf.mxu1 }
 0x1c5   : > { %v8972_v11 = vadd.f32 %v2807_v22, %v2312_v52  ;;  %v3367_v30 = vadd.f32 %v7062_v7, %v8655_v37  ;;  %v3677_v23 = vpop.f32.mrf.mxu0 }
 0x1c6   : > { %v3127_v25 = vpop.f32.mrf.mxu1 }
 0x1c7   : > { %v8975_v40 = vadd.f32 %v7136_v31, %v3367_v30  ;;  %v3366_v50 = vadd.f32 %v3127_v25, %v8660_v53  ;;  %v7139_v46 = vpop.f32.mrf.mxu0 }
 0x1c8   : > { %v7065_v6 = vpop.f32.mrf.mxu1 }
 0x1c9   : > { %v8978_v10 = vadd.f32 %v3677_v23, %v3366_v50  ;;  %v3369_v49 = vadd.f32 %v7065_v6, %v8669_v42  ;;  %v3687_v61 = vpop.f32.mrf.mxu0 }
 0x1ca   : > { %v3137_v60 = vpop.f32.mrf.mxu1 }
 0x1cb   : > { %v8981_v17 = vadd.f32 %v7139_v46, %v3369_v49  ;;  %v3368_v62 = vadd.f32 %v3137_v60, %v8674_v41  ;;  %v7142_v37 = vpop.f32.mrf.mxu0 }
 0x1cc   : > { %v7068_v22 = vpop.f32.mrf.mxu1 }
 0x1cd   : > { %v8984_v52 = vadd.f32 %v3687_v61, %v3368_v62  ;;  %v3371_v7 = vadd.f32 %v7068_v22, %v8683_v21  ;;  %v3697_v53 = vpop.f32.mrf.mxu0 }
 0x1ce   : > { %v3147_v31 = vpop.f32.mrf.mxu1 }
 0x1cf   : > { %v8987_v30 = vadd.f32 %v7142_v37, %v3371_v7  ;;  %v3370_v25 = vadd.f32 %v3147_v31, %v8688_v16  ;;  %v7145_v42 = vpop.f32.mrf.mxu0 }
 0x1d0   : > { %v7071_v23 = vpop.f32.mrf.mxu1 }
 0x1d1   : > { %v8990_v50 = vadd.f32 %v3697_v53, %v3370_v25  ;;  %v3373_v6 = vadd.f32 %v7071_v23, %v8697_v29  ;;  %v3707_v41 = vpop.f32.mrf.mxu0 }
 0x1d2   : > { %v3157_v46 = vpop.f32.mrf.mxu1 }
 0x1d3   : > { %v8993_v49 = vadd.f32 %v7145_v42, %v3373_v6  ;;  %v3372_v60 = vadd.f32 %v3157_v46, %v8702_v3  ;;  %v7148_v21 = vpop.f32.mrf.mxu0 }
 0x1d4   : > { %v7074_v61 = vpop.f32.mrf.mxu1 }
 0x1d5   : > { %v8996_v62 = vadd.f32 %v3707_v41, %v3372_v60  ;;  %v3375_v22 = vadd.f32 %v7074_v61, %v8711_v45  ;;  %v3717_v16 = vpop.f32.mrf.mxu0 }
 0x1d6   : > { %v3167_v37 = vpop.f32.mrf.mxu1 }
 0x1d7   : > { %v8999_v7 = vadd.f32 %v7148_v21, %v3375_v22  ;;  %v3374_v31 = vadd.f32 %v3167_v37, %v8716_v19  ;;  %v7151_v29 = vpop.f32.mrf.mxu0 }
 0x1d8   : > { %v7077_v53 = vpop.f32.mrf.mxu1 }
 0x1d9   : > { %v9002_v25 = vadd.f32 %v3717_v16, %v3374_v31  ;;  %v3377_v23 = vadd.f32 %v7077_v53, %v8725_v36  ;;  %v3727_v3 = vpop.f32.mrf.mxu0 }
 0x1da   : > { %v3177_v42 = vpop.f32.mrf.mxu1 }
 0x1db   : > { %v9005_v6 = vadd.f32 %v7151_v29, %v3377_v23  ;;  %v3376_v46 = vadd.f32 %v3177_v42, %v8730_v9  ;;  %v7154_v45 = vpop.f32.mrf.mxu0 }
 0x1dc   : > { %v7080_v41 = vpop.f32.mrf.mxu1 }
 0x1dd   : > { %v9008_v60 = vadd.f32 %v3727_v3, %v3376_v46  ;;  %v3379_v61 = vadd.f32 %v7080_v41, %v8739_v54  ;;  %v3737_v19 = vpop.f32.mrf.mxu0 }
 0x1de   : > { %v3187_v21 = vpop.f32.mrf.mxu1 }
 0x1df   : > { %v9011_v22 = vadd.f32 %v7154_v45, %v3379_v61  ;;  %v3378_v37 = vadd.f32 %v3187_v21, %v8744_v58  ;;  %v7157_v36 = vpop.f32.mrf.mxu0 }
 0x1e0   : > { %v7083_v16 = vpop.f32.mrf.mxu1 }
 0x1e1   : > { %v9014_v31 = vadd.f32 %v3737_v19, %v3378_v37  ;;  %v3381_v53 = vadd.f32 %v7083_v16, %v8753_v43  ;;  %v3747_v9 = vpop.f32.mrf.mxu0 }
 0x1e2   : > { %v3197_v29 = vpop.f32.mrf.mxu1 }
 0x1e3   : > { %v9017_v23 = vadd.f32 %v7157_v36, %v3381_v53  ;;  %v3380_v42 = vadd.f32 %v3197_v29, %v8758_v35  ;;  %v7160_v54 = vpop.f32.mrf.mxu0 }
 0x1e4   : > { %v7086_v3 = vpop.f32.mrf.mxu1 }
 0x1e5   : > { %v9020_v46 = vadd.f32 %v3747_v9, %v3380_v42  ;;  %v3383_v41 = vadd.f32 %v7086_v3, %v8767_v33  ;;  %v3757_v58 = vpop.f32.mrf.mxu0 }
 0x1e6   : > { %v3207_v45 = vpop.f32.mrf.mxu1 }
 0x1e7   : > { %v9023_v61 = vadd.f32 %v7160_v54, %v3383_v41  ;;  %v3382_v21 = vadd.f32 %v3207_v45, %v8772_v57  ;;  %v7163_v43 = vpop.f32.mrf.mxu0 }
 0x1e8   : > { %v7089_v19 = vpop.f32.mrf.mxu1 }
 0x1e9   : > { %v9026_v37 = vadd.f32 %v3757_v58, %v3382_v21  ;;  %v3385_v16 = vadd.f32 %v7089_v19, %v8781_v34  ;;  %v3767_v35 = vpop.f32.mrf.mxu0 }
 0x1ea   : > { %v3217_v36 = vpop.f32.mrf.mxu1 }
 0x1eb   : > { %v9029_v53 = vadd.f32 %v7163_v43, %v3385_v16  ;;  %v3384_v29 = vadd.f32 %v3217_v36, %v8786_v0  ;;  %v7166_v33 = vpop.f32.mrf.mxu0 }
 0x1ec   : > { %v7092_v9 = vpop.f32.mrf.mxu1 }
 0x1ed   : > { %v9032_v42 = vadd.f32 %v3767_v35, %v3384_v29  ;;  %v3387_v3 = vadd.f32 %v7092_v9, %v8795_v27  ;;  %v3777_v57 = vpop.f32.mrf.mxu0 }
 0x1ee   : > { %v3227_v54 = vpop.f32.mrf.mxu1 }
 0x1ef   : > { %v9035_v41 = vadd.f32 %v7166_v33, %v3387_v3  ;;  %v3386_v45 = vadd.f32 %v3227_v54, %v8800_v12  ;;  %v7169_v34 = vpop.f32.mrf.mxu0 }
 0x1f0   : > { %v7095_v58 = vpop.f32.mrf.mxu1 }
 0x1f1   : > { %v9038_v21 = vadd.f32 %v3777_v57, %v3386_v45  ;;  %v3389_v19 = vadd.f32 %v7095_v58, %v8809_v51  ;;  %v3787_v0 = vpop.f32.mrf.mxu0 }
 0x1f2   : > { %v3237_v43 = vpop.f32.mrf.mxu1 }
 0x1f3   : > { %v9041_v16 = vadd.f32 %v7169_v34, %v3389_v19  ;;  %v3388_v36 = vadd.f32 %v3237_v43, %v8814_v24  ;;  %v7172_v27 = vpop.f32.mrf.mxu0  ;;  %v9053_v19 = vpop.permute.xlu1 %5173 }
 0x1f4   : > { %v7098_v35 = vpop.f32.mrf.mxu1 }
 0x1f5   : > { %v9044_v29 = vadd.f32 %v3787_v0, %v3388_v36  ;;  %v3391_v9 = vadd.f32 %v7098_v35, %v8823_v59  ;;  %v3797_v12 = vpop.f32.mrf.mxu0  ;;  %v9058_v35 = vpop.permute.xlu0 %5163 }
 0x1f6   : > { %v3247_v33 = vpop.f32.mrf.mxu1 }
 0x1f7   : > { %v9047_v3 = vadd.f32 %v7172_v27, %v3391_v9  ;;  %v3390_v54 = vadd.f32 %v3247_v33, %v8828_v55  ;;  %v7175_v51 = vpop.f32.mrf.mxu0 }
 0x1f8   : > { %v7101_v57 = vpop.f32.mrf.mxu1 }
 0x1f9   : > { %v9050_v45 = vadd.f32 %v3797_v12, %v3390_v54  ;;  %v3393_v58 = vadd.f32 %v7101_v57, %v8837_v8  ;;  %v3807_v24 = vpop.f32.mrf.mxu0 }
 0x1fa   : > { %v3257_v34 = vpop.f32.mrf.mxu1 }
 0x1fb   : > { %v9055_v43 = vadd.f32 %v7175_v51, %v3393_v58  ;;  %v3392_v59 = vadd.f32 %v3257_v34, %v8842_v48  ;;  %v7178_v36 = vpop.f32.mrf.mxu0  ;;  %v9066_v51 = vpop.permute.xlu1 %5178 }
 0x1fc   : > { %v7104_v0 = vpop.f32.mrf.mxu1 }
 0x1fd   : > { %9488 = vst [vmem:[#allocation3_spill] sm:$0xff] %v9055_v43  ;;  %v9060_v27 = vadd.f32 %v3807_v24, %v3392_v59  ;;  %v3395_v55 = vadd.f32 %v7104_v0, %v8851_v20  ;;  %v3817_v33 = vpop.f32.mrf.mxu0  ;;  %v9071_v24 = vpop.permute.xlu0 %5168 }
 0x1fe   : > { %v3267_v9 = vpop.f32.mrf.mxu1 }
 0x1ff   : > { %v9063_v12 = vadd.f32 %v7178_v36, %v3395_v55  ;;  %v3394_v8 = vadd.f32 %v3267_v9, %v8856_v15  ;;  %v7181_v57 = vpop.f32.mrf.mxu0 }
 0x200   : > { %v7107_v54 = vpop.f32.mrf.mxu1 }
 0x201   : > { %9489 = vst [vmem:[#allocation4_spill] sm:$0xff] %v9063_v12  ;;  %v9068_v58 = vadd.f32 %v3817_v33, %v3394_v8  ;;  %v3397_v48 = vadd.f32 %v7107_v54, %v8865_v32  ;;  %v3827_v43 = vpop.f32.mrf.mxu0  ;;  %v9079_v33 = vpop.permute.xlu1 %5188 }
 0x202   : > { %v3277_v34 = vpop.f32.mrf.mxu1 }
 0x203   : > { %9490 = vst [vmem:[#allocation5_spill] sm:$0xff] %v9068_v58  ;;  %v9073_v59 = vadd.f32 %v7181_v57, %v3397_v48  ;;  %v3396_v20 = vadd.f32 %v3277_v34, %v8870_v39  ;;  %v7184_v36 = vpop.f32.mrf.mxu0  ;;  %v9084_v57 = vpop.permute.xlu0 %5183 }
 0x204   : > { %v7110_v0 = vpop.f32.mrf.mxu1 }
 0x205   : > { %v9076_v55 = vadd.f32 %v3827_v43, %v3396_v20  ;;  %v3399_v15 = vadd.f32 %v7110_v0, %v8879_v44  ;;  %v3837_v12 = vpop.f32.mrf.mxu0 }
 0x206   : > { %v3287_v9 = vpop.f32.mrf.mxu1 }
 0x207   : > { %9491 = vst [vmem:[#allocation6_spill] sm:$0xff] %v9076_v55  ;;  %v9081_v8 = vadd.f32 %v7184_v36, %v3399_v15  ;;  %v3398_v32 = vadd.f32 %v3287_v9, %v8884_v63  ;;  %v7187_v58 = vpop.f32.mrf.mxu0  ;;  %v9092_v36 = vpop.permute.xlu1 %5198 }
 0x208   : > { %v7113_v54 = vpop.f32.mrf.mxu1 }
 0x209   : > { %9492 = vst [vmem:[#allocation7_spill] sm:$0xff] %v9081_v8  ;;  %v9086_v48 = vadd.f32 %v3837_v12, %v3398_v32  ;;  %v3401_v39 = vadd.f32 %v7113_v54, %v8893_v47  ;;  %v3847_v34 = vpop.f32.mrf.mxu0  ;;  %v9097_v12 = vpop.permute.xlu0 %5193 }
 0x20a   : > { %v3297_v43 = vpop.f32.mrf.mxu1 }
 0x20b   : > { %v9089_v20 = vadd.f32 %v7187_v58, %v3401_v39  ;;  %v3400_v44 = vadd.f32 %v3297_v43, %v8898_v2  ;;  %v7190_v55 = vpop.f32.mrf.mxu0 }
 0x20c   : > { %v7116_v0 = vpop.f32.mrf.mxu1 }
 0x20d   : > { %9493 = vst [vmem:[#allocation8_spill] sm:$0xff] %v9089_v20  ;;  %v9094_v15 = vadd.f32 %v3847_v34, %v3400_v44  ;;  %v3403_v63 = vadd.f32 %v7116_v0, %v8907_v56  ;;  %v3857_v8 = vpop.f32.mrf.mxu0  ;;  %v9105_v34 = vpop.permute.xlu1 %5208 }
 0x20e   : > { %v3307_v9 = vpop.f32.mrf.mxu1 }
 0x20f   : > { %9494 = vst [vmem:[#allocation9_spill] sm:$0xff] %v9094_v15  ;;  %v9099_v32 = vadd.f32 %v7190_v55, %v3403_v63  ;;  %v3402_v47 = vadd.f32 %v3307_v9, %v8912_v14  ;;  %v7193_v54 = vpop.f32.mrf.mxu0  ;;  %v9110_v55 = vpop.permute.xlu0 %5203 }
 0x210   : > { %v7119_v58 = vpop.f32.mrf.mxu1 }
 0x211   : > { %v9102_v39 = vadd.f32 %v3857_v8, %v3402_v47  ;;  %v3405_v2 = vadd.f32 %v7119_v58, %v8921_v1  ;;  %v3867_v20 = vpop.f32.mrf.mxu0 }
 0x212   : > { %v3317_v43 = vpop.f32.mrf.mxu1 }
 0x213   : > { %9495 = vst [vmem:[#allocation10_spill] sm:$0xff] %v9102_v39  ;;  %v9107_v44 = vadd.f32 %v7193_v54, %v3405_v2  ;;  %v3404_v56 = vadd.f32 %v3317_v43, %v8926_v26  ;;  %v7196_v15 = vpop.f32.mrf.mxu0  ;;  %v9118_v54 = vpop.permute.xlu1 %5218 }
 0x214   : > { %v7122_v0 = vpop.f32.mrf.mxu1 }
 0x215   : > { %9496 = vst [vmem:[#allocation11_spill] sm:$0xff] %v9107_v44  ;;  %v9112_v63 = vadd.f32 %v3867_v20, %v3404_v56  ;;  %v3407_v14 = vadd.f32 %v7122_v0, %v8935_v28  ;;  %v3877_v9 = vpop.f32.mrf.mxu0  ;;  %v9123_v20 = vpop.permute.xlu0 %5213 }
 0x216   : > { %v3327_v8 = vpop.f32.mrf.mxu1 }
 0x217   : > { %v9115_v47 = vadd.f32 %v7196_v15, %v3407_v14  ;;  %v3406_v1 = vadd.f32 %v3327_v8, %v8940_v38  ;;  %v7199_v39 = vpop.f32.mrf.mxu0  ;;  %v9501_v14 = vld [vmem:[#allocation2_spill] sm:$0xff] }
 0x218   : > { %v7125_v58 = vpop.f32.mrf.mxu1 }
 0x219   : > { %9497 = vst [vmem:[#allocation12_spill] sm:$0xff] %v9115_v47  ;;  %v9120_v2 = vadd.f32 %v3877_v9, %v3406_v1  ;;  %v3409_v26 = vadd.f32 %v7125_v58, %v8949_v5  ;;  %v3887_v44 = vpop.f32.mrf.mxu0  ;;  %v9131_v1 = vpop.permute.xlu1 %5228 }
 0x21a   : > { %v3337_v43 = vpop.f32.mrf.mxu1 }
 0x21b   : > { %9498 = vst [vmem:[#allocation13_spill] sm:$0xff] %v9120_v2  ;;  %v9125_v56 = vadd.f32 %v7199_v39, %v3409_v26  ;;  %v3408_v28 = vadd.f32 %v3337_v43, %v8954_v4  ;;  %v7202_v0 = vpop.f32.mrf.mxu0  ;;  %v9136_v26 = vpop.permute.xlu0 %5223 }
 0x21c   : > { %v7128_v15 = vpop.f32.mrf.mxu1 }
 0x21d   : > { %9499 = vst [vmem:[#allocation14_spill] sm:$0xff] %v9125_v56  ;;  %v9128_v38 = vadd.f32 %v3887_v44, %v3408_v28  ;;  %v3411_v8 = vadd.f32 %v7128_v15, %v9501_v14  ;;  %v3897_v9 = vpop.f32.mrf.mxu0 }
 0x21e   : > { %v3347_v47 = vpop.f32.mrf.mxu1 }
 0x21f   : > { %9500 = vst [vmem:[#allocation15_spill] sm:$0xff] %v9128_v38  ;;  %v9133_v5 = vadd.f32 %v7202_v0, %v3411_v8  ;;  %v3410_v58 = vadd.f32 %v3347_v47, %v8966_v13  ;;  %v7205_v39 = vpop.f32.mrf.mxu0  ;;  %v9145_v8 = vpop.permute.xlu1 %5238 }
 0x220   : > { %v7131_v2 = vpop.f32.mrf.mxu1 }
 0x221   : > { %9502 = vst [vmem:[#allocation2_spill] sm:$0xff] %v9133_v5  ;;  %v9138_v4 = vadd.f32 %v3897_v9, %v3410_v58  ;;  %v3413_v43 = vadd.f32 %v7131_v2, %v8969_v18  ;;  %v3907_v28 = vpop.f32.mrf.mxu0  ;;  %v9155_v9 = vpop.permute.xlu0 %5233 }
 0x222   : > { %v3357_v44 = vpop.f32.mrf.mxu1 }
 0x223   : > { %9503 = vst [vmem:[#allocation16_spill] sm:$0xff] %v9138_v4  ;;  %v9142_v15 = vadd.f32 %v7205_v39, %v3413_v43  ;;  %v3412_v14 = vadd.f32 %v3357_v44, %v8972_v11  ;;  %v7284_v0 = vpop.f32.mrf.mxu0 }
 0x224   : > { %v7210_v38 = vpop.f32.mrf.mxu1 }
 0x225   : > { %9504 = vst [vmem:[#allocation17_spill] sm:$0xff] %v9142_v15  ;;  %v9147_v13 = vadd.f32 %v3907_v28, %v3412_v14  ;;  %v4467_v47 = vadd.f32 %v7210_v38, %v8975_v40  ;;  %v4777_v2 = vpop.f32.mrf.mxu0 }
 0x226   : > { %v4227_v18 = vpop.f32.mrf.mxu1 }
 0x227   : > { %9505 = vst [vmem:[#allocation18_spill] sm:$0xff] %v9147_v13  ;;  %v5017_v11 = vadd.f32 %v7284_v0, %v4467_v47  ;;  %v4466_v58 = vadd.f32 %v4227_v18, %v8978_v10  ;;  %v7287_v43 = vpop.f32.mrf.mxu0  ;;  %v9162_v13 = vpop.permute.xlu1 %5248 }
 0x228   : > { %v7213_v39 = vpop.f32.mrf.mxu1 }
 0x229   : > { %5066 = vst.msk [vmem:[%s9153_s21 + $0x8] sm:$0xff] %vm5064_vm2, %v5017_v11  ;;  %v5402_v40 = vmul.f32 %v9071_v24, %v5017_v11  ;;  %v5016_v38 = vadd.f32 %v4777_v2, %v4466_v58  ;;  %v4469_v44 = vadd.f32 %v7213_v39, %v8981_v17  ;;  %v4787_v14 = vpop.f32.mrf.mxu0  ;;  %v9168_v24 = vpop.permute.xlu0 %5243 }
 0x22a   : > { %v4237_v28 = vpop.f32.mrf.mxu1 }
 0x22b   : > { %v5553_v15 = vmul.f32 %v5402_v40, %v5017_v11  ;;  %5065 = vst.msk [vmem:[%s9153_s21] sm:$0xff] %vm5064_vm2, %v5016_v38  ;;  %v5401_v0 = vmul.f32 %v9058_v35, %v5016_v38  ;;  %v5019_v10 = vadd.f32 %v7287_v43, %v4469_v44  ;;  %v4468_v47 = vadd.f32 %v4237_v28, %v8984_v52  ;;  %v7290_v4 = vpop.f32.mrf.mxu0 }
 0x22c   : > { %v7216_v18 = vpop.f32.mrf.mxu1  ;;  %v5450_v2 = vsel %vm5064_vm2, %v5402_v40, 0.0 }
 0x22d   : > { %v5449_v17 = vsel %vm5064_vm2, %v5401_v0, 0.0  ;;  %v5552_v58 = vmul.f32 %v5401_v0, %v5016_v38  ;;  %5068 = vst.msk [vmem:[%s9153_s21 + $0x18] sm:$0xff] %vm5064_vm2, %v5019_v10  ;;  %v5404_v39 = vmul.f32 %v9066_v51, %v5019_v10  ;;  %v5018_v5 = vadd.f32 %v4787_v14, %v4468_v47  ;;  %v4797_v52 = vpop.f32.mrf.mxu0  ;;  %v9182_v47 = vpop.permute.xlu1 %5258 }
 0x22e   : > { %v5451_v11 = vadd.f32 %v5450_v2, %v5449_v17  ;;  %v4471_v35 = vadd.f32 %v7216_v18, %v8987_v30  ;;  %v4247_v43 = vpop.f32.mrf.mxu1  ;;  %v5601_v44 = vsel %vm5064_vm2, %v5553_v15, 0.0 }
 0x22f   : > { %v5600_v28 = vsel %vm5064_vm2, %v5552_v58, 0.0  ;;  %v4470_v40 = vadd.f32 %v4247_v43, %v8990_v50  ;;  %5067 = vst.msk [vmem:[%s9153_s21 + $0x10] sm:$0xff] %vm5064_vm2, %v5018_v5  ;;  %v5403_v38 = vmul.f32 %v9053_v19, %v5018_v5  ;;  %v7293_v14 = vpop.f32.mrf.mxu0  ;;  %v5555_v2 = vmul.f32 %v5404_v39, %v5019_v10  ;;  %v9189_v19 = vpop.permute.xlu0 %5253 }
 0x230   : > { %v5602_v56 = vadd.f32 %v5601_v44, %v5600_v28  ;;  %v5021_v0 = vadd.f32 %v7290_v4, %v4471_v35  ;;  %v7219_v51 = vpop.f32.mrf.mxu1  ;;  %v5454_v10 = vsel %vm5064_vm2, %v5404_v39, 0.0 }
 0x231   : > { %v5020_v30 = vadd.f32 %v4797_v52, %v4470_v40  ;;  %v4473_v18 = vadd.f32 %v7219_v51, %v8993_v49  ;;  %v5452_v15 = vsel %vm5064_vm2, %v5403_v38, 0.0  ;;  %v5554_v17 = vmul.f32 %v5403_v38, %v5018_v5  ;;  %v4807_v43 = vpop.f32.mrf.mxu0 }
 0x232   : > { %5070 = vst.msk [vmem:[%s9153_s21 + $0x28] sm:$0xff] %vm5064_vm2, %v5021_v0  ;;  %v5406_v50 = vmul.f32 %v9079_v33, %v5021_v0  ;;  %v4257_v58 = vpop.f32.mrf.mxu1  ;;  %v5453_v4 = vadd.f32 %v5452_v15, %v5451_v11 }
 0x233   : > { %5069 = vst.msk [vmem:[%s9153_s21 + $0x20] sm:$0xff] %vm5064_vm2, %v5020_v30  ;;  %v5405_v35 = vmul.f32 %v9084_v57, %v5020_v30  ;;  %v5023_v52 = vadd.f32 %v7293_v14, %v4473_v18  ;;  %v4472_v49 = vadd.f32 %v4257_v58, %v8996_v62  ;;  %v5603_v5 = vsel %vm5064_vm2, %v5554_v17, 0.0  ;;  %v7296_v33 = vpop.f32.mrf.mxu0 }
 0x234   : > { %v5557_v44 = vmul.f32 %v5406_v50, %v5021_v0  ;;  %v7222_v28 = vpop.f32.mrf.mxu1  ;;  %v5604_v40 = vadd.f32 %v5603_v5, %v5602_v56  ;;  %v5455_v38 = vadd.f32 %v5454_v10, %v5453_v4  ;;  %v5605_v57 = vsel %vm5064_vm2, %v5555_v2, 0.0  ;;  %v9203_v0 = vpop.permute.xlu1 %5268 }
 0x235   : > { %v5456_v51 = vsel %vm5064_vm2, %v5405_v35, 0.0  ;;  %v5556_v11 = vmul.f32 %v5405_v35, %v5020_v30  ;;  %5072 = vst.msk [vmem:[%s9153_s21 + $0x38] sm:$0xff] %vm5064_vm2, %v5023_v52  ;;  %v5408_v14 = vmul.f32 %v9092_v36, %v5023_v52  ;;  %v5022_v62 = vadd.f32 %v4807_v43, %v4472_v49  ;;  %v4817_v15 = vpop.f32.mrf.mxu0  ;;  %v9212_v49 = vpop.permute.xlu0 %5263 }
 0x236   : > { %v4475_v39 = vadd.f32 %v7222_v28, %v8999_v7  ;;  %v4267_v18 = vpop.f32.mrf.mxu1  ;;  %v5457_v17 = vadd.f32 %v5456_v51, %v5455_v38  ;;  %v5606_v56 = vadd.f32 %v5605_v57, %v5604_v40  ;;  %v5458_v30 = vsel %vm5064_vm2, %v5406_v50, 0.0 }
 0x237   : > { %v5607_v58 = vsel %vm5064_vm2, %v5556_v11, 0.0  ;;  %v4474_v4 = vadd.f32 %v4267_v18, %v9002_v25  ;;  %v5609_v2 = vsel %vm5064_vm2, %v5557_v44, 0.0  ;;  %5071 = vst.msk [vmem:[%s9153_s21 + $0x30] sm:$0xff] %vm5064_vm2, %v5022_v62  ;;  %v5407_v36 = vmul.f32 %v9097_v12, %v5022_v62  ;;  %v7299_v35 = vpop.f32.mrf.mxu0 }
 0x238   : > { %v5025_v7 = vadd.f32 %v7296_v33, %v4475_v39  ;;  %v7225_v43 = vpop.f32.mrf.mxu1  ;;  %v5608_v10 = vadd.f32 %v5607_v58, %v5606_v56  ;;  %v5459_v5 = vadd.f32 %v5458_v30, %v5457_v17  ;;  %v5559_v40 = vmul.f32 %v5408_v14, %v5023_v52 }
 0x239   : > { %v5024_v28 = vadd.f32 %v4817_v15, %v4474_v4  ;;  %v4477_v25 = vadd.f32 %v7225_v43, %v9005_v6  ;;  %v5460_v50 = vsel %vm5064_vm2, %v5407_v36, 0.0  ;;  %v5558_v38 = vmul.f32 %v5407_v36, %v5022_v62  ;;  %v4827_v33 = vpop.f32.mrf.mxu0  ;;  %v9233_v43 = vpop.permute.xlu0 %5273 }
 0x23a   : > { %5074 = vst.msk [vmem:[%s9153_s21 + $0x48] sm:$0xff] %vm5064_vm2, %v5025_v7  ;;  %v5410_v44 = vmul.f32 %v9105_v34, %v5025_v7  ;;  %v4277_v12 = vpop.f32.mrf.mxu1  ;;  %v5461_v51 = vadd.f32 %v5460_v50, %v5459_v5  ;;  %v5610_v11 = vadd.f32 %v5609_v2, %v5608_v10  ;;  %v5462_v6 = vsel %vm5064_vm2, %v5408_v14, 0.0  ;;  %v9225_v34 = vpop.permute.xlu1 %5278 }
 0x23b   : > { %5073 = vst.msk [vmem:[%s9153_s21 + $0x40] sm:$0xff] %vm5064_vm2, %v5024_v28  ;;  %v5409_v57 = vmul.f32 %v9110_v55, %v5024_v28  ;;  %v5027_v39 = vadd.f32 %v7299_v35, %v4477_v25  ;;  %v5611_v52 = vsel %vm5064_vm2, %v5558_v38, 0.0  ;;  %v4476_v62 = vadd.f32 %v4277_v12, %v9008_v60  ;;  %v7302_v17 = vpop.f32.mrf.mxu0 }
 0x23c   : > { %v5561_v18 = vmul.f32 %v5410_v44, %v5025_v7  ;;  %v7228_v15 = vpop.f32.mrf.mxu1  ;;  %v5612_v56 = vadd.f32 %v5611_v52, %v5610_v11  ;;  %v5463_v58 = vadd.f32 %v5462_v6, %v5461_v51  ;;  %v5613_v55 = vsel %vm5064_vm2, %v5559_v40, 0.0 }
 0x23d   : > { %v5464_v4 = vsel %vm5064_vm2, %v5409_v57, 0.0  ;;  %v5560_v30 = vmul.f32 %v5409_v57, %v5024_v28  ;;  %5076 = vst.msk [vmem:[%s9153_s21 + $0x58] sm:$0xff] %vm5064_vm2, %v5027_v39  ;;  %v5412_v14 = vmul.f32 %v9118_v54, %v5027_v39  ;;  %v5026_v2 = vadd.f32 %v4827_v33, %v4476_v62  ;;  %v4837_v7 = vpop.f32.mrf.mxu0 }
 0x23e   : > { %v4479_v36 = vadd.f32 %v7228_v15, %v9011_v22  ;;  %v4287_v60 = vpop.f32.mrf.mxu1  ;;  %v5465_v35 = vadd.f32 %v5464_v4, %v5463_v58  ;;  %v5614_v10 = vadd.f32 %v5613_v55, %v5612_v56  ;;  %v5466_v25 = vsel %vm5064_vm2, %v5410_v44, 0.0  ;;  %v9255_v55 = vpop.permute.xlu0 %5283 }
 0x23f   : > { %v5615_v5 = vsel %vm5064_vm2, %v5560_v30, 0.0  ;;  %v4478_v28 = vadd.f32 %v4287_v60, %v9014_v31  ;;  %v5617_v40 = vsel %vm5064_vm2, %v5561_v18, 0.0  ;;  %5075 = vst.msk [vmem:[%s9153_s21 + $0x50] sm:$0xff] %vm5064_vm2, %v5026_v2  ;;  %v5411_v54 = vmul.f32 %v9123_v20, %v5026_v2  ;;  %v7305_v38 = vpop.f32.mrf.mxu0  ;;  %v9247_v20 = vpop.permute.xlu1 %5288 }
 0x240   : > { %v5029_v22 = vadd.f32 %v7302_v17, %v4479_v36  ;;  %v7231_v50 = vpop.f32.mrf.mxu1  ;;  %v5616_v12 = vadd.f32 %v5615_v5, %v5614_v10  ;;  %v5467_v33 = vadd.f32 %v5466_v25, %v5465_v35  ;;  %v5563_v57 = vmul.f32 %v5412_v14, %v5027_v39 }
 0x241   : > { %v5028_v51 = vadd.f32 %v4837_v7, %v4478_v28  ;;  %v4481_v11 = vadd.f32 %v7231_v50, %v9017_v23  ;;  %v5468_v31 = vsel %vm5064_vm2, %v5411_v54, 0.0  ;;  %v5562_v6 = vmul.f32 %v5411_v54, %v5026_v2  ;;  %v4847_v18 = vpop.f32.mrf.mxu0 }
 0x242   : > { %5078 = vst.msk [vmem:[%s9153_s21 + $0x68] sm:$0xff] %vm5064_vm2, %v5029_v22  ;;  %v5414_v44 = vmul.f32 %v9131_v1, %v5029_v22  ;;  %v4297_v52 = vpop.f32.mrf.mxu1  ;;  %v5469_v62 = vadd.f32 %v5468_v31, %v5467_v33  ;;  %v5618_v15 = vadd.f32 %v5617_v40, %v5616_v12  ;;  %v5470_v39 = vsel %vm5064_vm2, %v5412_v14, 0.0 }
 0x243   : > { %5077 = vst.msk [vmem:[%s9153_s21 + $0x60] sm:$0xff] %vm5064_vm2, %v5028_v51  ;;  %v5413_v17 = vmul.f32 %v9136_v26, %v5028_v51  ;;  %v5031_v23 = vadd.f32 %v7305_v38, %v4481_v11  ;;  %v5619_v56 = vsel %vm5064_vm2, %v5562_v6, 0.0  ;;  %v4480_v4 = vadd.f32 %v4297_v52, %v9020_v46  ;;  %v7308_v30 = vpop.f32.mrf.mxu0  ;;  %v9270_v33 = vpop.permute.xlu1 %5298 }
 0x244   : > { %v5565_v58 = vmul.f32 %v5414_v44, %v5029_v22  ;;  %v7234_v1 = vpop.f32.mrf.mxu1  ;;  %v5620_v2 = vadd.f32 %v5619_v56, %v5618_v15  ;;  %v5471_v36 = vadd.f32 %v5470_v39, %v5469_v62  ;;  %v5621_v26 = vsel %vm5064_vm2, %v5563_v57, 0.0  ;;  %v9277_v62 = vpop.permute.xlu0 %5293 }
 0x245   : > { %v5472_v60 = vsel %vm5064_vm2, %v5413_v17, 0.0  ;;  %v5564_v7 = vmul.f32 %v5413_v17, %v5028_v51  ;;  %5080 = vst.msk [vmem:[%s9153_s21 + $0x78] sm:$0xff] %vm5064_vm2, %v5031_v23  ;;  %v5416_v14 = vmul.f32 %v9145_v8, %v5031_v23  ;;  %v5030_v35 = vadd.f32 %v4847_v18, %v4480_v4  ;;  %v4857_v5 = vpop.f32.mrf.mxu0 }
 0x246   : > { %v4483_v10 = vadd.f32 %v7234_v1, %v9023_v61  ;;  %v4307_v46 = vpop.f32.mrf.mxu1  ;;  %v5473_v28 = vadd.f32 %v5472_v60, %v5471_v36  ;;  %v5622_v25 = vadd.f32 %v5621_v26, %v5620_v2  ;;  %v5474_v22 = vsel %vm5064_vm2, %v5414_v44, 0.0 }
 0x247   : > { %v5623_v40 = vsel %vm5064_vm2, %v5564_v7, 0.0  ;;  %v4482_v54 = vadd.f32 %v4307_v46, %v9026_v37  ;;  %v5625_v50 = vsel %vm5064_vm2, %v5565_v58, 0.0  ;;  %5079 = vst.msk [vmem:[%s9153_s21 + $0x70] sm:$0xff] %vm5064_vm2, %v5030_v35  ;;  %v5415_v8 = vmul.f32 %v9155_v9, %v5030_v35  ;;  %v7311_v61 = vpop.f32.mrf.mxu0 }
 0x248   : > { %v5033_v38 = vadd.f32 %v7308_v30, %v4483_v10  ;;  %v7237_v12 = vpop.f32.mrf.mxu1  ;;  %v5624_v51 = vadd.f32 %v5623_v40, %v5622_v25  ;;  %v5475_v11 = vadd.f32 %v5474_v22, %v5473_v28  ;;  %v5567_v31 = vmul.f32 %v5416_v14, %v5031_v23 }
 0x249   : > { %v5032_v57 = vadd.f32 %v4857_v5, %v4482_v54  ;;  %v4485_v37 = vadd.f32 %v7237_v12, %v9029_v53  ;;  %v5476_v6 = vsel %vm5064_vm2, %v5415_v8, 0.0  ;;  %v5566_v44 = vmul.f32 %v5415_v8, %v5030_v35  ;;  %v4867_v18 = vpop.f32.mrf.mxu0  ;;  %v9300_v8 = vpop.permute.xlu0 %5303 }
 0x24a   : > { %5082 = vst.msk [vmem:[%s9153_s21 + $0x88] sm:$0xff] %vm5064_vm2, %v5033_v38  ;;  %v5418_v52 = vmul.f32 %v9162_v13, %v5033_v38  ;;  %v4317_v9 = vpop.f32.mrf.mxu1  ;;  %v5477_v15 = vadd.f32 %v5476_v6, %v5475_v11  ;;  %v5626_v17 = vadd.f32 %v5625_v50, %v5624_v51  ;;  %v5478_v23 = vsel %vm5064_vm2, %v5416_v14, 0.0 }
 0x24b   : > { %5081 = vst.msk [vmem:[%s9153_s21 + $0x80] sm:$0xff] %vm5064_vm2, %v5032_v57  ;;  %v5417_v39 = vmul.f32 %v9168_v24, %v5032_v57  ;;  %v5035_v53 = vadd.f32 %v7311_v61, %v4485_v37  ;;  %v5627_v56 = vsel %vm5064_vm2, %v5566_v44, 0.0  ;;  %v4484_v4 = vadd.f32 %v4317_v9, %v9032_v42  ;;  %v7314_v1 = vpop.f32.mrf.mxu0  ;;  %v9291_v42 = vpop.permute.xlu1 %5308 }
 0x24c   : > { %v5569_v58 = vmul.f32 %v5418_v52, %v5033_v38  ;;  %v7240_v13 = vpop.f32.mrf.mxu1  ;;  %v5628_v30 = vadd.f32 %v5627_v56, %v5626_v17  ;;  %v5479_v2 = vadd.f32 %v5478_v23, %v5477_v15  ;;  %v5629_v24 = vsel %vm5064_vm2, %v5567_v31, 0.0 }
 0x24d   : > { %v5480_v36 = vsel %vm5064_vm2, %v5417_v39, 0.0  ;;  %v5568_v60 = vmul.f32 %v5417_v39, %v5032_v57  ;;  %5084 = vst.msk [vmem:[%s9153_s21 + $0x98] sm:$0xff] %vm5064_vm2, %v5035_v53  ;;  %v5420_v7 = vmul.f32 %v9182_v47, %v5035_v53  ;;  %v5034_v26 = vadd.f32 %v4867_v18, %v4484_v4  ;;  %v4877_v10 = vpop.f32.mrf.mxu0 }
 0x24e   : > { %v4487_v14 = vadd.f32 %v7240_v13, %v9035_v41  ;;  %v4327_v35 = vpop.f32.mrf.mxu1  ;;  %v5481_v46 = vadd.f32 %v5480_v36, %v5479_v2  ;;  %v5630_v5 = vadd.f32 %v5629_v24, %v5628_v30  ;;  %v5482_v40 = vsel %vm5064_vm2, %v5418_v52, 0.0  ;;  %v9321_v36 = vpop.permute.xlu0 %5313 }
 0x24f   : > { %v5631_v28 = vsel %vm5064_vm2, %v5568_v60, 0.0  ;;  %v4486_v25 = vadd.f32 %v4327_v35, %v9038_v21  ;;  %v5633_v54 = vsel %vm5064_vm2, %v5569_v58, 0.0  ;;  %5083 = vst.msk [vmem:[%s9153_s21 + $0x90] sm:$0xff] %vm5064_vm2, %v5034_v26  ;;  %v5419_v47 = vmul.f32 %v9189_v19, %v5034_v26  ;;  %v7317_v50 = vpop.f32.mrf.mxu0 }
 0x250   : > { %v5037_v41 = vadd.f32 %v7314_v1, %v4487_v14  ;;  %v7243_v22 = vpop.f32.mrf.mxu1  ;;  %v5632_v38 = vadd.f32 %v5631_v28, %v5630_v5  ;;  %v5483_v12 = vadd.f32 %v5482_v40, %v5481_v46  ;;  %v5571_v51 = vmul.f32 %v5420_v7, %v5035_v53  ;;  %v9506_v40 = vld [vmem:[#allocation3_spill] sm:$0xff] }
 0x251   : > { %v5036_v61 = vadd.f32 %v4877_v10, %v4486_v25  ;;  %v4489_v21 = vadd.f32 %v7243_v22, %v9041_v16  ;;  %v5484_v11 = vsel %vm5064_vm2, %v5419_v47, 0.0  ;;  %v5570_v57 = vmul.f32 %v5419_v47, %v5034_v26  ;;  %v4887_v31 = vpop.f32.mrf.mxu0 }
 0x252   : > { %5086 = vst.msk [vmem:[%s9153_s21 + $0xa8] sm:$0xff] %vm5064_vm2, %v5037_v41  ;;  %v5422_v37 = vmul.f32 %v9203_v0, %v5037_v41  ;;  %v4337_v19 = vpop.f32.mrf.mxu1  ;;  %v5485_v6 = vadd.f32 %v5484_v11, %v5483_v12  ;;  %v5634_v44 = vadd.f32 %v5633_v54, %v5632_v38  ;;  %v5486_v16 = vsel %vm5064_vm2, %v5420_v7, 0.0  ;;  %v9313_v0 = vpop.permute.xlu1 %5318 }
 0x253   : > { %5085 = vst.msk [vmem:[%s9153_s21 + $0xa0] sm:$0xff] %vm5064_vm2, %v5036_v61  ;;  %v5421_v52 = vmul.f32 %v9212_v49, %v5036_v61  ;;  %v5039_v9 = vadd.f32 %v7317_v50, %v4489_v21  ;;  %v5635_v18 = vsel %vm5064_vm2, %v5570_v57, 0.0  ;;  %v4488_v17 = vadd.f32 %v4337_v19, %v9044_v29  ;;  %v7320_v53 = vpop.f32.mrf.mxu0 }
 0x254   : > { %v5573_v15 = vmul.f32 %v5422_v37, %v5037_v41  ;;  %v7246_v39 = vpop.f32.mrf.mxu1  ;;  %v5636_v23 = vadd.f32 %v5635_v18, %v5634_v44  ;;  %v5487_v56 = vadd.f32 %v5486_v16, %v5485_v6  ;;  %v5637_v49 = vsel %vm5064_vm2, %v5571_v51, 0.0  ;;  %v9343_v6 = vpop.permute.xlu0 %5323 }
 0x255   : > { %v5488_v58 = vsel %vm5064_vm2, %v5421_v52, 0.0  ;;  %v5572_v4 = vmul.f32 %v5421_v52, %v5036_v61  ;;  %5088 = vst.msk [vmem:[%s9153_s21 + $0xb8] sm:$0xff] %vm5064_vm2, %v5039_v9  ;;  %v5424_v13 = vmul.f32 %v9225_v34, %v5039_v9  ;;  %v5038_v1 = vadd.f32 %v4887_v31, %v4488_v17  ;;  %v4897_v2 = vpop.f32.mrf.mxu0  ;;  %v9507_v17 = vld [vmem:[#allocation4_spill] sm:$0xff] }
 0x256   : > { %v4491_v30 = vadd.f32 %v7246_v39, %v9047_v3  ;;  %v4347_v29 = vpop.f32.mrf.mxu1  ;;  %v5489_v60 = vadd.f32 %v5488_v58, %v5487_v56  ;;  %v5638_v24 = vadd.f32 %v5637_v49, %v5636_v23  ;;  %v5490_v14 = vsel %vm5064_vm2, %v5422_v37, 0.0 }
 0x257   : > { %v5639_v7 = vsel %vm5064_vm2, %v5572_v4, 0.0  ;;  %v4490_v26 = vadd.f32 %v4347_v29, %v9050_v45  ;;  %v5641_v35 = vsel %vm5064_vm2, %v5573_v15, 0.0  ;;  %5087 = vst.msk [vmem:[%s9153_s21 + $0xb0] sm:$0xff] %vm5064_vm2, %v5038_v1  ;;  %v5423_v34 = vmul.f32 %v9233_v43, %v5038_v1  ;;  %v7323_v46 = vpop.f32.mrf.mxu0  ;;  %v9335_v43 = vpop.permute.xlu1 %5328  ;;  %v9508_v4 = vld [vmem:[#allocation5_spill] sm:$0xff] }
 0x258   : > { %v5041_v3 = vadd.f32 %v7320_v53, %v4491_v30  ;;  %v7249_v10 = vpop.f32.mrf.mxu1  ;;  %v5640_v5 = vadd.f32 %v5639_v7, %v5638_v24  ;;  %v5491_v28 = vadd.f32 %v5490_v14, %v5489_v60  ;;  %v5575_v47 = vmul.f32 %v5424_v13, %v5039_v9 }
 0x259   : > { %v5040_v25 = vadd.f32 %v4897_v2, %v4490_v26  ;;  %v4493_v54 = vadd.f32 %v7249_v10, %v9506_v40  ;;  %v5492_v45 = vsel %vm5064_vm2, %v5423_v34, 0.0  ;;  %v5574_v41 = vmul.f32 %v5423_v34, %v5038_v1  ;;  %v4907_v38 = vpop.f32.mrf.mxu0 }
 0x25a   : > { %5090 = vst.msk [vmem:[%s9153_s21 + $0xc8] sm:$0xff] %vm5064_vm2, %v5041_v3  ;;  %v5426_v22 = vmul.f32 %v9247_v20, %v5041_v3  ;;  %v4357_v50 = vpop.f32.mrf.mxu1  ;;  %v5493_v12 = vadd.f32 %v5492_v45, %v5491_v28  ;;  %v5642_v61 = vadd.f32 %v5641_v35, %v5640_v5  ;;  %v5494_v11 = vsel %vm5064_vm2, %v5424_v13, 0.0  ;;  %v9365_v5 = vpop.permute.xlu0 %5333 }
 0x25b   : > { %5089 = vst.msk [vmem:[%s9153_s21 + $0xc0] sm:$0xff] %vm5064_vm2, %v5040_v25  ;;  %v5425_v21 = vmul.f32 %v9255_v55, %v5040_v25  ;;  %v5043_v51 = vadd.f32 %v7323_v46, %v4493_v54  ;;  %v5643_v57 = vsel %vm5064_vm2, %v5574_v41, 0.0  ;;  %v4492_v19 = vadd.f32 %v4357_v50, %v9060_v27  ;;  %v7326_v31 = vpop.f32.mrf.mxu0  ;;  %v9358_v60 = vpop.permute.xlu1 %5338  ;;  %v9509_v41 = vld [vmem:[#allocation6_spill] sm:$0xff] }
 0x25c   : > { %v5577_v37 = vmul.f32 %v5426_v22, %v5041_v3  ;;  %v7252_v20 = vpop.f32.mrf.mxu1  ;;  %v5644_v44 = vadd.f32 %v5643_v57, %v5642_v61  ;;  %v5495_v52 = vadd.f32 %v5494_v11, %v5493_v12  ;;  %v5645_v55 = vsel %vm5064_vm2, %v5575_v47, 0.0  ;;  %v9510_v57 = vld [vmem:[#allocation7_spill] sm:$0xff] }
 0x25d   : > { %v5496_v9 = vsel %vm5064_vm2, %v5425_v21, 0.0  ;;  %v5576_v16 = vmul.f32 %v5425_v21, %v5040_v25  ;;  %5092 = vst.msk [vmem:[%s9153_s21 + $0xd8] sm:$0xff] %vm5064_vm2, %v5043_v51  ;;  %v5428_v18 = vmul.f32 %v9270_v33, %v5043_v51  ;;  %v5042_v15 = vadd.f32 %v4907_v38, %v4492_v19  ;;  %v4917_v53 = vpop.f32.mrf.mxu0 }
 0x25e   : > { %v4495_v39 = vadd.f32 %v7252_v20, %v9507_v17  ;;  %v4367_v27 = vpop.f32.mrf.mxu1  ;;  %v5497_v23 = vadd.f32 %v5496_v9, %v5495_v52  ;;  %v5646_v56 = vadd.f32 %v5645_v55, %v5644_v44  ;;  %v5498_v13 = vsel %vm5064_vm2, %v5426_v22, 0.0 }
 0x25f   : > { %v5647_v58 = vsel %vm5064_vm2, %v5576_v16, 0.0  ;;  %v4494_v49 = vadd.f32 %v4367_v27, %v9508_v4  ;;  %v5649_v1 = vsel %vm5064_vm2, %v5577_v37, 0.0  ;;  %5091 = vst.msk [vmem:[%s9153_s21 + $0xd0] sm:$0xff] %vm5064_vm2, %v5042_v15  ;;  %v5427_v33 = vmul.f32 %v9277_v62, %v5042_v15  ;;  %v7329_v2 = vpop.f32.mrf.mxu0  ;;  %v5344_v27 = vpop.permute.xlu0 %5343 }
 0x260   : > { %v5045_v30 = vadd.f32 %v7326_v31, %v4495_v39  ;;  %v7255_v29 = vpop.f32.mrf.mxu1  ;;  %v5648_v24 = vadd.f32 %v5647_v58, %v5646_v56  ;;  %v5499_v7 = vadd.f32 %v5498_v13, %v5497_v23  ;;  %v5579_v35 = vmul.f32 %v5428_v18, %v5043_v51  ;;  %v9379_v31 = vpop.permute.xlu1 %5348  ;;  %v9511_v58 = vld [vmem:[#allocation8_spill] sm:$0xff] }
 0x261   : > { %v5044_v26 = vadd.f32 %v4917_v53, %v4494_v49  ;;  %v4497_v14 = vadd.f32 %v7255_v29, %v9073_v59  ;;  %v5500_v34 = vsel %vm5064_vm2, %v5427_v33, 0.0  ;;  %v5578_v3 = vmul.f32 %v5427_v33, %v5042_v15  ;;  %v4927_v46 = vpop.f32.mrf.mxu0 }
 0x262   : > { %5094 = vst.msk [vmem:[%s9153_s21 + $0xe8] sm:$0xff] %vm5064_vm2, %v5045_v30  ;;  %v5430_v10 = vmul.f32 %v9291_v42, %v5045_v30  ;;  %v4377_v62 = vpop.f32.mrf.mxu1  ;;  %v5501_v28 = vadd.f32 %v5500_v34, %v5499_v7  ;;  %v5650_v25 = vadd.f32 %v5649_v1, %v5648_v24  ;;  %v5502_v54 = vsel %vm5064_vm2, %v5428_v18, 0.0 }
 0x263   : > { %5093 = vst.msk [vmem:[%s9153_s21 + $0xe0] sm:$0xff] %vm5064_vm2, %v5044_v26  ;;  %v5429_v40 = vmul.f32 %v9300_v8, %v5044_v26  ;;  %v5047_v59 = vadd.f32 %v7329_v2, %v4497_v14  ;;  %v5651_v47 = vsel %vm5064_vm2, %v5578_v3, 0.0  ;;  %v4496_v22 = vadd.f32 %v4377_v62, %v9509_v41  ;;  %v7332_v50 = vpop.f32.mrf.mxu0  ;;  %v5354_v41 = vpop.permute.xlu0 %5353 }
 0x264   : > { %v5581_v45 = vmul.f32 %v5430_v10, %v5045_v30  ;;  %v7258_v42 = vpop.f32.mrf.mxu1  ;;  %v5652_v38 = vadd.f32 %v5651_v47, %v5650_v25  ;;  %v5503_v12 = vadd.f32 %v5502_v54, %v5501_v28  ;;  %v5653_v8 = vsel %vm5064_vm2, %v5579_v35, 0.0  ;;  %v9512_v35 = vld [vmem:[#allocation9_spill] sm:$0xff] }
 0x265   : > { %v5504_v61 = vsel %vm5064_vm2, %v5429_v40, 0.0  ;;  %v5580_v21 = vmul.f32 %v5429_v40, %v5044_v26  ;;  %5096 = vst.msk [vmem:[%s9153_s21 + $0xf8] sm:$0xff] %vm5064_vm2, %v5047_v59  ;;  %v5432_v51 = vmul.f32 %v9313_v0, %v5047_v59  ;;  %v5046_v11 = vadd.f32 %v4927_v46, %v4496_v22  ;;  %v4937_v20 = vpop.f32.mrf.mxu0 }
 0x266   : > { %v4499_v37 = vadd.f32 %v7258_v42, %v9510_v57  ;;  %v4387_v19 = vpop.f32.mrf.mxu1  ;;  %v5505_v44 = vadd.f32 %v5504_v61, %v5503_v12  ;;  %v5654_v52 = vadd.f32 %v5653_v8, %v5652_v38  ;;  %v5506_v55 = vsel %vm5064_vm2, %v5430_v10, 0.0  ;;  %v9513_v38 = vld [vmem:[#allocation10_spill] sm:$0xff] }
 0x267   : > { %v5655_v9 = vsel %vm5064_vm2, %v5580_v21, 0.0  ;;  %v4498_v16 = vadd.f32 %v4387_v19, %v9086_v48  ;;  %v5657_v18 = vsel %vm5064_vm2, %v5581_v45, 0.0  ;;  %5095 = vst.msk [vmem:[%s9153_s21 + $0xf0] sm:$0xff] %vm5064_vm2, %v5046_v11  ;;  %v5431_v0 = vmul.f32 %v9321_v36, %v5046_v11  ;;  %v7335_v39 = vpop.f32.mrf.mxu0  ;;  %v9514_v19 = vld [vmem:[#allocation11_spill] sm:$0xff] }
 0x268   : > { %v5049_v15 = vadd.f32 %v7332_v50, %v4499_v37  ;;  %v7261_v17 = vpop.f32.mrf.mxu1  ;;  %v5656_v53 = vadd.f32 %v5655_v9, %v5654_v52  ;;  %v5507_v23 = vadd.f32 %v5506_v55, %v5505_v44  ;;  %v5583_v48 = vmul.f32 %v5432_v51, %v5047_v59 }
 0x269   : > { %v5048_v56 = vadd.f32 %v4937_v20, %v4498_v16  ;;  %v4501_v4 = vadd.f32 %v7261_v17, %v9511_v58  ;;  %v5508_v49 = vsel %vm5064_vm2, %v5431_v0, 0.0  ;;  %v5582_v13 = vmul.f32 %v5431_v0, %v5046_v11  ;;  %v4947_v36 = vpop.f32.mrf.mxu0 }
 0x26a   : > { %5098 = vst.msk [vmem:[%s9153_s21 + $0x108] sm:$0xff] %vm5064_vm2, %v5049_v15  ;;  %v5434_v1 = vmul.f32 %v9335_v43, %v5049_v15  ;;  %v4397_v33 = vpop.f32.mrf.mxu1  ;;  %v5509_v30 = vadd.f32 %v5508_v49, %v5507_v23  ;;  %v5658_v29 = vadd.f32 %v5657_v18, %v5656_v53  ;;  %v5510_v7 = vsel %vm5064_vm2, %v5432_v51, 0.0  ;;  %v5359_v43 = vpop.permute.xlu1 %5358 }
 0x26b   : > { %5097 = vst.msk [vmem:[%s9153_s21 + $0x100] sm:$0xff] %vm5064_vm2, %v5048_v56  ;;  %v5433_v2 = vmul.f32 %v9343_v6, %v5048_v56  ;;  %v5051_v24 = vadd.f32 %v7335_v39, %v4501_v4  ;;  %v5659_v26 = vsel %vm5064_vm2, %v5582_v13, 0.0  ;;  %v4500_v34 = vadd.f32 %v4397_v33, %v9512_v35  ;;  %v7338_v10 = vpop.f32.mrf.mxu0  ;;  %v9516_v35 = vld [vmem:[#allocation13_spill] sm:$0xff] }
 0x26c   : > { %v5585_v14 = vmul.f32 %v5434_v1, %v5049_v15  ;;  %v7264_v3 = vpop.f32.mrf.mxu1  ;;  %v5660_v62 = vadd.f32 %v5659_v26, %v5658_v29  ;;  %v5511_v46 = vadd.f32 %v5510_v7, %v5509_v30  ;;  %v5661_v6 = vsel %vm5064_vm2, %v5583_v48, 0.0  ;;  %v9515_v29 = vld [vmem:[#allocation12_spill] sm:$0xff] }
 0x26d   : > { %v5512_v28 = vsel %vm5064_vm2, %v5433_v2, 0.0  ;;  %v5584_v25 = vmul.f32 %v5433_v2, %v5048_v56  ;;  %5100 = vst.msk [vmem:[%s9153_s21 + $0x118] sm:$0xff] %vm5064_vm2, %v5051_v24  ;;  %v5436_v40 = vmul.f32 %v9358_v60, %v5051_v24  ;;  %v5050_v59 = vadd.f32 %v4947_v36, %v4500_v34  ;;  %v4957_v45 = vpop.f32.mrf.mxu0 }
 0x26e   : > { %v4503_v54 = vadd.f32 %v7264_v3, %v9099_v32  ;;  %v4407_v47 = vpop.f32.mrf.mxu1  ;;  %v5513_v22 = vadd.f32 %v5512_v28, %v5511_v46  ;;  %v5662_v42 = vadd.f32 %v5661_v6, %v5660_v62  ;;  %v5514_v61 = vsel %vm5064_vm2, %v5434_v1, 0.0 }
 0x26f   : > { %v5663_v50 = vsel %vm5064_vm2, %v5584_v25, 0.0  ;;  %v4502_v12 = vadd.f32 %v4407_v47, %v9513_v38  ;;  %v5665_v21 = vsel %vm5064_vm2, %v5585_v14, 0.0  ;;  %5099 = vst.msk [vmem:[%s9153_s21 + $0x110] sm:$0xff] %vm5064_vm2, %v5050_v59  ;;  %v5435_v60 = vmul.f32 %v9365_v5, %v5050_v59  ;;  %v7341_v51 = vpop.f32.mrf.mxu0  ;;  %v5369_v5 = vpop.permute.xlu1 %5368 }
 0x270   : > { %v5053_v8 = vadd.f32 %v7338_v10, %v4503_v54  ;;  %v7267_v32 = vpop.f32.mrf.mxu1  ;;  %v5664_v11 = vadd.f32 %v5663_v50, %v5662_v42  ;;  %v5515_v57 = vadd.f32 %v5514_v61, %v5513_v22  ;;  %v5587_v44 = vmul.f32 %v5436_v40, %v5051_v24  ;;  %v9517_v54 = vld [vmem:[#allocation14_spill] sm:$0xff] }
 0x271   : > { %v5052_v37 = vadd.f32 %v4957_v45, %v4502_v12  ;;  %v4505_v20 = vadd.f32 %v7267_v32, %v9514_v19  ;;  %v5516_v52 = vsel %vm5064_vm2, %v5435_v60, 0.0  ;;  %v5586_v9 = vmul.f32 %v5435_v60, %v5050_v59  ;;  %v4967_v18 = vpop.f32.mrf.mxu0 }
 0x272   : > { %5102 = vst.msk [vmem:[%s9153_s21 + $0x128] sm:$0xff] %vm5064_vm2, %v5053_v8  ;;  %v5438_v16 = vmul.f32 %v9379_v31, %v5053_v8  ;;  %v4417_v55 = vpop.f32.mrf.mxu1  ;;  %v5517_v0 = vadd.f32 %v5516_v52, %v5515_v57  ;;  %v5666_v15 = vadd.f32 %v5665_v21, %v5664_v11  ;;  %v5518_v53 = vsel %vm5064_vm2, %v5436_v40, 0.0  ;;  %v5364_v31 = vpop.permute.xlu0 %5363  ;;  %v9518_v57 = vld [vmem:[#allocation15_spill] sm:$0xff] }
 0x273   : > { %5101 = vst.msk [vmem:[%s9153_s21 + $0x120] sm:$0xff] %vm5064_vm2, %v5052_v37  ;;  %v5437_v17 = vmul.f32 %v5344_v27, %v5052_v37  ;;  %v5055_v39 = vadd.f32 %v7341_v51, %v4505_v20  ;;  %v5667_v23 = vsel %vm5064_vm2, %v5586_v9, 0.0  ;;  %v4504_v58 = vadd.f32 %v4417_v55, %v9112_v63  ;;  %v7344_v48 = vpop.f32.mrf.mxu0  ;;  %v5379_v25 = vpop.permute.xlu1 %5378 }
 0x274   : > { %v5589_v56 = vmul.f32 %v5438_v16, %v5053_v8  ;;  %v7270_v4 = vpop.f32.mrf.mxu1  ;;  %v5668_v49 = vadd.f32 %v5667_v23, %v5666_v15  ;;  %v5519_v13 = vadd.f32 %v5518_v53, %v5517_v0  ;;  %v5669_v27 = vsel %vm5064_vm2, %v5587_v44, 0.0  ;;  %v9519_v0 = vld [vmem:[#allocation2_spill] sm:$0xff] }
 0x275   : > { %v5520_v1 = vsel %vm5064_vm2, %v5437_v17, 0.0  ;;  %v5588_v33 = vmul.f32 %v5437_v17, %v5052_v37  ;;  %5104 = vst.msk [vmem:[%s9153_s21 + $0x138] sm:$0xff] %vm5064_vm2, %v5055_v39  ;;  %v5440_v36 = vmul.f32 %v5359_v43, %v5055_v39  ;;  %v5054_v30 = vadd.f32 %v4967_v18, %v4504_v58  ;;  %v4977_v7 = vpop.f32.mrf.mxu0 }
 0x276   : > { %v4507_v2 = vadd.f32 %v7270_v4, %v9515_v29  ;;  %v4427_v24 = vpop.f32.mrf.mxu1  ;;  %v5521_v63 = vadd.f32 %v5520_v1, %v5519_v13  ;;  %v5670_v26 = vadd.f32 %v5669_v27, %v5668_v49  ;;  %v5522_v3 = vsel %vm5064_vm2, %v5438_v16, 0.0  ;;  %v9520_v4 = vld [vmem:[#allocation16_spill] sm:$0xff] }
 0x277   : > { %v5671_v14 = vsel %vm5064_vm2, %v5588_v33, 0.0  ;;  %v4506_v34 = vadd.f32 %v4427_v24, %v9516_v35  ;;  %v5673_v10 = vsel %vm5064_vm2, %v5589_v56, 0.0  ;;  %5103 = vst.msk [vmem:[%s9153_s21 + $0x130] sm:$0xff] %vm5064_vm2, %v5054_v30  ;;  %v5439_v62 = vmul.f32 %v5354_v41, %v5054_v30  ;;  %v7347_v28 = vpop.f32.mrf.mxu0  ;;  %v5374_v41 = vpop.permute.xlu0 %5373 }
 0x278   : > { %v5057_v43 = vadd.f32 %v7344_v48, %v4507_v2  ;;  %v7273_v46 = vpop.f32.mrf.mxu1  ;;  %v5672_v6 = vadd.f32 %v5671_v14, %v5670_v26  ;;  %v5523_v40 = vadd.f32 %v5522_v3, %v5521_v63  ;;  %v5591_v45 = vmul.f32 %v5440_v36, %v5055_v39  ;;  %v5389_v53 = vpop.permute.xlu1 %5388  ;;  %v9521_v2 = vld [vmem:[#allocation17_spill] sm:$0xff] }
 0x279   : > { %v5056_v59 = vadd.f32 %v4977_v7, %v4506_v34  ;;  %v4509_v47 = vadd.f32 %v7273_v46, %v9517_v54  ;;  %v5524_v22 = vsel %vm5064_vm2, %v5439_v62, 0.0  ;;  %v5590_v42 = vmul.f32 %v5439_v62, %v5054_v30  ;;  %v4987_v12 = vpop.f32.mrf.mxu0 }
 0x27a   : > { %5106 = vst.msk [vmem:[%s9153_s21 + $0x148] sm:$0xff] %vm5064_vm2, %v5057_v43  ;;  %v5442_v50 = vmul.f32 %v5369_v5, %v5057_v43  ;;  %v4437_v38 = vpop.f32.mrf.mxu1  ;;  %v5525_v61 = vadd.f32 %v5524_v22, %v5523_v40  ;;  %v5674_v21 = vadd.f32 %v5673_v10, %v5672_v6  ;;  %v5526_v32 = vsel %vm5064_vm2, %v5440_v36, 0.0 }
 0x27b   : > { %5105 = vst.msk [vmem:[%s9153_s21 + $0x140] sm:$0xff] %vm5064_vm2, %v5056_v59  ;;  %v5441_v60 = vmul.f32 %v5364_v31, %v5056_v59  ;;  %v5059_v8 = vadd.f32 %v7347_v28, %v4509_v47  ;;  %v5675_v51 = vsel %vm5064_vm2, %v5590_v42, 0.0  ;;  %v4508_v37 = vadd.f32 %v4437_v38, %v9518_v57  ;;  %v7350_v20 = vpop.f32.mrf.mxu0  ;;  %v5384_v27 = vpop.permute.xlu0 %5383 }
 0x27c   : > { %v5593_v11 = vmul.f32 %v5442_v50, %v5057_v43  ;;  %v7276_v19 = vpop.f32.mrf.mxu1  ;;  %v5676_v44 = vadd.f32 %v5675_v51, %v5674_v21  ;;  %v5527_v52 = vadd.f32 %v5526_v32, %v5525_v61  ;;  %v5677_v55 = vsel %vm5064_vm2, %v5591_v45, 0.0  ;;  %v5399_v40 = vpop.permute.xlu1 %5398 }
 0x27d   : > { %v5528_v9 = vsel %vm5064_vm2, %v5441_v60, 0.0  ;;  %v5592_v16 = vmul.f32 %v5441_v60, %v5056_v59  ;;  %5108 = vst.msk [vmem:[%s9153_s21 + $0x158] sm:$0xff] %vm5064_vm2, %v5059_v8  ;;  %v5444_v18 = vmul.f32 %v5379_v25, %v5059_v8  ;;  %v5058_v5 = vadd.f32 %v4987_v12, %v4508_v37  ;;  %v4997_v39 = vpop.f32.mrf.mxu0  ;;  %v9522_v25 = vld [vmem:[#allocation18_spill] sm:$0xff] }
 0x27e   : > { %v4511_v15 = vadd.f32 %v7276_v19, %v9519_v0  ;;  %v4447_v17 = vpop.f32.mrf.mxu1  ;;  %v5529_v23 = vadd.f32 %v5528_v9, %v5527_v52  ;;  %v5678_v56 = vadd.f32 %v5677_v55, %v5676_v44  ;;  %v5530_v31 = vsel %vm5064_vm2, %v5442_v50, 0.0 }
 0x27f   : > { %v5679_v58 = vsel %vm5064_vm2, %v5592_v16, 0.0  ;;  %v4510_v48 = vadd.f32 %v4447_v17, %v9520_v4  ;;  %v5681_v49 = vsel %vm5064_vm2, %v5593_v11, 0.0  ;;  %5107 = vst.msk [vmem:[%s9153_s21 + $0x150] sm:$0xff] %vm5064_vm2, %v5058_v5  ;;  %v5443_v13 = vmul.f32 %v5374_v41, %v5058_v5  ;;  %v7353_v7 = vpop.f32.mrf.mxu0  ;;  %v5394_v41 = vpop.permute.xlu0 %5393 }
 0x280   : > { %v5061_v1 = vadd.f32 %v7350_v20, %v4511_v15  ;;  %v7279_v33 = vpop.f32.mrf.mxu1  ;;  %v5680_v36 = vadd.f32 %v5679_v58, %v5678_v56  ;;  %v5531_v30 = vadd.f32 %v5530_v31, %v5529_v23  ;;  %v5595_v63 = vmul.f32 %v5444_v18, %v5059_v8 }
 0x281   : > { %v5060_v29 = vadd.f32 %v4997_v39, %v4510_v48  ;;  %v4513_v24 = vadd.f32 %v7279_v33, %v9521_v2  ;;  %v5532_v26 = vsel %vm5064_vm2, %v5443_v13, 0.0  ;;  %v5594_v14 = vmul.f32 %v5443_v13, %v5058_v5  ;;  %v5007_v22 = vpop.f32.mrf.mxu0 }
 0x282   : > { %5110 = vst.msk [vmem:[%s9153_s21 + $0x168] sm:$0xff] %vm5064_vm2, %v5061_v1  ;;  %v5446_v35 = vmul.f32 %v5389_v53, %v5061_v1  ;;  %v4457_v34 = vpop.f32.mrf.mxu1  ;;  %v5533_v3 = vadd.f32 %v5532_v26, %v5531_v30  ;;  %v5682_v10 = vadd.f32 %v5681_v49, %v5680_v36  ;;  %v5534_v46 = vsel %vm5064_vm2, %v5444_v18, 0.0 }
 0x283   : > { %5109 = vst.msk [vmem:[%s9153_s21 + $0x160] sm:$0xff] %vm5064_vm2, %v5060_v29  ;;  %v5445_v62 = vmul.f32 %v5384_v27, %v5060_v29  ;;  %v5063_v43 = vadd.f32 %v7353_v7, %v4513_v24  ;;  %v5683_v28 = vsel %vm5064_vm2, %v5594_v14, 0.0  ;;  %v4512_v6 = vadd.f32 %v4457_v34, %v9522_v25 }
 0x284   : > { %v5684_v59 = vadd.f32 %v5683_v28, %v5682_v10  ;;  %v5535_v54 = vadd.f32 %v5534_v46, %v5533_v3  ;;  %v5685_v42 = vsel %vm5064_vm2, %v5595_v63, 0.0  ;;  %v5597_v50 = vmul.f32 %v5446_v35, %v5061_v1 }
 0x285   : > { %v5536_v47 = vsel %vm5064_vm2, %v5445_v62, 0.0  ;;  %v5596_v45 = vmul.f32 %v5445_v62, %v5060_v29  ;;  %5112 = vst.msk [vmem:[%s9153_s21 + $0x178] sm:$0xff] %vm5064_vm2, %v5063_v43  ;;  %v5448_v38 = vmul.f32 %v5399_v40, %v5063_v43  ;;  %v5062_v12 = vadd.f32 %v5007_v22, %v4512_v6 }
 0x286   : > { %v5537_v61 = vadd.f32 %v5536_v47, %v5535_v54  ;;  %v5686_v21 = vadd.f32 %v5685_v42, %v5684_v59  ;;  %v5538_v8 = vsel %vm5064_vm2, %v5446_v35, 0.0  ;;  %v5689_v57 = vsel %vm5064_vm2, %v5597_v50, 0.0 }
 0x287   : > { %v5687_v60 = vsel %vm5064_vm2, %v5596_v45, 0.0  ;;  %5111 = vst.msk [vmem:[%s9153_s21 + $0x170] sm:$0xff] %vm5064_vm2, %v5062_v12  ;;  %v5447_v32 = vmul.f32 %v5394_v41, %v5062_v12  ;;  %v5599_v37 = vmul.f32 %v5448_v38, %v5063_v43  ;;  %v5542_v9 = vsel %vm5064_vm2, %v5448_v38, 0.0 }
 0x288   : > { %v5688_v51 = vadd.f32 %v5687_v60, %v5686_v21  ;;  %v5539_v11 = vadd.f32 %v5538_v8, %v5537_v61 }
 0x289   : > { %v5540_v19 = vsel %vm5064_vm2, %v5447_v32, 0.0  ;;  %v5598_v20 = vmul.f32 %v5447_v32, %v5062_v12  ;;  %v5693_v5 = vsel %vm5064_vm2, %v5599_v37, 0.0 }
 0x28a   : > { %v5541_v44 = vadd.f32 %v5540_v19, %v5539_v11  ;;  %v5690_v52 = vadd.f32 %v5689_v57, %v5688_v51 }
 0x28b   : > { %v5691_v16 = vsel %vm5064_vm2, %v5598_v20, 0.0 }
 0x28c   : > { %v5543_v55 = vadd.f32 %v5542_v9, %v5541_v44  ;;  %v5692_v18 = vadd.f32 %v5691_v16, %v5690_v52 }
 0x28e   : > { %v5544_v0 = vrot.slane %v5543_v55, 4  ;;  %v5694_v15 = vadd.f32 %v5693_v5, %v5692_v18 }
 0x290   : > { %v5545_v17 = vadd.f32 %v5544_v0, %v5543_v55  ;;  %v5695_v39 = vrot.slane %v5694_v15, 4 }
 0x292   : > { %v5546_v53 = vrot.slane %v5545_v17, 2  ;;  %v5696_v23 = vadd.f32 %v5695_v39, %v5694_v15 }
 0x294   : > { %v5547_v56 = vadd.f32 %v5546_v53, %v5545_v17  ;;  %v5697_v58 = vrot.slane %v5696_v23, 2 }
 0x296   : > { %v5548_v4 = vrot.slane %v5547_v56, 1  ;;  %v5698_v48 = vadd.f32 %v5697_v58, %v5696_v23 }
 0x298   : > { %v5549_v31 = vadd.f32 %v5548_v4, %v5547_v56  ;;  %v5699_v49 = vrot.slane %v5698_v48, 1 }
 0x29a   : > { %5551 = vst.msk [vmem:[%s208_s25] sm:$0x1] %vm5550_vm3, %v5549_v31  ;;  %v5700_v13 = vadd.f32 %v5699_v49, %v5698_v48 }
 0x29c   : > { %5701 = vst.msk [vmem:[%s208_s25 + $0x1] sm:$0x1] %vm5550_vm3, %v5700_v13 }
 0x29d PF: > { %s15_s15 = sadd.s32 1, %s7375_s15  }
 0x29e   : > { %p12_p4 = scmp.ge.s32.totalorder %s15_s15, 4  }
 0x2a0   :  { %14 = sbr.rel (!%p12_p4) target bundleno = 1 (0x1), region = 82 }

</bundles_post_ra>
